<compile_context>
chip_gen: v5e
topology: v5e:2x2
jax: 0.10.0
libtpu: 0.0.40
codegen_flags: <defaults>
</compile_context>

<pallas_src>
import functools

import jax
import jax.numpy as jnp
from jax.experimental import pallas as pl
from jax.experimental.pallas import tpu as pltpu

# Small, module-consistent hyperparameters (constructor defaults emb_dim=300,
# nhead=10, num_layers=5 -- scaled down here).
EMB = 32
NHEAD = 4
HEAD_DIM = EMB // NHEAD
FFN = 4 * EMB
NLAYERS = 2
NTASKS = 2
LN_EPS = 1e-5

OUT_LANES = 128          # lane-dense output width (classifier padded to this)
BATCH_TILE = 8           # batch items per grid step (keeps (8,128) tiling legal)
APPROX_ATTN_RECIPROCAL = True   # EUP approx 1/x for attention softmax denom
                                # (tiny deviation from exact softmax; set False
                                # for bit-faithful behaviour).


# ----------------------------- fused kernel ---------------------------------


def _layer_norm(y, w, b):
    mu = jnp.mean(y, axis=-1, keepdims=True)
    var = jnp.mean(jnp.square(y - mu), axis=-1, keepdims=True)
    return (y - mu) * jax.lax.rsqrt(var + LN_EPS) * w + b


def _fused_kernel(
    xyz_ref, emb_w_ref, emb_b_ref,
    wqkv_ref, bqkv_ref, wo_ref, bo_ref,
    ln1_w_ref, ln1_b_ref, lin1_w_ref, lin1_b_ref, lin2_w_ref, lin2_b_ref,
    ln2_w_ref, ln2_b_ref, cls_w_ref, cls_b_ref,
    o_ref,
    *, batch_tile, seq,
):
    rows = batch_tile * seq            # flattened token rows in this tile

    # ---- 3d -> embedding: K=3 contraction done on the VPU (free VALU slots),
    # not the MXU (which would be >97% padding on a K=3 push).
    xyz = xyz_ref[...]                                        # (rows, 3)
    x = (xyz[:, 0:1] * emb_w_ref[0:1, :]
         + xyz[:, 1:2] * emb_w_ref[1:2, :]
         + xyz[:, 2:3] * emb_w_ref[2:3, :]
         + emb_b_ref[...])                                    # (rows, E)

    # Unrolled Python layer loop is fine at NLAYERS=2 / E=32.  At the real
    # config (5 layers, E=300) switch to lax.fori_loop over the stacked layer
    # axis of the weight refs to bound vreg live ranges.
    for li in range(NLAYERS):
        # -- fused QKV projection: one lane-dense (rows, E) @ (E, 3E) matmul.
        #    1/sqrt(head_dim) is already folded into the Q columns.
        qkv = (jnp.dot(x, wqkv_ref[li], preferred_element_type=jnp.float32)
               + bqkv_ref[li])                                # (rows, 3E)

        # -- per-head attention (scores / context are inherently per-head).
        ctx_heads = []
        for h in range(NHEAD):
            lo = h * HEAD_DIM
            q_h = qkv[:, lo:lo + HEAD_DIM].reshape(batch_tile, seq, HEAD_DIM)
            k_h = qkv[:, EMB + lo:EMB + lo + HEAD_DIM].reshape(
                batch_tile, seq, HEAD_DIM)
            v_h = qkv[:, 2 * EMB + lo:2 * EMB + lo + HEAD_DIM].reshape(
                batch_tile, seq, HEAD_DIM)

            s = jnp.einsum("bqd,bkd->bqk", q_h, k_h,
                           preferred_element_type=jnp.float32)  # (TB, S, S)
            s = s - jnp.max(s, axis=-1, keepdims=True)
            p = jnp.exp(s)
            denom = jnp.sum(p, axis=-1, keepdims=True)
            if APPROX_ATTN_RECIPROCAL:
                p = p * pl.reciprocal(denom, approx=True)       # EUP slot
            else:
                p = p / denom
            ctx_heads.append(
                jnp.einsum("bqk,bkd->bqd", p, v_h,
                           preferred_element_type=jnp.float32))  # (TB, S, Dh)

        # -- re-concatenate heads, then ONE (rows, E) @ (E, E) output matmul.
        ctx = jnp.concatenate(ctx_heads, axis=-1).reshape(rows, EMB)
        attn = (jnp.dot(ctx, wo_ref[li], preferred_element_type=jnp.float32)
                + bo_ref[li])

        # -- residual + layernorm1 (post-norm, PyTorch default).
        y = _layer_norm(x + attn, ln1_w_ref[li], ln1_b_ref[li])

        # -- feed-forward (ReLU).
        h1 = jnp.maximum(
            jnp.dot(y, lin1_w_ref[li], preferred_element_type=jnp.float32)
            + lin1_b_ref[li], 0.0)
        h2 = (jnp.dot(h1, lin2_w_ref[li], preferred_element_type=jnp.float32)
              + lin2_b_ref[li])

        # -- residual + layernorm2.
        x = _layer_norm(y + h2, ln2_w_ref[li], ln2_b_ref[li])

    # ---- mean-pool over S, 128-lane-padded classifier, exact softmax.
    pooled = jnp.sum(x.reshape(batch_tile, seq, EMB), axis=1) * (1.0 / seq)
    logits = (jnp.dot(pooled, cls_w_ref[...],
                      preferred_element_type=jnp.float32)
              + cls_b_ref[...])                               # (TB, 128)
    # Pad lanes carry bias -1e30 -> exp == 0, so softmax over 128 lanes equals
    # the exact softmax over the first NTASKS lanes.
    logits = logits - jnp.max(logits, axis=-1, keepdims=True)
    e = jnp.exp(logits)
    o_ref[...] = e / jnp.sum(e, axis=-1, keepdims=True)       # dense 128-lane store


# ------------------------------ wrapper --------------------------------------


def _const_spec(arr):
    """Full-array block with a constant index_map: DMA'd once, VMEM-resident."""
    nd = arr.ndim
    return pl.BlockSpec(arr.shape, lambda i: (0,) * nd)


@jax.jit
def discriminator_forward(xyz, packed):
    """xyz: (B, S, 3); packed: tuple from pack_params().  Returns (B, NTASKS)."""
    b_sz, s_len, _ = xyz.shape
    tb = BATCH_TILE
    n_tiles = pl.cdiv(b_sz, tb)
    b_pad = n_tiles * tb
    if b_pad != b_sz:   # pad batch to a multiple of the tile; sliced off below
        xyz = jnp.concatenate(
            [xyz, jnp.zeros((b_pad - b_sz, s_len, 3), xyz.dtype)], axis=0)
    xyz_flat = xyz.reshape(b_pad * s_len, 3).astype(jnp.float32)

    kernel = functools.partial(_fused_kernel, batch_tile=tb, seq=s_len)

    in_specs = [pl.BlockSpec((tb * s_len, 3), lambda i: (i, 0))]
    in_specs += [_const_spec(p) for p in packed]
    out_spec = pl.BlockSpec((tb, OUT_LANES), lambda i: (i, 0))

    # Advisory cost estimate (mul-add = 2 flops) for XLA's scheduler.
    n_rows = b_pad * s_len
    flops = 2 * n_rows * 3 * EMB
    flops += NLAYERS * (
        2 * n_rows * EMB * 3 * EMB                       # qkv
        + 2 * 2 * b_pad * NHEAD * s_len * s_len * HEAD_DIM  # scores + pv
        + 2 * n_rows * EMB * EMB                         # out proj
        + 2 * 2 * n_rows * EMB * FFN)                    # ffn
    flops += 2 * b_pad * EMB * OUT_LANES                 # classifier
    transcendentals = (NLAYERS * b_pad * NHEAD * s_len * s_len
                       + 2 * NLAYERS * n_rows
                       + b_pad * OUT_LANES)
    bytes_accessed = (int(xyz_flat.size) * 4
                      + sum(int(p.size) * 4 for p in packed)
                      + b_pad * OUT_LANES * 4)

    out = pl.pallas_call(
        kernel,
        out_shape=jax.ShapeDtypeStruct((b_pad, OUT_LANES), jnp.float32),
        grid=(n_tiles,),
        in_specs=in_specs,
        out_specs=out_spec,
        compiler_params=pltpu.CompilerParams(
            dimension_semantics=("parallel",)),
        cost_estimate=pl.CostEstimate(
            flops=int(flops),
            transcendentals=int(transcendentals),
            bytes_accessed=int(bytes_accessed)),
    )(xyz_flat, *packed)
    return out[:b_sz, :NTASKS]


# --------------------------- parameter handling -------------------------------


def init_params(key):
    """Natural (pre-transposed PyTorch-equivalent) parameter layout."""
    keys = iter(jax.random.split(key, 64))

    def w(shape, scale=0.1):
        return jax.random.normal(next(keys), shape, jnp.float32) * scale

    params = {
        "embed_w": w((3, EMB)),
        "embed_b": w((1, EMB), 0.01),
        "cls_w": w((EMB, NTASKS)),
        "cls_b": w((1, NTASKS), 0.01),
        "layers": [],
    }
    for _ in range(NLAYERS):
        params["layers"].append({
            "in_w": w((EMB, 3 * EMB)),        # x @ in_w -> [q | k | v]
            "in_b": w((1, 3 * EMB), 0.01),
            "out_w": w((EMB, EMB)),
            "out_b": w((1, EMB), 0.01),
            "ln1_w": jnp.ones((1, EMB), jnp.float32),
            "ln1_b": jnp.zeros((1, EMB), jnp.float32),
            "lin1_w": w((EMB, FFN)),
            "lin1_b": w((1, FFN), 0.01),
            "lin2_w": w((FFN, EMB)),
            "lin2_b": w((1, EMB), 0.01),
            "ln2_w": jnp.ones((1, EMB), jnp.float32),
            "ln2_b": jnp.zeros((1, EMB), jnp.float32),
        })
    return params


def pack_params(params):
    """Kernel layout: fused QKV weights (scale folded into the Q columns),
    per-layer weights stacked on a leading layer axis, classifier padded to a
    lane-dense 128-wide output (pad columns: weight 0, bias -1e30)."""
    scale = 1.0 / float(HEAD_DIM) ** 0.5
    qscale = jnp.concatenate(
        [jnp.full((EMB,), scale, jnp.float32),
         jnp.ones((2 * EMB,), jnp.float32)])

    names = ("wqkv", "bqkv", "wo", "bo", "ln1_w", "ln1_b",
             "lin1_w", "lin1_b", "lin2_w", "lin2_b", "ln2_w", "ln2_b")
    cols = {n: [] for n in names}
    for lyr in params["layers"]:
        cols["wqkv"].append(lyr["in_w"] * qscale[None, :])
        cols["bqkv"].append(lyr["in_b"] * qscale[None, :])
        cols["wo"].append(lyr["out_w"])
        cols["bo"].append(lyr["out_b"])
        for n in ("ln1_w", "ln1_b", "lin1_w", "lin1_b",
                  "lin2_w", "lin2_b", "ln2_w", "ln2_b"):
            cols[n].append(lyr[n])
    st = lambda n: jnp.stack(cols[n], axis=0)

    cls_w = jnp.zeros((EMB, OUT_LANES), jnp.float32)
    cls_w = cls_w.at[:, :NTASKS].set(params["cls_w"])
    cls_b = jnp.full((1, OUT_LANES), -1e30, jnp.float32)
    cls_b = cls_b.at[:, :NTASKS].set(params["cls_b"])

    return (
        params["embed_w"], params["embed_b"],
        st("wqkv"), st("bqkv"), st("wo"), st("bo"),
        st("ln1_w"), st("ln1_b"), st("lin1_w"), st("lin1_b"),
        st("lin2_w"), st("lin2_b"), st("ln2_w"), st("ln2_b"),
        cls_w, cls_b,
    )


# ------------------------- pure-JAX reference ---------------------------------


def reference_forward(xyz, params):
    """Plain-XLA reference with exact softmax everywhere (module semantics)."""
    scale = 1.0 / float(HEAD_DIM) ** 0.5
    b_sz, s_len, _ = xyz.shape
    x = xyz @ params["embed_w"] + params["embed_b"]           # (B, S, E)
    for lyr in params["layers"]:
        qkv = x @ lyr["in_w"] + lyr["in_b"]
        q, k, v = jnp.split(qkv, 3, axis=-1)

        def heads(t):
            return t.reshape(b_sz, s_len, NHEAD, HEAD_DIM).transpose(0, 2, 1, 3)

        qh, kh, vh = heads(q), heads(k), heads(v)
        s = jnp.einsum("bhqd,bhkd->bhqk", qh, kh) * scale
        p = jax.nn.softmax(s, axis=-1)
        ctx = jnp.einsum("bhqk,bhkd->bhqd", p, vh)
        ctx = ctx.transpose(0, 2, 1, 3).reshape(b_sz, s_len, EMB)
        attn = ctx @ lyr["out_w"] + lyr["out_b"]
        y = _layer_norm(x + attn, lyr["ln1_w"], lyr["ln1_b"])
        h = jnp.maximum(y @ lyr["lin1_w"] + lyr["lin1_b"], 0.0)
        h = h @ lyr["lin2_w"] + lyr["lin2_b"]
        x = _layer_norm(y + h, lyr["ln2_w"], lyr["ln2_b"])
    pooled = jnp.mean(x, axis=-2)
    return jax.nn.softmax(pooled @ params["cls_w"] + params["cls_b"], axis=-1)


if __name__ == "__main__":
    key = jax.random.PRNGKey(0)
    k_params, k_data = jax.random.split(key)

    # B deliberately not a multiple of BATCH_TILE: exercises the pad-to-tile
    # path and a 2-step ("parallel") grid.
    B, S = 12, 8
    xyz = jax.random.normal(k_data, (B, S, 3), jnp.float32)
    params = init_params(k_params)
    packed = pack_params(params)

    out = discriminator_forward(xyz, packed)
    out = jax.block_until_ready(out)

    assert out.shape == (B, NTASKS), out.shape
    assert bool(jnp.all(jnp.isfinite(out)))
    row_sums = jnp.sum(out, axis=-1)
    assert bool(jnp.all(jnp.abs(row_sums - 1.0) < 1e-4)), row_sums

    # Cross-check against the exact pure-JAX reference (loose tolerance covers
    # the EUP approx reciprocal in the attention softmax).
    ref = jax.block_until_ready(reference_forward(xyz, params))
    max_err = float(jnp.max(jnp.abs(out - ref)))
    assert max_err < 2e-2, max_err

    print("KERNEL_OK")
</pallas_src>

<mosaic_0001>
module attributes {stable_mosaic.version = 11 : i64} {
  func.func @_fused_kernel(%arg0: i32, %arg1: memref<64x3xf32, #tpu.memory_space<vmem>>, %arg2: memref<3x32xf32, #tpu.memory_space<vmem>>, %arg3: memref<1x32xf32, #tpu.memory_space<vmem>>, %arg4: memref<2x32x96xf32, #tpu.memory_space<vmem>>, %arg5: memref<2x1x96xf32, #tpu.memory_space<vmem>>, %arg6: memref<2x32x32xf32, #tpu.memory_space<vmem>>, %arg7: memref<2x1x32xf32, #tpu.memory_space<vmem>>, %arg8: memref<2x1x32xf32, #tpu.memory_space<vmem>>, %arg9: memref<2x1x32xf32, #tpu.memory_space<vmem>>, %arg10: memref<2x32x128xf32, #tpu.memory_space<vmem>>, %arg11: memref<2x1x128xf32, #tpu.memory_space<vmem>>, %arg12: memref<2x128x32xf32, #tpu.memory_space<vmem>>, %arg13: memref<2x1x32xf32, #tpu.memory_space<vmem>>, %arg14: memref<2x1x32xf32, #tpu.memory_space<vmem>>, %arg15: memref<2x1x32xf32, #tpu.memory_space<vmem>>, %arg16: memref<32x128xf32, #tpu.memory_space<vmem>>, %arg17: memref<1x128xf32, #tpu.memory_space<vmem>>, %arg18: memref<8x128xf32, #tpu.memory_space<vmem>>) attributes {dimension_semantics = [#tpu.dimension_semantics<parallel>], iteration_bounds = array<i64: 2>, scalar_prefetch = 0 : i64, scratch_operands = 0 : i64, tpu.core_type = #tpu.core_type<tc>, window_params = [{transform_indices = @transform_0, window_bounds = array<i64: 64, 3>}, {pipeline_mode = #tpu.pipeline_mode<synchronous>, transform_indices = @transform_1, window_bounds = array<i64: 3, 32>}, {pipeline_mode = #tpu.pipeline_mode<synchronous>, transform_indices = @transform_2, window_bounds = array<i64: 1, 32>}, {pipeline_mode = #tpu.pipeline_mode<synchronous>, transform_indices = @transform_3, window_bounds = array<i64: 2, 32, 96>}, {pipeline_mode = #tpu.pipeline_mode<synchronous>, transform_indices = @transform_4, window_bounds = array<i64: 2, 1, 96>}, {pipeline_mode = #tpu.pipeline_mode<synchronous>, transform_indices = @transform_5, window_bounds = array<i64: 2, 32, 32>}, {pipeline_mode = #tpu.pipeline_mode<synchronous>, transform_indices = @transform_6, window_bounds = array<i64: 2, 1, 32>}, {pipeline_mode = #tpu.pipeline_mode<synchronous>, transform_indices = @transform_7, window_bounds = array<i64: 2, 1, 32>}, {pipeline_mode = #tpu.pipeline_mode<synchronous>, transform_indices = @transform_8, window_bounds = array<i64: 2, 1, 32>}, {pipeline_mode = #tpu.pipeline_mode<synchronous>, transform_indices = @transform_9, window_bounds = array<i64: 2, 32, 128>}, {pipeline_mode = #tpu.pipeline_mode<synchronous>, transform_indices = @transform_10, window_bounds = array<i64: 2, 1, 128>}, {pipeline_mode = #tpu.pipeline_mode<synchronous>, transform_indices = @transform_11, window_bounds = array<i64: 2, 128, 32>}, {pipeline_mode = #tpu.pipeline_mode<synchronous>, transform_indices = @transform_12, window_bounds = array<i64: 2, 1, 32>}, {pipeline_mode = #tpu.pipeline_mode<synchronous>, transform_indices = @transform_13, window_bounds = array<i64: 2, 1, 32>}, {pipeline_mode = #tpu.pipeline_mode<synchronous>, transform_indices = @transform_14, window_bounds = array<i64: 2, 1, 32>}, {pipeline_mode = #tpu.pipeline_mode<synchronous>, transform_indices = @transform_15, window_bounds = array<i64: 32, 128>}, {pipeline_mode = #tpu.pipeline_mode<synchronous>, transform_indices = @transform_16, window_bounds = array<i64: 1, 128>}, {transform_indices = @transform_17, window_bounds = array<i64: 8, 128>}]} {
    %c0 = arith.constant 0 : index
    %c0_0 = arith.constant 0 : index
    %0 = vector.load %arg1[%c0, %c0_0] : memref<64x3xf32, #tpu.memory_space<vmem>>, vector<64x3xf32>
    %1 = vector.extract_strided_slice %0 {offsets = [0, 0], sizes = [64, 1], strides = [1, 1]} : vector<64x3xf32> to vector<64x1xf32>
    %c0_1 = arith.constant 0 : index
    %c0_2 = arith.constant 0 : index
    %2 = vector.load %arg2[%c0_1, %c0_2] : memref<3x32xf32, #tpu.memory_space<vmem>>, vector<1x32xf32>
    %3 = vector.broadcast %1 : vector<64x1xf32> to vector<64x32xf32>
    %4 = vector.broadcast %2 : vector<1x32xf32> to vector<64x32xf32>
    %5 = arith.mulf %3, %4 : vector<64x32xf32>
    %6 = vector.extract_strided_slice %0 {offsets = [0, 1], sizes = [64, 1], strides = [1, 1]} : vector<64x3xf32> to vector<64x1xf32>
    %c1 = arith.constant 1 : index
    %c0_3 = arith.constant 0 : index
    %7 = vector.load %arg2[%c1, %c0_3] : memref<3x32xf32, #tpu.memory_space<vmem>>, vector<1x32xf32>
    %8 = vector.broadcast %6 : vector<64x1xf32> to vector<64x32xf32>
    %9 = vector.broadcast %7 : vector<1x32xf32> to vector<64x32xf32>
    %10 = arith.mulf %8, %9 : vector<64x32xf32>
    %11 = arith.addf %5, %10 : vector<64x32xf32>
    %12 = vector.extract_strided_slice %0 {offsets = [0, 2], sizes = [64, 1], strides = [1, 1]} : vector<64x3xf32> to vector<64x1xf32>
    %c2 = arith.constant 2 : index
    %c0_4 = arith.constant 0 : index
    %13 = vector.load %arg2[%c2, %c0_4] : memref<3x32xf32, #tpu.memory_space<vmem>>, vector<1x32xf32>
    %14 = vector.broadcast %12 : vector<64x1xf32> to vector<64x32xf32>
    %15 = vector.broadcast %13 : vector<1x32xf32> to vector<64x32xf32>
    %16 = arith.mulf %14, %15 : vector<64x32xf32>
    %17 = arith.addf %11, %16 : vector<64x32xf32>
    %c0_5 = arith.constant 0 : index
    %c0_6 = arith.constant 0 : index
    %18 = vector.load %arg3[%c0_5, %c0_6] : memref<1x32xf32, #tpu.memory_space<vmem>>, vector<1x32xf32>
    %19 = vector.broadcast %18 : vector<1x32xf32> to vector<64x32xf32>
    %20 = arith.addf %17, %19 : vector<64x32xf32>
    %c0_7 = arith.constant 0 : index
    %c0_8 = arith.constant 0 : index
    %c0_9 = arith.constant 0 : index
    %21 = vector.load %arg4[%c0_7, %c0_8, %c0_9] : memref<2x32x96xf32, #tpu.memory_space<vmem>>, vector<1x32x96xf32>
    %22 = vector.shape_cast %21 : vector<1x32x96xf32> to vector<32x96xf32>
    %cst = arith.constant dense<0.000000e+00> : vector<64x96xf32>
    %23 = tpu.matmul %20, %22, %cst {dimension_numbers = #tpu.dot_dimension_numbers<[1], [0], [0], [1], [0, 0, 1, 1], [], []>} : vector<64x32xf32>, vector<32x96xf32>, vector<64x96xf32> -> vector<64x96xf32>
    %c0_10 = arith.constant 0 : index
    %c0_11 = arith.constant 0 : index
    %c0_12 = arith.constant 0 : index
    %24 = vector.load %arg5[%c0_10, %c0_11, %c0_12] : memref<2x1x96xf32, #tpu.memory_space<vmem>>, vector<1x1x96xf32>
    %25 = vector.shape_cast %24 : vector<1x1x96xf32> to vector<1x96xf32>
    %26 = vector.broadcast %25 : vector<1x96xf32> to vector<64x96xf32>
    %27 = arith.addf %23, %26 : vector<64x96xf32>
    %28 = vector.extract_strided_slice %27 {offsets = [0, 0], sizes = [64, 8], strides = [1, 1]} : vector<64x96xf32> to vector<64x8xf32>
    %29 = vector.shape_cast %28 : vector<64x8xf32> to vector<8x8x8xf32>
    %30 = vector.extract_strided_slice %27 {offsets = [0, 32], sizes = [64, 8], strides = [1, 1]} : vector<64x96xf32> to vector<64x8xf32>
    %31 = vector.shape_cast %30 : vector<64x8xf32> to vector<8x8x8xf32>
    %32 = vector.extract_strided_slice %27 {offsets = [0, 64], sizes = [64, 8], strides = [1, 1]} : vector<64x96xf32> to vector<64x8xf32>
    %33 = vector.shape_cast %32 : vector<64x8xf32> to vector<8x8x8xf32>
    "tpu.trace_start"() <{level = 10 : i32, message = "bqd,bkd->bqk"}> : () -> ()
    %cst_13 = arith.constant dense<0.000000e+00> : vector<8x8x8xf32>
    %34 = tpu.matmul %29, %31, %cst_13 {dimension_numbers = #tpu.dot_dimension_numbers<[2], [2], [1], [1], [0, 0, 0, 1, 1, 1], [0], [0]>} : vector<8x8x8xf32>, vector<8x8x8xf32>, vector<8x8x8xf32> -> vector<8x8x8xf32>
    "tpu.trace_stop"() : () -> ()
    %cst_14 = arith.constant dense<0xFF800000> : vector<8x8xf32>
    %35 = vector.multi_reduction <maximumf>, %34, %cst_14 [2] : vector<8x8x8xf32> to vector<8x8xf32>
    %36 = vector.shape_cast %35 : vector<8x8xf32> to vector<8x8x1xf32>
    %37 = vector.broadcast %36 : vector<8x8x1xf32> to vector<8x8x8xf32>
    %38 = arith.subf %34, %37 : vector<8x8x8xf32>
    %39 = math.exp %38 : vector<8x8x8xf32>
    %cst_15 = arith.constant dense<0.000000e+00> : vector<8x8xf32>
    %40 = vector.multi_reduction <add>, %39, %cst_15 [2] : vector<8x8x8xf32> to vector<8x8xf32>
    %41 = vector.shape_cast %40 : vector<8x8xf32> to vector<8x8x1xf32>
    %42 = tpu.reciprocal %41 {approx = true} : vector<8x8x1xf32> -> vector<8x8x1xf32>
    %43 = vector.broadcast %42 : vector<8x8x1xf32> to vector<8x8x8xf32>
    %44 = arith.mulf %39, %43 : vector<8x8x8xf32>
    "tpu.trace_start"() <{level = 10 : i32, message = "bqk,bkd->bqd"}> : () -> ()
    %cst_16 = arith.constant dense<0.000000e+00> : vector<8x8x8xf32>
    %45 = tpu.matmul %44, %33, %cst_16 {dimension_numbers = #tpu.dot_dimension_numbers<[2], [1], [1], [2], [0, 0, 0, 1, 1, 2], [0], [0]>} : vector<8x8x8xf32>, vector<8x8x8xf32>, vector<8x8x8xf32> -> vector<8x8x8xf32>
    "tpu.trace_stop"() : () -> ()
    %46 = vector.extract_strided_slice %27 {offsets = [0, 8], sizes = [64, 8], strides = [1, 1]} : vector<64x96xf32> to vector<64x8xf32>
    %47 = vector.shape_cast %46 : vector<64x8xf32> to vector<8x8x8xf32>
    %48 = vector.extract_strided_slice %27 {offsets = [0, 40], sizes = [64, 8], strides = [1, 1]} : vector<64x96xf32> to vector<64x8xf32>
    %49 = vector.shape_cast %48 : vector<64x8xf32> to vector<8x8x8xf32>
    %50 = vector.extract_strided_slice %27 {offsets = [0, 72], sizes = [64, 8], strides = [1, 1]} : vector<64x96xf32> to vector<64x8xf32>
    %51 = vector.shape_cast %50 : vector<64x8xf32> to vector<8x8x8xf32>
    "tpu.trace_start"() <{level = 10 : i32, message = "bqd,bkd->bqk"}> : () -> ()
    %cst_17 = arith.constant dense<0.000000e+00> : vector<8x8x8xf32>
    %52 = tpu.matmul %47, %49, %cst_17 {dimension_numbers = #tpu.dot_dimension_numbers<[2], [2], [1], [1], [0, 0, 0, 1, 1, 1], [0], [0]>} : vector<8x8x8xf32>, vector<8x8x8xf32>, vector<8x8x8xf32> -> vector<8x8x8xf32>
    "tpu.trace_stop"() : () -> ()
    %cst_18 = arith.constant dense<0xFF800000> : vector<8x8xf32>
    %53 = vector.multi_reduction <maximumf>, %52, %cst_18 [2] : vector<8x8x8xf32> to vector<8x8xf32>
    %54 = vector.shape_cast %53 : vector<8x8xf32> to vector<8x8x1xf32>
    %55 = vector.broadcast %54 : vector<8x8x1xf32> to vector<8x8x8xf32>
    %56 = arith.subf %52, %55 : vector<8x8x8xf32>
    %57 = math.exp %56 : vector<8x8x8xf32>
    %cst_19 = arith.constant dense<0.000000e+00> : vector<8x8xf32>
    %58 = vector.multi_reduction <add>, %57, %cst_19 [2] : vector<8x8x8xf32> to vector<8x8xf32>
    %59 = vector.shape_cast %58 : vector<8x8xf32> to vector<8x8x1xf32>
    %60 = tpu.reciprocal %59 {approx = true} : vector<8x8x1xf32> -> vector<8x8x1xf32>
    %61 = vector.broadcast %60 : vector<8x8x1xf32> to vector<8x8x8xf32>
    %62 = arith.mulf %57, %61 : vector<8x8x8xf32>
    "tpu.trace_start"() <{level = 10 : i32, message = "bqk,bkd->bqd"}> : () -> ()
    %cst_20 = arith.constant dense<0.000000e+00> : vector<8x8x8xf32>
    %63 = tpu.matmul %62, %51, %cst_20 {dimension_numbers = #tpu.dot_dimension_numbers<[2], [1], [1], [2], [0, 0, 0, 1, 1, 2], [0], [0]>} : vector<8x8x8xf32>, vector<8x8x8xf32>, vector<8x8x8xf32> -> vector<8x8x8xf32>
    "tpu.trace_stop"() : () -> ()
    %64 = vector.extract_strided_slice %27 {offsets = [0, 16], sizes = [64, 8], strides = [1, 1]} : vector<64x96xf32> to vector<64x8xf32>
    %65 = vector.shape_cast %64 : vector<64x8xf32> to vector<8x8x8xf32>
    %66 = vector.extract_strided_slice %27 {offsets = [0, 48], sizes = [64, 8], strides = [1, 1]} : vector<64x96xf32> to vector<64x8xf32>
    %67 = vector.shape_cast %66 : vector<64x8xf32> to vector<8x8x8xf32>
    %68 = vector.extract_strided_slice %27 {offsets = [0, 80], sizes = [64, 8], strides = [1, 1]} : vector<64x96xf32> to vector<64x8xf32>
    %69 = vector.shape_cast %68 : vector<64x8xf32> to vector<8x8x8xf32>
    "tpu.trace_start"() <{level = 10 : i32, message = "bqd,bkd->bqk"}> : () -> ()
    %cst_21 = arith.constant dense<0.000000e+00> : vector<8x8x8xf32>
    %70 = tpu.matmul %65, %67, %cst_21 {dimension_numbers = #tpu.dot_dimension_numbers<[2], [2], [1], [1], [0, 0, 0, 1, 1, 1], [0], [0]>} : vector<8x8x8xf32>, vector<8x8x8xf32>, vector<8x8x8xf32> -> vector<8x8x8xf32>
    "tpu.trace_stop"() : () -> ()
    %cst_22 = arith.constant dense<0xFF800000> : vector<8x8xf32>
    %71 = vector.multi_reduction <maximumf>, %70, %cst_22 [2] : vector<8x8x8xf32> to vector<8x8xf32>
    %72 = vector.shape_cast %71 : vector<8x8xf32> to vector<8x8x1xf32>
    %73 = vector.broadcast %72 : vector<8x8x1xf32> to vector<8x8x8xf32>
    %74 = arith.subf %70, %73 : vector<8x8x8xf32>
    %75 = math.exp %74 : vector<8x8x8xf32>
    %cst_23 = arith.constant dense<0.000000e+00> : vector<8x8xf32>
    %76 = vector.multi_reduction <add>, %75, %cst_23 [2] : vector<8x8x8xf32> to vector<8x8xf32>
    %77 = vector.shape_cast %76 : vector<8x8xf32> to vector<8x8x1xf32>
    %78 = tpu.reciprocal %77 {approx = true} : vector<8x8x1xf32> -> vector<8x8x1xf32>
    %79 = vector.broadcast %78 : vector<8x8x1xf32> to vector<8x8x8xf32>
    %80 = arith.mulf %75, %79 : vector<8x8x8xf32>
    "tpu.trace_start"() <{level = 10 : i32, message = "bqk,bkd->bqd"}> : () -> ()
    %cst_24 = arith.constant dense<0.000000e+00> : vector<8x8x8xf32>
    %81 = tpu.matmul %80, %69, %cst_24 {dimension_numbers = #tpu.dot_dimension_numbers<[2], [1], [1], [2], [0, 0, 0, 1, 1, 2], [0], [0]>} : vector<8x8x8xf32>, vector<8x8x8xf32>, vector<8x8x8xf32> -> vector<8x8x8xf32>
    "tpu.trace_stop"() : () -> ()
    %82 = vector.extract_strided_slice %27 {offsets = [0, 24], sizes = [64, 8], strides = [1, 1]} : vector<64x96xf32> to vector<64x8xf32>
    %83 = vector.shape_cast %82 : vector<64x8xf32> to vector<8x8x8xf32>
    %84 = vector.extract_strided_slice %27 {offsets = [0, 56], sizes = [64, 8], strides = [1, 1]} : vector<64x96xf32> to vector<64x8xf32>
    %85 = vector.shape_cast %84 : vector<64x8xf32> to vector<8x8x8xf32>
    %86 = vector.extract_strided_slice %27 {offsets = [0, 88], sizes = [64, 8], strides = [1, 1]} : vector<64x96xf32> to vector<64x8xf32>
    %87 = vector.shape_cast %86 : vector<64x8xf32> to vector<8x8x8xf32>
    "tpu.trace_start"() <{level = 10 : i32, message = "bqd,bkd->bqk"}> : () -> ()
    %cst_25 = arith.constant dense<0.000000e+00> : vector<8x8x8xf32>
    %88 = tpu.matmul %83, %85, %cst_25 {dimension_numbers = #tpu.dot_dimension_numbers<[2], [2], [1], [1], [0, 0, 0, 1, 1, 1], [0], [0]>} : vector<8x8x8xf32>, vector<8x8x8xf32>, vector<8x8x8xf32> -> vector<8x8x8xf32>
    "tpu.trace_stop"() : () -> ()
    %cst_26 = arith.constant dense<0xFF800000> : vector<8x8xf32>
    %89 = vector.multi_reduction <maximumf>, %88, %cst_26 [2] : vector<8x8x8xf32> to vector<8x8xf32>
    %90 = vector.shape_cast %89 : vector<8x8xf32> to vector<8x8x1xf32>
    %91 = vector.broadcast %90 : vector<8x8x1xf32> to vector<8x8x8xf32>
    %92 = arith.subf %88, %91 : vector<8x8x8xf32>
    %93 = math.exp %92 : vector<8x8x8xf32>
    %cst_27 = arith.constant dense<0.000000e+00> : vector<8x8xf32>
    %94 = vector.multi_reduction <add>, %93, %cst_27 [2] : vector<8x8x8xf32> to vector<8x8xf32>
    %95 = vector.shape_cast %94 : vector<8x8xf32> to vector<8x8x1xf32>
    %96 = tpu.reciprocal %95 {approx = true} : vector<8x8x1xf32> -> vector<8x8x1xf32>
    %97 = vector.broadcast %96 : vector<8x8x1xf32> to vector<8x8x8xf32>
    %98 = arith.mulf %93, %97 : vector<8x8x8xf32>
    "tpu.trace_start"() <{level = 10 : i32, message = "bqk,bkd->bqd"}> : () -> ()
    %cst_28 = arith.constant dense<0.000000e+00> : vector<8x8x8xf32>
    %99 = tpu.matmul %98, %87, %cst_28 {dimension_numbers = #tpu.dot_dimension_numbers<[2], [1], [1], [2], [0, 0, 0, 1, 1, 2], [0], [0]>} : vector<8x8x8xf32>, vector<8x8x8xf32>, vector<8x8x8xf32> -> vector<8x8x8xf32>
    "tpu.trace_stop"() : () -> ()
    %100 = tpu.concatenate %45, %63, %81, %99 in 2 : vector<8x8x8xf32>, vector<8x8x8xf32>, vector<8x8x8xf32>, vector<8x8x8xf32> -> vector<8x8x32xf32>
    %101 = vector.shape_cast %100 : vector<8x8x32xf32> to vector<64x32xf32>
    %c0_29 = arith.constant 0 : index
    %c0_30 = arith.constant 0 : index
    %c0_31 = arith.constant 0 : index
    %102 = vector.load %arg6[%c0_29, %c0_30, %c0_31] : memref<2x32x32xf32, #tpu.memory_space<vmem>>, vector<1x32x32xf32>
    %103 = vector.shape_cast %102 : vector<1x32x32xf32> to vector<32x32xf32>
    %cst_32 = arith.constant dense<0.000000e+00> : vector<64x32xf32>
    %104 = tpu.matmul %101, %103, %cst_32 {dimension_numbers = #tpu.dot_dimension_numbers<[1], [0], [0], [1], [0, 0, 1, 1], [], []>} : vector<64x32xf32>, vector<32x32xf32>, vector<64x32xf32> -> vector<64x32xf32>
    %c0_33 = arith.constant 0 : index
    %c0_34 = arith.constant 0 : index
    %c0_35 = arith.constant 0 : index
    %105 = vector.load %arg7[%c0_33, %c0_34, %c0_35] : memref<2x1x32xf32, #tpu.memory_space<vmem>>, vector<1x1x32xf32>
    %106 = vector.shape_cast %105 : vector<1x1x32xf32> to vector<1x32xf32>
    %107 = vector.broadcast %106 : vector<1x32xf32> to vector<64x32xf32>
    %108 = arith.addf %104, %107 : vector<64x32xf32>
    %109 = arith.addf %20, %108 : vector<64x32xf32>
    %c0_36 = arith.constant 0 : index
    %c0_37 = arith.constant 0 : index
    %c0_38 = arith.constant 0 : index
    %110 = vector.load %arg8[%c0_36, %c0_37, %c0_38] : memref<2x1x32xf32, #tpu.memory_space<vmem>>, vector<1x1x32xf32>
    %111 = vector.shape_cast %110 : vector<1x1x32xf32> to vector<1x32xf32>
    %c0_39 = arith.constant 0 : index
    %c0_40 = arith.constant 0 : index
    %c0_41 = arith.constant 0 : index
    %112 = vector.load %arg9[%c0_39, %c0_40, %c0_41] : memref<2x1x32xf32, #tpu.memory_space<vmem>>, vector<1x1x32xf32>
    %113 = vector.shape_cast %112 : vector<1x1x32xf32> to vector<1x32xf32>
    %cst_42 = arith.constant dense<0.000000e+00> : vector<64xf32>
    %114 = vector.multi_reduction <add>, %109, %cst_42 [1] : vector<64x32xf32> to vector<64xf32>
    %115 = vector.shape_cast %114 : vector<64xf32> to vector<64x1xf32>
    %cst_43 = arith.constant 3.200000e+01 : f32
    %116 = vector.broadcast %cst_43 : f32 to vector<64x1xf32>
    %117 = arith.divf %115, %116 : vector<64x1xf32>
    %118 = vector.broadcast %117 : vector<64x1xf32> to vector<64x32xf32>
    %119 = arith.subf %109, %118 : vector<64x32xf32>
    %120 = arith.mulf %119, %119 : vector<64x32xf32>
    %cst_44 = arith.constant dense<0.000000e+00> : vector<64xf32>
    %121 = vector.multi_reduction <add>, %120, %cst_44 [1] : vector<64x32xf32> to vector<64xf32>
    %122 = vector.shape_cast %121 : vector<64xf32> to vector<64x1xf32>
    %cst_45 = arith.constant 3.200000e+01 : f32
    %123 = vector.broadcast %cst_45 : f32 to vector<64x1xf32>
    %124 = arith.divf %122, %123 : vector<64x1xf32>
    %125 = vector.broadcast %117 : vector<64x1xf32> to vector<64x32xf32>
    %126 = arith.subf %109, %125 : vector<64x32xf32>
    %cst_46 = arith.constant 9.99999974E-6 : f32
    %127 = vector.broadcast %cst_46 : f32 to vector<64x1xf32>
    %128 = arith.addf %124, %127 : vector<64x1xf32>
    %129 = math.rsqrt %128 : vector<64x1xf32>
    %130 = vector.broadcast %129 : vector<64x1xf32> to vector<64x32xf32>
    %131 = arith.mulf %126, %130 : vector<64x32xf32>
    %132 = vector.broadcast %111 : vector<1x32xf32> to vector<64x32xf32>
    %133 = arith.mulf %131, %132 : vector<64x32xf32>
    %134 = vector.broadcast %113 : vector<1x32xf32> to vector<64x32xf32>
    %135 = arith.addf %133, %134 : vector<64x32xf32>
    %c0_47 = arith.constant 0 : index
    %c0_48 = arith.constant 0 : index
    %c0_49 = arith.constant 0 : index
    %136 = vector.load %arg10[%c0_47, %c0_48, %c0_49] : memref<2x32x128xf32, #tpu.memory_space<vmem>>, vector<1x32x128xf32>
    %137 = vector.shape_cast %136 : vector<1x32x128xf32> to vector<32x128xf32>
    %cst_50 = arith.constant dense<0.000000e+00> : vector<64x128xf32>
    %138 = tpu.matmul %135, %137, %cst_50 {dimension_numbers = #tpu.dot_dimension_numbers<[1], [0], [0], [1], [0, 0, 1, 1], [], []>} : vector<64x32xf32>, vector<32x128xf32>, vector<64x128xf32> -> vector<64x128xf32>
    %c0_51 = arith.constant 0 : index
    %c0_52 = arith.constant 0 : index
    %c0_53 = arith.constant 0 : index
    %139 = vector.load %arg11[%c0_51, %c0_52, %c0_53] : memref<2x1x128xf32, #tpu.memory_space<vmem>>, vector<1x1x128xf32>
    %140 = vector.shape_cast %139 : vector<1x1x128xf32> to vector<1x128xf32>
    %141 = vector.broadcast %140 : vector<1x128xf32> to vector<64x128xf32>
    %142 = arith.addf %138, %141 : vector<64x128xf32>
    %cst_54 = arith.constant 0.000000e+00 : f32
    %143 = vector.broadcast %cst_54 : f32 to vector<64x128xf32>
    %144 = arith.maximumf %142, %143 : vector<64x128xf32>
    %c0_55 = arith.constant 0 : index
    %c0_56 = arith.constant 0 : index
    %c0_57 = arith.constant 0 : index
    %145 = vector.load %arg12[%c0_55, %c0_56, %c0_57] : memref<2x128x32xf32, #tpu.memory_space<vmem>>, vector<1x128x32xf32>
    %146 = vector.shape_cast %145 : vector<1x128x32xf32> to vector<128x32xf32>
    %cst_58 = arith.constant dense<0.000000e+00> : vector<64x32xf32>
    %147 = tpu.matmul %144, %146, %cst_58 {dimension_numbers = #tpu.dot_dimension_numbers<[1], [0], [0], [1], [0, 0, 1, 1], [], []>} : vector<64x128xf32>, vector<128x32xf32>, vector<64x32xf32> -> vector<64x32xf32>
    %c0_59 = arith.constant 0 : index
    %c0_60 = arith.constant 0 : index
    %c0_61 = arith.constant 0 : index
    %148 = vector.load %arg13[%c0_59, %c0_60, %c0_61] : memref<2x1x32xf32, #tpu.memory_space<vmem>>, vector<1x1x32xf32>
    %149 = vector.shape_cast %148 : vector<1x1x32xf32> to vector<1x32xf32>
    %150 = vector.broadcast %149 : vector<1x32xf32> to vector<64x32xf32>
    %151 = arith.addf %147, %150 : vector<64x32xf32>
    %152 = arith.addf %135, %151 : vector<64x32xf32>
    %c0_62 = arith.constant 0 : index
    %c0_63 = arith.constant 0 : index
    %c0_64 = arith.constant 0 : index
    %153 = vector.load %arg14[%c0_62, %c0_63, %c0_64] : memref<2x1x32xf32, #tpu.memory_space<vmem>>, vector<1x1x32xf32>
    %154 = vector.shape_cast %153 : vector<1x1x32xf32> to vector<1x32xf32>
    %c0_65 = arith.constant 0 : index
    %c0_66 = arith.constant 0 : index
    %c0_67 = arith.constant 0 : index
    %155 = vector.load %arg15[%c0_65, %c0_66, %c0_67] : memref<2x1x32xf32, #tpu.memory_space<vmem>>, vector<1x1x32xf32>
    %156 = vector.shape_cast %155 : vector<1x1x32xf32> to vector<1x32xf32>
    %cst_68 = arith.constant dense<0.000000e+00> : vector<64xf32>
    %157 = vector.multi_reduction <add>, %152, %cst_68 [1] : vector<64x32xf32> to vector<64xf32>
    %158 = vector.shape_cast %157 : vector<64xf32> to vector<64x1xf32>
    %cst_69 = arith.constant 3.200000e+01 : f32
    %159 = vector.broadcast %cst_69 : f32 to vector<64x1xf32>
    %160 = arith.divf %158, %159 : vector<64x1xf32>
    %161 = vector.broadcast %160 : vector<64x1xf32> to vector<64x32xf32>
    %162 = arith.subf %152, %161 : vector<64x32xf32>
    %163 = arith.mulf %162, %162 : vector<64x32xf32>
    %cst_70 = arith.constant dense<0.000000e+00> : vector<64xf32>
    %164 = vector.multi_reduction <add>, %163, %cst_70 [1] : vector<64x32xf32> to vector<64xf32>
    %165 = vector.shape_cast %164 : vector<64xf32> to vector<64x1xf32>
    %cst_71 = arith.constant 3.200000e+01 : f32
    %166 = vector.broadcast %cst_71 : f32 to vector<64x1xf32>
    %167 = arith.divf %165, %166 : vector<64x1xf32>
    %168 = vector.broadcast %160 : vector<64x1xf32> to vector<64x32xf32>
    %169 = arith.subf %152, %168 : vector<64x32xf32>
    %cst_72 = arith.constant 9.99999974E-6 : f32
    %170 = vector.broadcast %cst_72 : f32 to vector<64x1xf32>
    %171 = arith.addf %167, %170 : vector<64x1xf32>
    %172 = math.rsqrt %171 : vector<64x1xf32>
    %173 = vector.broadcast %172 : vector<64x1xf32> to vector<64x32xf32>
    %174 = arith.mulf %169, %173 : vector<64x32xf32>
    %175 = vector.broadcast %154 : vector<1x32xf32> to vector<64x32xf32>
    %176 = arith.mulf %174, %175 : vector<64x32xf32>
    %177 = vector.broadcast %156 : vector<1x32xf32> to vector<64x32xf32>
    %178 = arith.addf %176, %177 : vector<64x32xf32>
    %c1_73 = arith.constant 1 : index
    %c0_74 = arith.constant 0 : index
    %c0_75 = arith.constant 0 : index
    %179 = vector.load %arg4[%c1_73, %c0_74, %c0_75] : memref<2x32x96xf32, #tpu.memory_space<vmem>>, vector<1x32x96xf32>
    %180 = vector.shape_cast %179 : vector<1x32x96xf32> to vector<32x96xf32>
    %cst_76 = arith.constant dense<0.000000e+00> : vector<64x96xf32>
    %181 = tpu.matmul %178, %180, %cst_76 {dimension_numbers = #tpu.dot_dimension_numbers<[1], [0], [0], [1], [0, 0, 1, 1], [], []>} : vector<64x32xf32>, vector<32x96xf32>, vector<64x96xf32> -> vector<64x96xf32>
    %c1_77 = arith.constant 1 : index
    %c0_78 = arith.constant 0 : index
    %c0_79 = arith.constant 0 : index
    %182 = vector.load %arg5[%c1_77, %c0_78, %c0_79] : memref<2x1x96xf32, #tpu.memory_space<vmem>>, vector<1x1x96xf32>
    %183 = vector.shape_cast %182 : vector<1x1x96xf32> to vector<1x96xf32>
    %184 = vector.broadcast %183 : vector<1x96xf32> to vector<64x96xf32>
    %185 = arith.addf %181, %184 : vector<64x96xf32>
    %186 = vector.extract_strided_slice %185 {offsets = [0, 0], sizes = [64, 8], strides = [1, 1]} : vector<64x96xf32> to vector<64x8xf32>
    %187 = vector.shape_cast %186 : vector<64x8xf32> to vector<8x8x8xf32>
    %188 = vector.extract_strided_slice %185 {offsets = [0, 32], sizes = [64, 8], strides = [1, 1]} : vector<64x96xf32> to vector<64x8xf32>
    %189 = vector.shape_cast %188 : vector<64x8xf32> to vector<8x8x8xf32>
    %190 = vector.extract_strided_slice %185 {offsets = [0, 64], sizes = [64, 8], strides = [1, 1]} : vector<64x96xf32> to vector<64x8xf32>
    %191 = vector.shape_cast %190 : vector<64x8xf32> to vector<8x8x8xf32>
    "tpu.trace_start"() <{level = 10 : i32, message = "bqd,bkd->bqk"}> : () -> ()
    %cst_80 = arith.constant dense<0.000000e+00> : vector<8x8x8xf32>
    %192 = tpu.matmul %187, %189, %cst_80 {dimension_numbers = #tpu.dot_dimension_numbers<[2], [2], [1], [1], [0, 0, 0, 1, 1, 1], [0], [0]>} : vector<8x8x8xf32>, vector<8x8x8xf32>, vector<8x8x8xf32> -> vector<8x8x8xf32>
    "tpu.trace_stop"() : () -> ()
    %cst_81 = arith.constant dense<0xFF800000> : vector<8x8xf32>
    %193 = vector.multi_reduction <maximumf>, %192, %cst_81 [2] : vector<8x8x8xf32> to vector<8x8xf32>
    %194 = vector.shape_cast %193 : vector<8x8xf32> to vector<8x8x1xf32>
    %195 = vector.broadcast %194 : vector<8x8x1xf32> to vector<8x8x8xf32>
    %196 = arith.subf %192, %195 : vector<8x8x8xf32>
    %197 = math.exp %196 : vector<8x8x8xf32>
    %cst_82 = arith.constant dense<0.000000e+00> : vector<8x8xf32>
    %198 = vector.multi_reduction <add>, %197, %cst_82 [2] : vector<8x8x8xf32> to vector<8x8xf32>
    %199 = vector.shape_cast %198 : vector<8x8xf32> to vector<8x8x1xf32>
    %200 = tpu.reciprocal %199 {approx = true} : vector<8x8x1xf32> -> vector<8x8x1xf32>
    %201 = vector.broadcast %200 : vector<8x8x1xf32> to vector<8x8x8xf32>
    %202 = arith.mulf %197, %201 : vector<8x8x8xf32>
    "tpu.trace_start"() <{level = 10 : i32, message = "bqk,bkd->bqd"}> : () -> ()
    %cst_83 = arith.constant dense<0.000000e+00> : vector<8x8x8xf32>
    %203 = tpu.matmul %202, %191, %cst_83 {dimension_numbers = #tpu.dot_dimension_numbers<[2], [1], [1], [2], [0, 0, 0, 1, 1, 2], [0], [0]>} : vector<8x8x8xf32>, vector<8x8x8xf32>, vector<8x8x8xf32> -> vector<8x8x8xf32>
    "tpu.trace_stop"() : () -> ()
    %204 = vector.extract_strided_slice %185 {offsets = [0, 8], sizes = [64, 8], strides = [1, 1]} : vector<64x96xf32> to vector<64x8xf32>
    %205 = vector.shape_cast %204 : vector<64x8xf32> to vector<8x8x8xf32>
    %206 = vector.extract_strided_slice %185 {offsets = [0, 40], sizes = [64, 8], strides = [1, 1]} : vector<64x96xf32> to vector<64x8xf32>
    %207 = vector.shape_cast %206 : vector<64x8xf32> to vector<8x8x8xf32>
    %208 = vector.extract_strided_slice %185 {offsets = [0, 72], sizes = [64, 8], strides = [1, 1]} : vector<64x96xf32> to vector<64x8xf32>
    %209 = vector.shape_cast %208 : vector<64x8xf32> to vector<8x8x8xf32>
    "tpu.trace_start"() <{level = 10 : i32, message = "bqd,bkd->bqk"}> : () -> ()
    %cst_84 = arith.constant dense<0.000000e+00> : vector<8x8x8xf32>
    %210 = tpu.matmul %205, %207, %cst_84 {dimension_numbers = #tpu.dot_dimension_numbers<[2], [2], [1], [1], [0, 0, 0, 1, 1, 1], [0], [0]>} : vector<8x8x8xf32>, vector<8x8x8xf32>, vector<8x8x8xf32> -> vector<8x8x8xf32>
    "tpu.trace_stop"() : () -> ()
    %cst_85 = arith.constant dense<0xFF800000> : vector<8x8xf32>
    %211 = vector.multi_reduction <maximumf>, %210, %cst_85 [2] : vector<8x8x8xf32> to vector<8x8xf32>
    %212 = vector.shape_cast %211 : vector<8x8xf32> to vector<8x8x1xf32>
    %213 = vector.broadcast %212 : vector<8x8x1xf32> to vector<8x8x8xf32>
    %214 = arith.subf %210, %213 : vector<8x8x8xf32>
    %215 = math.exp %214 : vector<8x8x8xf32>
    %cst_86 = arith.constant dense<0.000000e+00> : vector<8x8xf32>
    %216 = vector.multi_reduction <add>, %215, %cst_86 [2] : vector<8x8x8xf32> to vector<8x8xf32>
    %217 = vector.shape_cast %216 : vector<8x8xf32> to vector<8x8x1xf32>
    %218 = tpu.reciprocal %217 {approx = true} : vector<8x8x1xf32> -> vector<8x8x1xf32>
    %219 = vector.broadcast %218 : vector<8x8x1xf32> to vector<8x8x8xf32>
    %220 = arith.mulf %215, %219 : vector<8x8x8xf32>
    "tpu.trace_start"() <{level = 10 : i32, message = "bqk,bkd->bqd"}> : () -> ()
    %cst_87 = arith.constant dense<0.000000e+00> : vector<8x8x8xf32>
    %221 = tpu.matmul %220, %209, %cst_87 {dimension_numbers = #tpu.dot_dimension_numbers<[2], [1], [1], [2], [0, 0, 0, 1, 1, 2], [0], [0]>} : vector<8x8x8xf32>, vector<8x8x8xf32>, vector<8x8x8xf32> -> vector<8x8x8xf32>
    "tpu.trace_stop"() : () -> ()
    %222 = vector.extract_strided_slice %185 {offsets = [0, 16], sizes = [64, 8], strides = [1, 1]} : vector<64x96xf32> to vector<64x8xf32>
    %223 = vector.shape_cast %222 : vector<64x8xf32> to vector<8x8x8xf32>
    %224 = vector.extract_strided_slice %185 {offsets = [0, 48], sizes = [64, 8], strides = [1, 1]} : vector<64x96xf32> to vector<64x8xf32>
    %225 = vector.shape_cast %224 : vector<64x8xf32> to vector<8x8x8xf32>
    %226 = vector.extract_strided_slice %185 {offsets = [0, 80], sizes = [64, 8], strides = [1, 1]} : vector<64x96xf32> to vector<64x8xf32>
    %227 = vector.shape_cast %226 : vector<64x8xf32> to vector<8x8x8xf32>
    "tpu.trace_start"() <{level = 10 : i32, message = "bqd,bkd->bqk"}> : () -> ()
    %cst_88 = arith.constant dense<0.000000e+00> : vector<8x8x8xf32>
    %228 = tpu.matmul %223, %225, %cst_88 {dimension_numbers = #tpu.dot_dimension_numbers<[2], [2], [1], [1], [0, 0, 0, 1, 1, 1], [0], [0]>} : vector<8x8x8xf32>, vector<8x8x8xf32>, vector<8x8x8xf32> -> vector<8x8x8xf32>
    "tpu.trace_stop"() : () -> ()
    %cst_89 = arith.constant dense<0xFF800000> : vector<8x8xf32>
    %229 = vector.multi_reduction <maximumf>, %228, %cst_89 [2] : vector<8x8x8xf32> to vector<8x8xf32>
    %230 = vector.shape_cast %229 : vector<8x8xf32> to vector<8x8x1xf32>
    %231 = vector.broadcast %230 : vector<8x8x1xf32> to vector<8x8x8xf32>
    %232 = arith.subf %228, %231 : vector<8x8x8xf32>
    %233 = math.exp %232 : vector<8x8x8xf32>
    %cst_90 = arith.constant dense<0.000000e+00> : vector<8x8xf32>
    %234 = vector.multi_reduction <add>, %233, %cst_90 [2] : vector<8x8x8xf32> to vector<8x8xf32>
    %235 = vector.shape_cast %234 : vector<8x8xf32> to vector<8x8x1xf32>
    %236 = tpu.reciprocal %235 {approx = true} : vector<8x8x1xf32> -> vector<8x8x1xf32>
    %237 = vector.broadcast %236 : vector<8x8x1xf32> to vector<8x8x8xf32>
    %238 = arith.mulf %233, %237 : vector<8x8x8xf32>
    "tpu.trace_start"() <{level = 10 : i32, message = "bqk,bkd->bqd"}> : () -> ()
    %cst_91 = arith.constant dense<0.000000e+00> : vector<8x8x8xf32>
    %239 = tpu.matmul %238, %227, %cst_91 {dimension_numbers = #tpu.dot_dimension_numbers<[2], [1], [1], [2], [0, 0, 0, 1, 1, 2], [0], [0]>} : vector<8x8x8xf32>, vector<8x8x8xf32>, vector<8x8x8xf32> -> vector<8x8x8xf32>
    "tpu.trace_stop"() : () -> ()
    %240 = vector.extract_strided_slice %185 {offsets = [0, 24], sizes = [64, 8], strides = [1, 1]} : vector<64x96xf32> to vector<64x8xf32>
    %241 = vector.shape_cast %240 : vector<64x8xf32> to vector<8x8x8xf32>
    %242 = vector.extract_strided_slice %185 {offsets = [0, 56], sizes = [64, 8], strides = [1, 1]} : vector<64x96xf32> to vector<64x8xf32>
    %243 = vector.shape_cast %242 : vector<64x8xf32> to vector<8x8x8xf32>
    %244 = vector.extract_strided_slice %185 {offsets = [0, 88], sizes = [64, 8], strides = [1, 1]} : vector<64x96xf32> to vector<64x8xf32>
    %245 = vector.shape_cast %244 : vector<64x8xf32> to vector<8x8x8xf32>
    "tpu.trace_start"() <{level = 10 : i32, message = "bqd,bkd->bqk"}> : () -> ()
    %cst_92 = arith.constant dense<0.000000e+00> : vector<8x8x8xf32>
    %246 = tpu.matmul %241, %243, %cst_92 {dimension_numbers = #tpu.dot_dimension_numbers<[2], [2], [1], [1], [0, 0, 0, 1, 1, 1], [0], [0]>} : vector<8x8x8xf32>, vector<8x8x8xf32>, vector<8x8x8xf32> -> vector<8x8x8xf32>
    "tpu.trace_stop"() : () -> ()
    %cst_93 = arith.constant dense<0xFF800000> : vector<8x8xf32>
    %247 = vector.multi_reduction <maximumf>, %246, %cst_93 [2] : vector<8x8x8xf32> to vector<8x8xf32>
    %248 = vector.shape_cast %247 : vector<8x8xf32> to vector<8x8x1xf32>
    %249 = vector.broadcast %248 : vector<8x8x1xf32> to vector<8x8x8xf32>
    %250 = arith.subf %246, %249 : vector<8x8x8xf32>
    %251 = math.exp %250 : vector<8x8x8xf32>
    %cst_94 = arith.constant dense<0.000000e+00> : vector<8x8xf32>
    %252 = vector.multi_reduction <add>, %251, %cst_94 [2] : vector<8x8x8xf32> to vector<8x8xf32>
    %253 = vector.shape_cast %252 : vector<8x8xf32> to vector<8x8x1xf32>
    %254 = tpu.reciprocal %253 {approx = true} : vector<8x8x1xf32> -> vector<8x8x1xf32>
    %255 = vector.broadcast %254 : vector<8x8x1xf32> to vector<8x8x8xf32>
    %256 = arith.mulf %251, %255 : vector<8x8x8xf32>
    "tpu.trace_start"() <{level = 10 : i32, message = "bqk,bkd->bqd"}> : () -> ()
    %cst_95 = arith.constant dense<0.000000e+00> : vector<8x8x8xf32>
    %257 = tpu.matmul %256, %245, %cst_95 {dimension_numbers = #tpu.dot_dimension_numbers<[2], [1], [1], [2], [0, 0, 0, 1, 1, 2], [0], [0]>} : vector<8x8x8xf32>, vector<8x8x8xf32>, vector<8x8x8xf32> -> vector<8x8x8xf32>
    "tpu.trace_stop"() : () -> ()
    %258 = tpu.concatenate %203, %221, %239, %257 in 2 : vector<8x8x8xf32>, vector<8x8x8xf32>, vector<8x8x8xf32>, vector<8x8x8xf32> -> vector<8x8x32xf32>
    %259 = vector.shape_cast %258 : vector<8x8x32xf32> to vector<64x32xf32>
    %c1_96 = arith.constant 1 : index
    %c0_97 = arith.constant 0 : index
    %c0_98 = arith.constant 0 : index
    %260 = vector.load %arg6[%c1_96, %c0_97, %c0_98] : memref<2x32x32xf32, #tpu.memory_space<vmem>>, vector<1x32x32xf32>
    %261 = vector.shape_cast %260 : vector<1x32x32xf32> to vector<32x32xf32>
    %cst_99 = arith.constant dense<0.000000e+00> : vector<64x32xf32>
    %262 = tpu.matmul %259, %261, %cst_99 {dimension_numbers = #tpu.dot_dimension_numbers<[1], [0], [0], [1], [0, 0, 1, 1], [], []>} : vector<64x32xf32>, vector<32x32xf32>, vector<64x32xf32> -> vector<64x32xf32>
    %c1_100 = arith.constant 1 : index
    %c0_101 = arith.constant 0 : index
    %c0_102 = arith.constant 0 : index
    %263 = vector.load %arg7[%c1_100, %c0_101, %c0_102] : memref<2x1x32xf32, #tpu.memory_space<vmem>>, vector<1x1x32xf32>
    %264 = vector.shape_cast %263 : vector<1x1x32xf32> to vector<1x32xf32>
    %265 = vector.broadcast %264 : vector<1x32xf32> to vector<64x32xf32>
    %266 = arith.addf %262, %265 : vector<64x32xf32>
    %267 = arith.addf %178, %266 : vector<64x32xf32>
    %c1_103 = arith.constant 1 : index
    %c0_104 = arith.constant 0 : index
    %c0_105 = arith.constant 0 : index
    %268 = vector.load %arg8[%c1_103, %c0_104, %c0_105] : memref<2x1x32xf32, #tpu.memory_space<vmem>>, vector<1x1x32xf32>
    %269 = vector.shape_cast %268 : vector<1x1x32xf32> to vector<1x32xf32>
    %c1_106 = arith.constant 1 : index
    %c0_107 = arith.constant 0 : index
    %c0_108 = arith.constant 0 : index
    %270 = vector.load %arg9[%c1_106, %c0_107, %c0_108] : memref<2x1x32xf32, #tpu.memory_space<vmem>>, vector<1x1x32xf32>
    %271 = vector.shape_cast %270 : vector<1x1x32xf32> to vector<1x32xf32>
    %cst_109 = arith.constant dense<0.000000e+00> : vector<64xf32>
    %272 = vector.multi_reduction <add>, %267, %cst_109 [1] : vector<64x32xf32> to vector<64xf32>
    %273 = vector.shape_cast %272 : vector<64xf32> to vector<64x1xf32>
    %cst_110 = arith.constant 3.200000e+01 : f32
    %274 = vector.broadcast %cst_110 : f32 to vector<64x1xf32>
    %275 = arith.divf %273, %274 : vector<64x1xf32>
    %276 = vector.broadcast %275 : vector<64x1xf32> to vector<64x32xf32>
    %277 = arith.subf %267, %276 : vector<64x32xf32>
    %278 = arith.mulf %277, %277 : vector<64x32xf32>
    %cst_111 = arith.constant dense<0.000000e+00> : vector<64xf32>
    %279 = vector.multi_reduction <add>, %278, %cst_111 [1] : vector<64x32xf32> to vector<64xf32>
    %280 = vector.shape_cast %279 : vector<64xf32> to vector<64x1xf32>
    %cst_112 = arith.constant 3.200000e+01 : f32
    %281 = vector.broadcast %cst_112 : f32 to vector<64x1xf32>
    %282 = arith.divf %280, %281 : vector<64x1xf32>
    %283 = vector.broadcast %275 : vector<64x1xf32> to vector<64x32xf32>
    %284 = arith.subf %267, %283 : vector<64x32xf32>
    %cst_113 = arith.constant 9.99999974E-6 : f32
    %285 = vector.broadcast %cst_113 : f32 to vector<64x1xf32>
    %286 = arith.addf %282, %285 : vector<64x1xf32>
    %287 = math.rsqrt %286 : vector<64x1xf32>
    %288 = vector.broadcast %287 : vector<64x1xf32> to vector<64x32xf32>
    %289 = arith.mulf %284, %288 : vector<64x32xf32>
    %290 = vector.broadcast %269 : vector<1x32xf32> to vector<64x32xf32>
    %291 = arith.mulf %289, %290 : vector<64x32xf32>
    %292 = vector.broadcast %271 : vector<1x32xf32> to vector<64x32xf32>
    %293 = arith.addf %291, %292 : vector<64x32xf32>
    %c1_114 = arith.constant 1 : index
    %c0_115 = arith.constant 0 : index
    %c0_116 = arith.constant 0 : index
    %294 = vector.load %arg10[%c1_114, %c0_115, %c0_116] : memref<2x32x128xf32, #tpu.memory_space<vmem>>, vector<1x32x128xf32>
    %295 = vector.shape_cast %294 : vector<1x32x128xf32> to vector<32x128xf32>
    %cst_117 = arith.constant dense<0.000000e+00> : vector<64x128xf32>
    %296 = tpu.matmul %293, %295, %cst_117 {dimension_numbers = #tpu.dot_dimension_numbers<[1], [0], [0], [1], [0, 0, 1, 1], [], []>} : vector<64x32xf32>, vector<32x128xf32>, vector<64x128xf32> -> vector<64x128xf32>
    %c1_118 = arith.constant 1 : index
    %c0_119 = arith.constant 0 : index
    %c0_120 = arith.constant 0 : index
    %297 = vector.load %arg11[%c1_118, %c0_119, %c0_120] : memref<2x1x128xf32, #tpu.memory_space<vmem>>, vector<1x1x128xf32>
    %298 = vector.shape_cast %297 : vector<1x1x128xf32> to vector<1x128xf32>
    %299 = vector.broadcast %298 : vector<1x128xf32> to vector<64x128xf32>
    %300 = arith.addf %296, %299 : vector<64x128xf32>
    %cst_121 = arith.constant 0.000000e+00 : f32
    %301 = vector.broadcast %cst_121 : f32 to vector<64x128xf32>
    %302 = arith.maximumf %300, %301 : vector<64x128xf32>
    %c1_122 = arith.constant 1 : index
    %c0_123 = arith.constant 0 : index
    %c0_124 = arith.constant 0 : index
    %303 = vector.load %arg12[%c1_122, %c0_123, %c0_124] : memref<2x128x32xf32, #tpu.memory_space<vmem>>, vector<1x128x32xf32>
    %304 = vector.shape_cast %303 : vector<1x128x32xf32> to vector<128x32xf32>
    %cst_125 = arith.constant dense<0.000000e+00> : vector<64x32xf32>
    %305 = tpu.matmul %302, %304, %cst_125 {dimension_numbers = #tpu.dot_dimension_numbers<[1], [0], [0], [1], [0, 0, 1, 1], [], []>} : vector<64x128xf32>, vector<128x32xf32>, vector<64x32xf32> -> vector<64x32xf32>
    %c1_126 = arith.constant 1 : index
    %c0_127 = arith.constant 0 : index
    %c0_128 = arith.constant 0 : index
    %306 = vector.load %arg13[%c1_126, %c0_127, %c0_128] : memref<2x1x32xf32, #tpu.memory_space<vmem>>, vector<1x1x32xf32>
    %307 = vector.shape_cast %306 : vector<1x1x32xf32> to vector<1x32xf32>
    %308 = vector.broadcast %307 : vector<1x32xf32> to vector<64x32xf32>
    %309 = arith.addf %305, %308 : vector<64x32xf32>
    %310 = arith.addf %293, %309 : vector<64x32xf32>
    %c1_129 = arith.constant 1 : index
    %c0_130 = arith.constant 0 : index
    %c0_131 = arith.constant 0 : index
    %311 = vector.load %arg14[%c1_129, %c0_130, %c0_131] : memref<2x1x32xf32, #tpu.memory_space<vmem>>, vector<1x1x32xf32>
    %312 = vector.shape_cast %311 : vector<1x1x32xf32> to vector<1x32xf32>
    %c1_132 = arith.constant 1 : index
    %c0_133 = arith.constant 0 : index
    %c0_134 = arith.constant 0 : index
    %313 = vector.load %arg15[%c1_132, %c0_133, %c0_134] : memref<2x1x32xf32, #tpu.memory_space<vmem>>, vector<1x1x32xf32>
    %314 = vector.shape_cast %313 : vector<1x1x32xf32> to vector<1x32xf32>
    %cst_135 = arith.constant dense<0.000000e+00> : vector<64xf32>
    %315 = vector.multi_reduction <add>, %310, %cst_135 [1] : vector<64x32xf32> to vector<64xf32>
    %316 = vector.shape_cast %315 : vector<64xf32> to vector<64x1xf32>
    %cst_136 = arith.constant 3.200000e+01 : f32
    %317 = vector.broadcast %cst_136 : f32 to vector<64x1xf32>
    %318 = arith.divf %316, %317 : vector<64x1xf32>
    %319 = vector.broadcast %318 : vector<64x1xf32> to vector<64x32xf32>
    %320 = arith.subf %310, %319 : vector<64x32xf32>
    %321 = arith.mulf %320, %320 : vector<64x32xf32>
    %cst_137 = arith.constant dense<0.000000e+00> : vector<64xf32>
    %322 = vector.multi_reduction <add>, %321, %cst_137 [1] : vector<64x32xf32> to vector<64xf32>
    %323 = vector.shape_cast %322 : vector<64xf32> to vector<64x1xf32>
    %cst_138 = arith.constant 3.200000e+01 : f32
    %324 = vector.broadcast %cst_138 : f32 to vector<64x1xf32>
    %325 = arith.divf %323, %324 : vector<64x1xf32>
    %326 = vector.broadcast %318 : vector<64x1xf32> to vector<64x32xf32>
    %327 = arith.subf %310, %326 : vector<64x32xf32>
    %cst_139 = arith.constant 9.99999974E-6 : f32
    %328 = vector.broadcast %cst_139 : f32 to vector<64x1xf32>
    %329 = arith.addf %325, %328 : vector<64x1xf32>
    %330 = math.rsqrt %329 : vector<64x1xf32>
    %331 = vector.broadcast %330 : vector<64x1xf32> to vector<64x32xf32>
    %332 = arith.mulf %327, %331 : vector<64x32xf32>
    %333 = vector.broadcast %312 : vector<1x32xf32> to vector<64x32xf32>
    %334 = arith.mulf %332, %333 : vector<64x32xf32>
    %335 = vector.broadcast %314 : vector<1x32xf32> to vector<64x32xf32>
    %336 = arith.addf %334, %335 : vector<64x32xf32>
    %337 = vector.shape_cast %336 : vector<64x32xf32> to vector<8x8x32xf32>
    %cst_140 = arith.constant dense<0.000000e+00> : vector<8x32xf32>
    %338 = vector.multi_reduction <add>, %337, %cst_140 [1] : vector<8x8x32xf32> to vector<8x32xf32>
    %cst_141 = arith.constant 1.250000e-01 : f32
    %339 = vector.broadcast %cst_141 : f32 to vector<8x32xf32>
    %340 = arith.mulf %338, %339 : vector<8x32xf32>
    %c0_142 = arith.constant 0 : index
    %c0_143 = arith.constant 0 : index
    %341 = vector.load %arg16[%c0_142, %c0_143] : memref<32x128xf32, #tpu.memory_space<vmem>>, vector<32x128xf32>
    %cst_144 = arith.constant dense<0.000000e+00> : vector<8x128xf32>
    %342 = tpu.matmul %340, %341, %cst_144 {dimension_numbers = #tpu.dot_dimension_numbers<[1], [0], [0], [1], [0, 0, 1, 1], [], []>} : vector<8x32xf32>, vector<32x128xf32>, vector<8x128xf32> -> vector<8x128xf32>
    %c0_145 = arith.constant 0 : index
    %c0_146 = arith.constant 0 : index
    %343 = vector.load %arg17[%c0_145, %c0_146] : memref<1x128xf32, #tpu.memory_space<vmem>>, vector<1x128xf32>
    %344 = vector.broadcast %343 : vector<1x128xf32> to vector<8x128xf32>
    %345 = arith.addf %342, %344 : vector<8x128xf32>
    %cst_147 = arith.constant dense<0xFF800000> : vector<8xf32>
    %346 = vector.multi_reduction <maximumf>, %345, %cst_147 [1] : vector<8x128xf32> to vector<8xf32>
    %347 = vector.shape_cast %346 : vector<8xf32> to vector<8x1xf32>
    %348 = vector.broadcast %347 : vector<8x1xf32> to vector<8x128xf32>
    %349 = arith.subf %345, %348 : vector<8x128xf32>
    %350 = math.exp %349 : vector<8x128xf32>
    %cst_148 = arith.constant dense<0.000000e+00> : vector<8xf32>
    %351 = vector.multi_reduction <add>, %350, %cst_148 [1] : vector<8x128xf32> to vector<8xf32>
    %352 = vector.shape_cast %351 : vector<8xf32> to vector<8x1xf32>
    %353 = vector.broadcast %352 : vector<8x1xf32> to vector<8x128xf32>
    %354 = arith.divf %350, %353 : vector<8x128xf32>
    %c0_149 = arith.constant 0 : index
    %c0_150 = arith.constant 0 : index
    %355 = vector.load %arg18[%c0_149, %c0_150] : memref<8x128xf32, #tpu.memory_space<vmem>>, vector<8x128xf32>
    tpu.vector_store %arg18[%c0_149, %c0_150], %354 {strides = array<i32>} : memref<8x128xf32, #tpu.memory_space<vmem>>, vector<8x128xf32>,
    return
  }
  func.func @transform_0(%arg0: i32) -> (i32, i32) {
    %c0_i32 = arith.constant 0 : i32
    %c0_i32_0 = arith.constant 0 : i32
    return %arg0, %c0_i32 : i32, i32
  }
  func.func @transform_1(%arg0: i32) -> (i32, i32) {
    %c0_i32 = arith.constant 0 : i32
    %c0_i32_0 = arith.constant 0 : i32
    %c0_i32_1 = arith.constant 0 : i32
    return %c0_i32, %c0_i32_0 : i32, i32
  }
  func.func @transform_2(%arg0: i32) -> (i32, i32) {
    %c0_i32 = arith.constant 0 : i32
    %c0_i32_0 = arith.constant 0 : i32
    %c0_i32_1 = arith.constant 0 : i32
    return %c0_i32, %c0_i32_0 : i32, i32
  }
  func.func @transform_3(%arg0: i32) -> (i32, i32, i32) {
    %c0_i32 = arith.constant 0 : i32
    %c0_i32_0 = arith.constant 0 : i32
    %c0_i32_1 = arith.constant 0 : i32
    %c0_i32_2 = arith.constant 0 : i32
    return %c0_i32, %c0_i32_0, %c0_i32_1 : i32, i32, i32
  }
  func.func @transform_4(%arg0: i32) -> (i32, i32, i32) {
    %c0_i32 = arith.constant 0 : i32
    %c0_i32_0 = arith.constant 0 : i32
    %c0_i32_1 = arith.constant 0 : i32
    %c0_i32_2 = arith.constant 0 : i32
    return %c0_i32, %c0_i32_0, %c0_i32_1 : i32, i32, i32
  }
  func.func @transform_5(%arg0: i32) -> (i32, i32, i32) {
    %c0_i32 = arith.constant 0 : i32
    %c0_i32_0 = arith.constant 0 : i32
    %c0_i32_1 = arith.constant 0 : i32
    %c0_i32_2 = arith.constant 0 : i32
    return %c0_i32, %c0_i32_0, %c0_i32_1 : i32, i32, i32
  }
  func.func @transform_6(%arg0: i32) -> (i32, i32, i32) {
    %c0_i32 = arith.constant 0 : i32
    %c0_i32_0 = arith.constant 0 : i32
    %c0_i32_1 = arith.constant 0 : i32
    %c0_i32_2 = arith.constant 0 : i32
    return %c0_i32, %c0_i32_0, %c0_i32_1 : i32, i32, i32
  }
  func.func @transform_7(%arg0: i32) -> (i32, i32, i32) {
    %c0_i32 = arith.constant 0 : i32
    %c0_i32_0 = arith.constant 0 : i32
    %c0_i32_1 = arith.constant 0 : i32
    %c0_i32_2 = arith.constant 0 : i32
    return %c0_i32, %c0_i32_0, %c0_i32_1 : i32, i32, i32
  }
  func.func @transform_8(%arg0: i32) -> (i32, i32, i32) {
    %c0_i32 = arith.constant 0 : i32
    %c0_i32_0 = arith.constant 0 : i32
    %c0_i32_1 = arith.constant 0 : i32
    %c0_i32_2 = arith.constant 0 : i32
    return %c0_i32, %c0_i32_0, %c0_i32_1 : i32, i32, i32
  }
  func.func @transform_9(%arg0: i32) -> (i32, i32, i32) {
    %c0_i32 = arith.constant 0 : i32
    %c0_i32_0 = arith.constant 0 : i32
    %c0_i32_1 = arith.constant 0 : i32
    %c0_i32_2 = arith.constant 0 : i32
    return %c0_i32, %c0_i32_0, %c0_i32_1 : i32, i32, i32
  }
  func.func @transform_10(%arg0: i32) -> (i32, i32, i32) {
    %c0_i32 = arith.constant 0 : i32
    %c0_i32_0 = arith.constant 0 : i32
    %c0_i32_1 = arith.constant 0 : i32
    %c0_i32_2 = arith.constant 0 : i32
    return %c0_i32, %c0_i32_0, %c0_i32_1 : i32, i32, i32
  }
  func.func @transform_11(%arg0: i32) -> (i32, i32, i32) {
    %c0_i32 = arith.constant 0 : i32
    %c0_i32_0 = arith.constant 0 : i32
    %c0_i32_1 = arith.constant 0 : i32
    %c0_i32_2 = arith.constant 0 : i32
    return %c0_i32, %c0_i32_0, %c0_i32_1 : i32, i32, i32
  }
  func.func @transform_12(%arg0: i32) -> (i32, i32, i32) {
    %c0_i32 = arith.constant 0 : i32
    %c0_i32_0 = arith.constant 0 : i32
    %c0_i32_1 = arith.constant 0 : i32
    %c0_i32_2 = arith.constant 0 : i32
    return %c0_i32, %c0_i32_0, %c0_i32_1 : i32, i32, i32
  }
  func.func @transform_13(%arg0: i32) -> (i32, i32, i32) {
    %c0_i32 = arith.constant 0 : i32
    %c0_i32_0 = arith.constant 0 : i32
    %c0_i32_1 = arith.constant 0 : i32
    %c0_i32_2 = arith.constant 0 : i32
    return %c0_i32, %c0_i32_0, %c0_i32_1 : i32, i32, i32
  }
  func.func @transform_14(%arg0: i32) -> (i32, i32, i32) {
    %c0_i32 = arith.constant 0 : i32
    %c0_i32_0 = arith.constant 0 : i32
    %c0_i32_1 = arith.constant 0 : i32
    %c0_i32_2 = arith.constant 0 : i32
    return %c0_i32, %c0_i32_0, %c0_i32_1 : i32, i32, i32
  }
  func.func @transform_15(%arg0: i32) -> (i32, i32) {
    %c0_i32 = arith.constant 0 : i32
    %c0_i32_0 = arith.constant 0 : i32
    %c0_i32_1 = arith.constant 0 : i32
    return %c0_i32, %c0_i32_0 : i32, i32
  }
  func.func @transform_16(%arg0: i32) -> (i32, i32) {
    %c0_i32 = arith.constant 0 : i32
    %c0_i32_0 = arith.constant 0 : i32
    %c0_i32_1 = arith.constant 0 : i32
    return %c0_i32, %c0_i32_0 : i32, i32
  }
  func.func @transform_17(%arg0: i32) -> (i32, i32) {
    %c0_i32 = arith.constant 0 : i32
    %c0_i32_0 = arith.constant 0 : i32
    return %arg0, %c0_i32 : i32, i32
  }
}

</mosaic_0001>

<bundles_post_ra>
// kernel: discriminator_forward.1
= control target key start
LH: loop header
LB: loop body
LE: loop exit
PB: predicated region body
PF: predicated region fallthrough
CT: control target
= control target key end

     0   :  { %s7667_s24 = smov 0   ;;  %s9914_s0 = inlined_call_operand.vmem [shape: f32[128,3], index: 0, kind: input, shape index: {}]   ;;  %s9915_s1 = inlined_call_operand.vmem [shape: f32[3,32], index: 1, kind: input, shape index: {}]   ;;  %s9916_s2 = inlined_call_operand.vmem [shape: f32[1,32], index: 2, kind: input, shape index: {}]   ;;  %s9917_s3 = inlined_call_operand.vmem [shape: f32[2,32,96], index: 3, kind: input, shape index: {}]   ;;  %s9918_s4 = inlined_call_operand.vmem [shape: f32[2,1,96], index: 4, kind: input, shape index: {}]   ;;  %s9919_s5 = inlined_call_operand.vmem [shape: f32[2,32,32], index: 5, kind: input, shape index: {}]   ;;  %s9920_s6 = inlined_call_operand.vmem [shape: f32[2,1,32], index: 6, kind: input, shape index: {}]   ;;  %s9921_s7 = inlined_call_operand.vmem [shape: f32[2,1,32], index: 7, kind: input, shape index: {}]   ;;  %s9922_s8 = inlined_call_operand.vmem [shape: f32[2,1,32], index: 8, kind: input, shape index: {}]   ;;  %s9923_s9 = inlined_call_operand.vmem [shape: f32[2,32,128], index: 9, kind: input, shape index: {}]   ;;  %s9924_s10 = inlined_call_operand.vmem [shape: f32[2,1,128], index: 10, kind: input, shape index: {}]   ;;  %s9925_s11 = inlined_call_operand.vmem [shape: f32[2,128,32], index: 11, kind: input, shape index: {}]   ;;  %s9926_s12 = inlined_call_operand.vmem [shape: f32[2,1,32], index: 12, kind: input, shape index: {}]   ;;  %s9927_s13 = inlined_call_operand.vmem [shape: f32[2,1,32], index: 13, kind: input, shape index: {}]   ;;  %s9928_s14 = inlined_call_operand.vmem [shape: f32[2,1,32], index: 14, kind: input, shape index: {}]   ;;  %s9929_s15 = inlined_call_operand.vmem [shape: f32[32,128], index: 15, kind: input, shape index: {}]   ;;  %s9930_s16 = inlined_call_operand.vmem [shape: f32[1,128], index: 16, kind: input, shape index: {}]   ;;  %s9931_s17 = inlined_call_operand.vmem [shape: f32[16,128], index: 17, kind: output, shape index: {}]  }
   0x1   :  { %9957 = sst [smem:[#allocation2_spill]] %s9914_s0 }
   0x2   :  { %9958 = sst [smem:[#allocation3_spill]] %s9915_s1 }
   0x3 LB: > { %s7673_s25 = sadd.s32 4294967295, %s7557_s24   ;;  %p6730_p0 = scmp.ge.s32.totalorder %s7557_s24, 1  ;;  %s7557_s24 = sphi %s7667_s24, %s27_s24  }
   0x4   : > { %p488_p1 = scmp.lt.s32.totalorder %s7557_s24, 3 }
   0x6   : > { %p489_p2 = pnand %p6730_p0, %p488_p1 }
   0x7   : > { %s6731_s26 = sshll.u32 (!%p489_p2), %s7673_s25, 3  ;;  %s9959_s0 = sld [smem:[#allocation2_spill]] (!%p489_p2) }
   0x8   : > { %492 = sbr.rel (%p489_p2) target bundleno = 6980 (0x1b44), region = 88  ;;  %p540_p3 = scmp.lt.s32.totalorder (!%p489_p2), %s6731_s26, 15 }
   0x9   : > { %s9960_s29 = sld [smem:[#allocation3_spill]] (!%p489_p2)  ;;  %s7562_s23 = smov (!%p489_p2), 96  }
   0xa   : > { %s9951_s28 = smov (!%p489_p2), 120   ;;  %s9941_s18 = smov (!%p489_p2), 112  }
   0xb   : > { %s9939_s19 = smov (!%p489_p2), 48   ;;  %s9933_s1 = smov (!%p489_p2), 72  }
   0xc   : > { %s9937_s20 = smov (!%p489_p2), 104   ;;  %s9935_s21 = smov (!%p489_p2), 40  }
   0xd   : > { %v7559_v0 = vmov 2   ;;  %v7560_v1 = vmov 0   ;;  %v7561_v2 = vmov 1   ;;  %s9978_s26 = smov (!%p540_p3, %s6731_s26), 15  ;;  %v722_v12 = vld [vmem:[%s9917_s3 + $0x18] sm:$0xff]  ;;  %v721_v13 = vld [vmem:[%s9917_s3 + $0x10] sm:$0xff] }
   0xe   : > { %7049 = vset.pattern.permute.xlu1 %v7559_v0  ;;  %7047 = vset.pattern.permute.xlu0 %v7560_v1  ;;  %s6732_s27 = sshll.u32 %s9978_s26, 3  ;;  %v720_v14 = vld [vmem:[%s9917_s3 + $0x8] sm:$0xff]  ;;  %v719_v15 = vld [vmem:[%s9917_s3] sm:$0xff]  ;;  %vm727_vm0 = vcmask 261120   ;;  %s7563_s26 = smov 64   ;;  %vm796_vm1 = vcmask 64512  }
   0xf   : > { %7051 = vset.pattern.permute.xlu2 %v7561_v2  ;;  %s7681_s30 = scalar_lea.vmem %s9959_s0, %s6732_s27  ;;  %764 = vmatpush.msra.mxu0 %v722_v12  ;;  %v7706_v21 = vld [vmem:[%s9960_s29 + $0x1] ss:$0 sm:$0xff]  ;;  %v7711_v22 = vld [vmem:[%s9960_s29 + $0x2] ss:$0 sm:$0xff]  ;;  %v7716_v23 = vld [vmem:[%s9960_s29] ss:$0 sm:$0xff] }
  0x10   : > { %v549_v3 = vld [vmem:[%s7681_s30] sm:$0xff]  ;;  %v550_v4 = vld [vmem:[%s7681_s30 + $0x8] sm:$0xff]  ;;  %v551_v5 = vld [vmem:[%s7681_s30 + $0x10] sm:$0xff]  ;;  %7013 = vmatpush.msra.mxu2 %v722_v12  ;;  %s9947_s27 = smov 88   ;;  %s9945_s0 = smov 80   ;;  %vm2970_vm2 = vcmask 130048  }
  0x11   : > { %659 = vperm.xlu1 %7049, %v549_v3   ;;  %560 = vperm.xlu0 %7047, %v549_v3   ;;  %v552_v6 = vld [vmem:[%s7681_s30 + $0x18] sm:$0xff]  ;;  %v553_v7 = vld [vmem:[%s7681_s30 + $0x20] sm:$0xff]  ;;  %v555_v9 = vld [vmem:[%s7681_s30 + $0x30] sm:$0xff]  ;;  %s9949_s22 = smov 16   ;;  %vm2979_vm3 = vcmask 195584   ;;  %p545_p4 = scmp.lt.s32.totalorder %s7673_s25, 1 }
  0x12   : > { %613 = vperm.xlu2 %7051, %v550_v4   ;;  %v556_v8 = vld [vmem:[%s7681_s30 + $0x38] sm:$0xff]  ;;  %v554_v10 = vld [vmem:[%s7681_s30 + $0x28] sm:$0xff]  ;;  %765 = vmatpush.msra.mxu0 %v721_v13  ;;  %v7726_v32 = vld [vmem:[%s9916_s2] ss:$0 sm:$0xff]  ;;  %s9943_s30 = smov 56  }
  0x13   : > { %7014 = vmatpush.msra.mxu2 %v721_v13  ;;  %s9980_s25 = smov (!%p545_p4, %s7673_s25), 1 }
  0x14   : > { %766 = vmatpush.msra.mxu0 %v720_v14 }
  0x15   : > { %7015 = vmatpush.msra.mxu2 %v720_v14 }
  0x16   : > { %767 = vmatpush.msra.mxu0 %v719_v15 }
  0x17   : > { %7016 = vmatpush.msra.mxu2 %v719_v15 }
  0x19   : > { %7050 = vset.pattern.permute.xlu1 %v7560_v1  ;;  %7048 = vset.pattern.permute.xlu0 %v7561_v2 }
  0x1a   : > { %565 = vperm.xlu1 %7050, %v550_v4   ;;  %609 = vperm.xlu0 %7048, %v549_v3  }
  0x1b   : > { %7052 = vset.pattern.permute.xlu2 %v7559_v0 }
  0x1c   : > { %663 = vperm.xlu2 %7052, %v550_v4  }
  0x22   : > { %570 = vperm.xlu1 %7050, %v551_v5   ;;  %7054 = vset.pattern.permute.xlu0 %v7559_v0 }
  0x23   : > { %667 = vperm.xlu0 %7054, %v551_v5  }
  0x24   : > { %7053 = vset.pattern.permute.xlu2 %v7561_v2 }
  0x25   : > { %617 = vperm.xlu2 %7053, %v551_v5  }
  0x2a   : > { %575 = vperm.xlu1 %7050, %v552_v6  }
  0x2b   : > { %7057 = vset.pattern.permute.xlu0 %v7561_v2 }
  0x2c   : > { %625 = vperm.xlu0 %7057, %v553_v7  }
  0x2d   : > { %621 = vperm.xlu2 %7053, %v552_v6  }
  0x32   : > { %7055 = vset.pattern.permute.xlu1 %v7559_v0 }
  0x33   : > { %671 = vperm.xlu1 %7055, %v552_v6  }
  0x34   : > { %637 = vperm.xlu0 %7057, %v556_v8  }
  0x35   : > { %7056 = vset.pattern.permute.xlu2 %v7560_v1 }
  0x36   : > { %580 = vperm.xlu2 %7056, %v553_v7  }
  0x3b   : > { %675 = vperm.xlu1 %7055, %v553_v7  }
  0x3c   : > { %7061 = vset.pattern.permute.xlu0 %v7560_v1 }
  0x3d   : > { %590 = vperm.xlu0 %7061, %v555_v9  }
  0x3e   : > { %585 = vperm.xlu2 %7056, %v554_v10  }
  0x43   : > { %7058 = vset.pattern.permute.xlu1 %v7561_v2 }
  0x44   : > { %629 = vperm.xlu1 %7058, %v554_v10  }
  0x45   : > { %7203 = vset.pattern.permute.xlu0 %v7559_v0 }
  0x46   : > { %595 = vperm.xlu2 %7056, %v556_v8  }
  0x4c   : > { %7059 = vset.pattern.permute.xlu1 %v7559_v0 }
  0x4d   : > { %679 = vperm.xlu1 %7059, %v554_v10  }
  0x4e   : > { %7060 = vset.pattern.permute.xlu2 %v7559_v0 }
  0x4f   : > { %687 = vperm.xlu2 %7060, %v556_v8  }
  0x55   : > { %7062 = vset.pattern.permute.xlu1 %v7561_v2 }
  0x56   : > { %633 = vperm.xlu1 %7062, %v555_v9  }
  0x57   : > { %683 = vperm.xlu2 %7060, %v555_v9  }
  0x6c   : > { %v614_v11 = vpop.permute.xlu2 %613 }
  0x6d   : > { %v642_v24 = vmul.f32 %v7706_v21, %v614_v11 }
  0x76   : > { %v664_v16 = vpop.permute.xlu2 %663 }
  0x77   : > { %v692_v34 = vmul.f32 %v7711_v22, %v664_v16 }
  0x7f   : > { %v618_v17 = vpop.permute.xlu2 %617 }
  0x80   : > { %v643_v41 = vmul.f32 %v7706_v21, %v618_v17 }
  0x83   : > { %v561_v18 = vpop.permute.xlu0 %560  ;;  %v660_v19 = vpop.permute.xlu1 %659 }
  0x84   : > { %v599_v27 = vmul.f32 %v7716_v23, %v561_v18  ;;  %v691_v28 = vmul.f32 %v7711_v22, %v660_v19 }
  0x87   : > { %v622_v20 = vpop.permute.xlu2 %621 }
  0x88   : > { %v644_v51 = vmul.f32 %v7706_v21, %v622_v20 }
  0x8c   : > { %v566_v25 = vpop.permute.xlu1 %565  ;;  %v610_v26 = vpop.permute.xlu0 %609 }
  0x8d   : > { %v600_v29 = vmul.f32 %v7716_v23, %v566_v25  ;;  %v641_v30 = vmul.f32 %v7706_v21, %v610_v26 }
  0x8f   : > { %v649_v31 = vadd.f32 %v641_v30, %v599_v27  ;;  %v650_v35 = vadd.f32 %v642_v24, %v600_v29  ;;  %v7208_v30 = vld [vmem:[%s9918_s4] ss:$0 sm:$0xff] }
  0x90   : > { %v581_v33 = vpop.permute.xlu2 %580 }
  0x91   : > { %v699_v36 = vadd.f32 %v691_v28, %v649_v31  ;;  %v700_v39 = vadd.f32 %v692_v34, %v650_v35  ;;  %v603_v60 = vmul.f32 %v7716_v23, %v581_v33 }
  0x93   : > { %v7730_v37 = vadd.f32 %v7726_v32, %v699_v36  ;;  %v7737_v44 = vadd.f32 %v7726_v32, %v700_v39 }
  0x94   : > { %v571_v38 = vpop.permute.xlu1 %570 }
  0x95   : > { %6734 = vmatmul.msk.f32.vlgmr.msra.gmra.mxu0 %vm727_vm0, %v7730_v37  ;;  %v668_v40 = vpop.permute.xlu0 %667  ;;  %v601_v42 = vmul.f32 %v7716_v23, %v571_v38 }
  0x96   : > { %v693_v46 = vmul.f32 %v7711_v22, %v668_v40 }
  0x97   : > { %v651_v45 = vadd.f32 %v643_v41, %v601_v42 }
  0x98   : > { %v586_v43 = vpop.permute.xlu2 %585 }
  0x99   : > { %v701_v49 = vadd.f32 %v693_v46, %v651_v45  ;;  %v604_v11 = vmul.f32 %v7716_v23, %v586_v43 }
  0x9b   : > { %v7745_v53 = vadd.f32 %v7726_v32, %v701_v49 }
  0x9c   : > { %v576_v47 = vpop.permute.xlu1 %575 }
  0x9d   : > { %6735 = vmatmul.msk.f32.gmra.mxu0 %vm727_vm0, %v7737_v44  ;;  %v602_v52 = vmul.f32 %v7716_v23, %v576_v47 }
  0x9e   : > { %v626_v48 = vpop.permute.xlu0 %625 }
  0x9f   : > { %v652_v56 = vadd.f32 %v644_v51, %v602_v52  ;;  %v645_v62 = vmul.f32 %v7706_v21, %v626_v48 }
  0xa0   : > { %v596_v50 = vpop.permute.xlu2 %595 }
  0xa1   : > { %v606_v55 = vmul.f32 %v7716_v23, %v596_v50  ;;  %v653_v3 = vadd.f32 %v645_v62, %v603_v60 }
  0xa5   : > { %v672_v54 = vpop.permute.xlu1 %671  ;;  %6736 = vmatmul.msk.f32.gmra.mxu0 %vm727_vm0, %v7745_v53 }
  0xa6   : > { %v694_v57 = vmul.f32 %v7711_v22, %v672_v54  ;;  %v638_v58 = vpop.permute.xlu0 %637 }
  0xa7   : > { %v648_v59 = vmul.f32 %v7706_v21, %v638_v58 }
  0xa8   : > { %v702_v61 = vadd.f32 %v694_v57, %v652_v56 }
  0xa9   : > { %v656_v63 = vadd.f32 %v648_v59, %v606_v55  ;;  %v688_v0 = vpop.permute.xlu2 %687 }
  0xaa   : > { %v7755_v1 = vadd.f32 %v7726_v32, %v702_v61  ;;  %v698_v2 = vmul.f32 %v7711_v22, %v688_v0 }
  0xac   : > { %v706_v4 = vadd.f32 %v698_v2, %v656_v63 }
  0xad   : > { %6737 = vmatmul.msk.f32.gmra.mxu0 %vm727_vm0, %v7755_v1  ;;  %v676_v5 = vpop.permute.xlu1 %675 }
  0xae   : > { %v695_v6 = vmul.f32 %v7711_v22, %v676_v5  ;;  %v7762_v7 = vadd.f32 %v7726_v32, %v706_v4 }
  0xaf   : > { %v591_v18 = vpop.permute.xlu0 %590 }
  0xb0   : > { %v703_v8 = vadd.f32 %v695_v6, %v653_v3  ;;  %6741 = vmatmul.msk.f32.vlgmr.msra.gmra.mxu2 %vm727_vm0, %v7762_v7  ;;  %v605_v20 = vmul.f32 %v7716_v23, %v591_v18 }
  0xb1   : > { %v684_v19 = vpop.permute.xlu2 %683 }
  0xb2   : > { %v7767_v9 = vadd.f32 %v7726_v32, %v703_v8  ;;  %v697_v26 = vmul.f32 %v7711_v22, %v684_v19 }
  0xb5   : > { %6738 = vmatmul.msk.f32.gmra.mxu0 %vm727_vm0, %v7767_v9 }
  0xb6   : > { %v630_v10 = vpop.permute.xlu1 %629 }
  0xb7   : > { %v646_v12 = vmul.f32 %v7706_v21, %v630_v10 }
  0xb9   : > { %v654_v13 = vadd.f32 %v646_v12, %v604_v11 }
  0xbf   : > { %v680_v14 = vpop.permute.xlu1 %679 }
  0xc0   : > { %v696_v15 = vmul.f32 %v7711_v22, %v680_v14 }
  0xc2   : > { %v704_v16 = vadd.f32 %v696_v15, %v654_v13 }
  0xc4   : > { %v7775_v17 = vadd.f32 %v7726_v32, %v704_v16 }
  0xc6   : > { %6739 = vmatmul.msk.f32.gmra.mxu0 %vm727_vm0, %v7775_v17 }
  0xc8   : > { %v634_v24 = vpop.permute.xlu1 %633 }
  0xc9   : > { %v647_v25 = vmul.f32 %v7706_v21, %v634_v24 }
  0xcb   : > { %v655_v27 = vadd.f32 %v647_v25, %v605_v20 }
  0xcd   : > { %v705_v28 = vadd.f32 %v697_v26, %v655_v27 }
  0xcf   : > { %v7783_v29 = vadd.f32 %v7726_v32, %v705_v28 }
  0xd1   : > { %6740 = vmatmul.msk.f32.gmra.mxu0 %vm727_vm0, %v7783_v29 }
 0x112   : > { %v769_v31 = vpop.f32.mrf.mxu0 }
 0x113   : > { %v7790_v33 = vadd.f32 %v7208_v30, %v769_v31 }
 0x115   : > { %794 = vrot.lane.b32.xlu1 %v7790_v33, %s7562_s23 }
 0x11a   : > { %v772_v21 = vpop.f32.mrf.mxu0 }
 0x11b   : > { %v7794_v22 = vadd.f32 %v7208_v30, %v772_v21 }
 0x11d   : > { %822 = vrot.lane.b32.xlu0 %v7794_v22, %s7562_s23  ;;  %v7816_v42 = vpack.i.bf16 %v7794_v22, %v7790_v33 }
 0x122   : > { %v775_v23 = vpop.f32.mrf.mxu0 }
 0x123   : > { %v7798_v32 = vadd.f32 %v7208_v30, %v775_v23 }
 0x125   : > { %849 = vrot.lane.b32.xlu2 %v7798_v32, %s7562_s23 }
 0x12a   : > { %v778_v34 = vpop.f32.mrf.mxu0 }
 0x12b   : > { %v7802_v35 = vadd.f32 %v7208_v30, %v778_v34 }
 0x12d   : > { %876 = vrot.lane.b32.xlu1 %v7802_v35, %s7562_s23  ;;  %v7843_v49 = vpack.i.bf16 %v7802_v35, %v7798_v32 }
 0x132   : > { %v781_v36 = vpop.f32.mrf.mxu0 }
 0x133   : > { %v7806_v38 = vadd.f32 %v7208_v30, %v781_v36  ;;  %v790_v39 = vpop.f32.mrf.mxu2 }
 0x134   : > { %v7810_v40 = vadd.f32 %v7208_v30, %v790_v39 }
 0x135   : > { %903 = vrot.lane.b32.xlu2 %v7806_v38, %s7562_s23 }
 0x13d   : > { %984 = vrot.lane.b32.xlu2 %v7810_v40, %s7562_s23 }
 0x143   : > { %v784_v41 = vpop.f32.mrf.mxu0 }
 0x144   : > { %v7818_v43 = vadd.f32 %v7208_v30, %v784_v41 }
 0x145   : > { %7064 = vrot.lane.b32.xlu2 %v7816_v42, %s7563_s26 }
 0x146   : > { %930 = vrot.lane.b32.xlu0 %v7818_v43, %s7562_s23  ;;  %v7826_v45 = vpack.i.bf16 %v7818_v43, %v7806_v38 }
 0x14d   : > { %7074 = vrot.lane.b32.xlu2 %v7826_v45, %s7563_s26 }
 0x14e   : > { %1364 = vrot.lane.b32.xlu0 %v7798_v32, %s9947_s27  ;;  %v787_v46 = vpop.f32.mrf.mxu0 }
 0x14f   : > { %v7832_v47 = vadd.f32 %v7208_v30, %v787_v46 }
 0x151   : > { %957 = vrot.lane.b32.xlu1 %v7832_v47, %s7562_s23  ;;  %v7078_v48 = vpack.i.bf16 %v7810_v40, %v7832_v47 }
 0x155   : > { %1308 = vrot.lane.b32.xlu2 %v7790_v33, %s9947_s27 }
 0x156   : > { %7079 = vrot.lane.b32.xlu0 %v7078_v48, %s7563_s26 }
 0x159   : > { %7069 = vrot.lane.b32.xlu1 %v7843_v49, %s7563_s26 }
 0x15d   : > { %1306 = vrot.lane.b32.xlu2 %v7790_v33, %s9951_s28 }
 0x161   : > { %1336 = vrot.lane.b32.xlu1 %v7794_v22, %s9947_s27 }
 0x169   : > { %1334 = vrot.lane.b32.xlu1 %v7794_v22, %s9951_s28 }
 0x17f   : > { %v850_v50 = vpop.permute.xlu2 %849 }
 0x180   : > { %6746 = vmatpush.xpose.msk.msra.mxu3 %vm796_vm1, %v850_v50 }
 0x183   : > { %6747 = vmatmul.msk.f32.vlgmr.msra.gmra.mxu3 %vm796_vm1, %v7798_v32 }
 0x187   : > { %v795_v51 = vpop.permute.xlu1 %794 }
 0x188   : > { %6742 = vmatpush.xpose.msk.msrb.mxu2 %vm796_vm1, %v795_v51 }
 0x18b   : > { %6743 = vmatmul.msk.f32.vlgmr.msrb.gmra.mxu2 %vm796_vm1, %v7790_v33 }
 0x18f   : > { %v904_v52 = vpop.permute.xlu2 %903  ;;  %v823_v54 = vpop.permute.xlu0 %822 }
 0x190   : > { %6744 = vmatpush.xpose.msk.msra.mxu2 %vm796_vm1, %v823_v54 }
 0x193   : > { %6745 = vmatmul.msk.f32.vlgmr.msra.gmra.mxu2 %vm796_vm1, %v7794_v22 }
 0x194   : > { %6750 = vmatpush.xpose.msk.msrb.mxu2 %vm796_vm1, %v904_v52 }
 0x197   : > { %v985_v55 = vpop.permute.xlu2 %984 }
 0x198   : > { %6756 = vmatpush.xpose.msk.msra.mxu2 %vm796_vm1, %v985_v55 }
 0x19b   : > { %6751 = vmatmul.msk.f32.vlgmr.msrb.gmra.mxu2 %vm796_vm1, %v7806_v38 }
 0x19f   : > { %v877_v56 = vpop.permute.xlu1 %876  ;;  %v7065_v57 = vpop.permute.xlu2 %7064 }
 0x1a0   : > { %6748 = vmatpush.xpose.msk.msrb.mxu3 %vm796_vm1, %v877_v56  ;;  %v7066_v58 = vunpack.i.l.bf16 %v7065_v57  ;;  %v7067_v62 = vunpack.i.h.bf16 %v7065_v57 }
 0x1a3   : > { %6749 = vmatmul.msk.f32.vlgmr.msrb.gmra.mxu3 %vm796_vm1, %v7802_v35  ;;  %6757 = vmatmul.msk.f32.vlgmr.msra.gmra.mxu2 %vm796_vm1, %v7810_v40 }
 0x1a7   : > { %v7075_v60 = vpop.permute.xlu2 %7074 }
 0x1a8   : > { %v7076_v63 = vunpack.i.l.bf16 %v7075_v60  ;;  %v7077_v4 = vunpack.i.h.bf16 %v7075_v60 }
 0x1af   : > { %v7899_v27 = vpop.permute.xlu2 %1308 }
 0x1b7   : > { %v7903_v30 = vpop.permute.xlu2 %1306 }
 0x1b8   : > { %v931_v59 = vpop.permute.xlu0 %930 }
 0x1b9   : > { %6752 = vmatpush.xpose.msk.msra.mxu3 %vm796_vm1, %v931_v59 }
 0x1bc   : > { %6753 = vmatmul.msk.f32.vlgmr.msra.gmra.mxu3 %vm796_vm1, %v7818_v43 }
 0x1bd   : > { %1119 = vmatpush.msrb.mxu3 %v7066_v58 }
 0x1c0   : > { %v7901_v28 = vpop.permute.xlu0 %1364 }
 0x1c3   : > { %v958_v61 = vpop.permute.xlu1 %957 }
 0x1c4   : > { %6754 = vmatpush.xpose.msk.msra.mxu1 %vm796_vm1, %v958_v61 }
 0x1c7   : > { %6755 = vmatmul.msk.f32.vlgmr.msra.gmra.mxu1 %vm796_vm1, %v7832_v47 }
 0x1c8   : > { %1145 = vmatpush.msrb.mxu1 %v7067_v62  ;;  %v7907_v21 = vpop.permute.xlu0 %7079 }
 0x1ca   : > { %1223 = vmatpush.msra.mxu1 %v7076_v63 }
 0x1cb   : > { %v7070_v0 = vpop.permute.xlu1 %7069 }
 0x1cc   : > { %v7072_v2 = vunpack.i.h.bf16 %v7070_v0  ;;  %v7071_v3 = vunpack.i.l.bf16 %v7070_v0 }
 0x1ce   : > { %1171 = vmatpush.msrb.mxu2 %v7071_v3  ;;  %1197 = vmatpush.msra.mxu3 %v7072_v2 }
 0x1d0   : > { %1249 = vmatpush.msra.mxu2 %v7077_v4 }
 0x1d3   : > { %v7905_v31 = vpop.permute.xlu1 %1336 }
 0x1db   : > { %v7909_v39 = vpop.permute.xlu1 %1334 }
 0x206   : > { %v872_v5 = vpop.f32.mrf.mxu3 }
 0x207   : > { %v1016_v6 = vsel %vm796_vm1, %v872_v5, -inf }
 0x208   : > { %1017 = vmax.xlane.f32.xlu2 %v1016_v6 }
 0x20e   : > { %v818_v8 = vpop.f32.mrf.mxu2 }
 0x20f   : > { %v1010_v10 = vsel %vm796_vm1, %v818_v8, -inf }
 0x210   : > { %1011 = vmax.xlane.f32.xlu0 %v1010_v10 }
 0x216   : > { %v845_v11 = vpop.f32.mrf.mxu2 }
 0x217   : > { %v1013_v12 = vsel %vm796_vm1, %v845_v11, -inf }
 0x218   : > { %1014 = vmax.xlane.f32.xlu1 %v1013_v12 }
 0x21e   : > { %v926_v13 = vpop.f32.mrf.mxu2 }
 0x21f   : > { %v1022_v14 = vsel %vm796_vm1, %v926_v13, -inf }
 0x220   : > { %1023 = vmax.xlane.f32.xlu0 %v1022_v14 }
 0x226   : > { %v7881_v15 = vpop.f32.mrf.mxu3  ;;  %v1007_v16 = vpop.f32.mrf.mxu2 }
 0x227   : > { %v1019_v18 = vsel %vm796_vm1, %v7881_v15, -inf  ;;  %v1031_v19 = vsel %vm796_vm1, %v1007_v16, -inf }
 0x228   : > { %1020 = vmax.xlane.f32.xlu2 %v1019_v18  ;;  %1032 = vmax.xlane.f32.xlu0 %v1031_v19 }
 0x23c   : > { %1390 = vrot.lane.b32.xlu0 %v7802_v35, %s9951_s28 }
 0x23f   : > { %v7888_v20 = vpop.f32.mrf.mxu3 }
 0x240   : > { %v1025_v24 = vsel %vm796_vm1, %v7888_v20, -inf }
 0x241   : > { %1026 = vmax.xlane.f32.xlu1 %v1025_v24 }
 0x244   : > { %v980_v25 = vpop.f32.mrf.mxu1  ;;  %1446 = vrot.lane.b32.xlu0 %v7818_v43, %s9951_s28 }
 0x245   : > { %v1028_v26 = vsel %vm796_vm1, %v980_v25, -inf }
 0x246   : > { %1029 = vmax.xlane.f32.xlu2 %v1028_v26 }
 0x25a   : > { %1362 = vrot.lane.b32.xlu1 %v7798_v32, %s9951_s28 }
 0x25e   : > { %1392 = vrot.lane.b32.xlu2 %v7802_v35, %s9947_s27 }
 0x27b   : > { %v1018_v23 = vpop.xlane.xlu2 %1017 }
 0x27c   : > { %v1036_v34 = vsub.f32 %v872_v5, %v1018_v23 }
 0x27e   : > { %v1046_v36 = vmul.f32 1.442695, %v1036_v34 }
 0x280   : > { %7225 = vpow2.f32 %v1046_v36 }
 0x283   : > { %v1012_v41 = vpop.xlane.xlu0 %1011 }
 0x284   : > { %v1034_v46 = vsub.f32 %v818_v8, %v1012_v41 }
 0x286   : > { %v7911_v48 = vpop.eup %7225  ;;  %v1042_v50 = vmul.f32 1.442695, %v1034_v46 }
 0x287   : > { %v1064_v51 = vsel %vm796_vm1, %v7911_v48, 0.0 }
 0x288   : > { %7227 = vpow2.f32 %v1042_v50  ;;  %1065 = vadd.xlane.f32.xlu0 %v1064_v51 }
 0x28b   : > { %v1015_v52 = vpop.xlane.xlu1 %1014 }
 0x28c   : > { %v1035_v54 = vsub.f32 %v845_v11, %v1015_v52  ;;  %v7083_v52 = vpack.i.bf16 %v7798_v32, %v7794_v22 }
 0x28e   : > { %v7915_v55 = vpop.eup %7227  ;;  %v1044_v56 = vmul.f32 1.442695, %v1035_v54 }
 0x28f   : > { %v1058_v57 = vsel %vm796_vm1, %v7915_v55, 0.0 }
 0x290   : > { %7229 = vpow2.f32 %v1044_v56  ;;  %1059 = vadd.xlane.f32.xlu1 %v1058_v57 }
 0x293   : > { %v1024_v58 = vpop.xlane.xlu0 %1023 }
 0x294   : > { %v1038_v59 = vsub.f32 %v926_v13, %v1024_v58 }
 0x296   : > { %v7919_v60 = vpop.eup %7229  ;;  %v1050_v61 = vmul.f32 1.442695, %v1038_v59  ;;  %v7093_v59 = vpack.i.bf16 %v7806_v38, %v7832_v47 }
 0x297   : > { %v1061_v62 = vsel %vm796_vm1, %v7919_v60, 0.0 }
 0x298   : > { %7231 = vpow2.f32 %v1050_v61  ;;  %1062 = vadd.xlane.f32.xlu2 %v1061_v62 }
 0x29b   : > { %v1033_v63 = vpop.xlane.xlu0 %1032  ;;  %v1021_v8 = vpop.xlane.xlu2 %1020 }
 0x29c   : > { %v1041_v0 = vsub.f32 %v1007_v16, %v1033_v63  ;;  %v1037_v13 = vsub.f32 %v7881_v15, %v1021_v8  ;;  %v7081_v63 = vunpack.i.l.bf16 %v7907_v21 }
 0x29e   : > { %v7923_v2 = vpop.eup %7231  ;;  %v1056_v3 = vmul.f32 1.442695, %v1041_v0  ;;  %v1048_v16 = vmul.f32 1.442695, %v1037_v13 }
 0x29f   : > { %v1070_v4 = vsel %vm796_vm1, %v7923_v2, 0.0 }
 0x2a0   : > { %1071 = vadd.xlane.f32.xlu0 %v1070_v4  ;;  %7233 = vpow2.f32 %v1056_v3 }
 0x2a6   : > { %v7927_v5 = vpop.eup %7233 }
 0x2a7   : > { %v1079_v6 = vsel %vm796_vm1, %v7927_v5, 0.0 }
 0x2a8   : > { %1080 = vadd.xlane.f32.xlu0 %v1079_v6 }
 0x2a9   : > { %1476 = vrot.lane.b32.xlu1 %v7832_v47, %s9947_s27 }
 0x2ae   : > { %v7960_v36 = vpop.permute.xlu0 %1390 }
 0x2b0   : > { %1448 = vrot.lane.b32.xlu2 %v7818_v43, %s9947_s27 }
 0x2b4   : > { %v1027_v19 = vpop.xlane.xlu1 %1026 }
 0x2b5   : > { %v1039_v24 = vsub.f32 %v7888_v20, %v1027_v19  ;;  %v7088_v20 = vpack.i.bf16 %v7790_v33, %v7818_v43 }
 0x2b6   : > { %v1447_v41 = vpop.permute.xlu0 %1446 }
 0x2b8   : > { %1420 = vrot.lane.b32.xlu2 %v7806_v38, %s9947_s27 }
 0x2b9   : > { %v1030_v10 = vpop.xlane.xlu2 %1029 }
 0x2ba   : > { %v1040_v11 = vsub.f32 %v980_v25, %v1030_v10  ;;  %v1052_v25 = vmul.f32 1.442695, %v1039_v24 }
 0x2bc   : > { %v1054_v12 = vmul.f32 1.442695, %v1040_v11 }
 0x2be   : > { %7235 = vpow2.f32 %v1054_v12 }
 0x2bf   : > { %7237 = vpow2.f32 %v1048_v16 }
 0x2c0   : > { %1504 = vrot.lane.b32.xlu2 %v7810_v40, %s9947_s27  ;;  %7239 = vpow2.f32 %v1052_v25  ;;  %s9961_s27 = smov 120  }
 0x2c1   : > { %v1393_v54 = vpop.permute.xlu2 %1392 }
 0x2c4   : > { %v7940_v14 = vpop.eup %7235 }
 0x2c5   : > { %v1076_v18 = vsel %vm796_vm1, %v7940_v14, 0.0  ;;  %v7947_v26 = vpop.eup %7237 }
 0x2c6   : > { %1077 = vadd.xlane.f32.xlu0 %v1076_v18  ;;  %v1067_v15 = vsel %vm796_vm1, %v7947_v26, 0.0  ;;  %v7951_v23 = vpop.eup %7239 }
 0x2c7   : > { %v1073_v34 = vsel %vm796_vm1, %v7951_v23, 0.0 }
 0x2c8   : > { %1856 = vrot.lane.b32.xlu2 %v7794_v22, %s9945_s0 }
 0x2cc   : > { %v1363_v46 = vpop.permute.xlu1 %1362 }
 0x2d3   : > { %1068 = vadd.xlane.f32.xlu1 %v1067_v15 }
 0x2da   : > { %1418 = vrot.lane.b32.xlu0 %v7806_v38, %s9951_s28 }
 0x2db   : > { %1074 = vadd.xlane.f32.xlu1 %v1073_v34 }
 0x2e2   : > { %7089 = vrot.lane.b32.xlu0 %v7088_v20, %s9943_s30 }
 0x2ea   : > { %1854 = vrot.lane.b32.xlu0 %v7794_v22, %s9941_s18 }
 0x2f2   : > { %1968 = vrot.lane.b32.xlu0 %v7818_v43, %s9945_s0 }
 0x2f4   : > { %1474 = vrot.lane.b32.xlu1 %v7832_v47, %s9951_s28 }
 0x2fa   : > { %1882 = vrot.lane.b32.xlu0 %v7798_v32, %s9941_s18 }
 0x2fb   : > { %v1066_v50 = vpop.xlane.xlu0 %1065 }
 0x2fc   : > { %7241 = vrcp.f32 %v1066_v50  ;;  %1502 = vrot.lane.b32.xlu1 %v7810_v40, %s9951_s28  ;;  %s9962_s28 = smov 88  }
 0x302   : > { %v7242_v51 = vpop.eup %7241 }
 0x303   : > { %v1092_v56 = vmul.f32 %v7242_v51, %v7911_v48  ;;  %v1060_v57 = vpop.xlane.xlu1 %1059 }
 0x304   : > { %7243 = vrcp.f32 %v1060_v57  ;;  %7084 = vrot.lane.b32.xlu1 %v7083_v52, %s9943_s30 }
 0x305   : > { %6760 = vmatmul.msk.f32.vlgmr.msrb.gmra.mxu2 %vm796_vm1, %v1092_v56 }
 0x306   : > { %6766 = vmatpush.xpose.msk.msrb.mxu2 %vm796_vm1, %v7899_v27  ;;  %v7082_v27 = vunpack.i.h.bf16 %v7907_v21 }
 0x30a   : > { %v7244_v58 = vpop.eup %7243 }
 0x30b   : > { %v1090_v61 = vmul.f32 %v7244_v58, %v7915_v55  ;;  %v1063_v62 = vpop.xlane.xlu2 %1062 }
 0x30c   : > { %7245 = vrcp.f32 %v1063_v62  ;;  %7094 = vrot.lane.b32.xlu1 %v7093_v59, %s9943_s30 }
 0x30d   : > { %6758 = vmatmul.msk.f32.vlgmr.msrb.gmra.mxu3 %vm796_vm1, %v1090_v61 }
 0x30e   : > { %1275 = vmatpush.msrb.mxu3 %v7081_v63 }
 0x312   : > { %v7246_v48 = vpop.eup %7245 }
 0x313   : > { %v1072_v0 = vpop.xlane.xlu0 %1071  ;;  %v1091_v3 = vmul.f32 %v7246_v48, %v7919_v60  ;;  %v1449_v8 = vpop.permute.xlu2 %1448 }
 0x314   : > { %7247 = vrcp.f32 %v1072_v0  ;;  %1884 = vrot.lane.b32.xlu1 %v7798_v32, %s9945_s0 }
 0x315   : > { %6759 = vmatmul.msk.f32.vlgmr.msrb.gmra.mxu1 %vm796_vm1, %v1091_v3 }
 0x316   : > { %1301 = vmatpush.msrb.mxu1 %v7082_v27 }
 0x31a   : > { %v7248_v55 = vpop.eup %7247 }
 0x31b   : > { %v1094_v4 = vmul.f32 %v7248_v55, %v7923_v2  ;;  %v1081_v6 = vpop.xlane.xlu0 %1080  ;;  %v1477_v2 = vpop.permute.xlu1 %1476 }
 0x31c   : > { %1828 = vrot.lane.b32.xlu1 %v7790_v33, %s9945_s0  ;;  %7249 = vrcp.f32 %v1081_v6  ;;  %v1421_v25 = vpop.permute.xlu2 %1420 }
 0x31d   : > { %6762 = vmatmul.msk.f32.vlgmr.msra.gmra.mxu1 %vm796_vm1, %v1094_v4 }
 0x31e   : > { %6770 = vmatpush.xpose.msk.msra.mxu1 %vm796_vm1, %v7901_v28 }
 0x322   : > { %v7250_v21 = vpop.eup %7249 }
 0x323   : > { %v1097_v60 = vmul.f32 %v7250_v21, %v7927_v5 }
 0x324   : > { %1966 = vrot.lane.b32.xlu1 %v7818_v43, %s9941_s18 }
 0x325   : > { %6765 = vmatmul.msk.f32.vlgmr.msrb.gmra.mxu1 %vm796_vm1, %v1097_v60 }
 0x326   : > { %6776 = vmatpush.xpose.msk.msrb.mxu1 %vm796_vm1, %v1449_v8 }
 0x32d   : > { %6771 = vmatmul.msk.f32.vlgmr.msra.gmra.mxu1 %vm796_vm1, %v1363_v46 }
 0x335   : > { %6777 = vmatmul.msk.f32.vlgmr.msrb.gmra.mxu1 %vm796_vm1, %v1447_v41 }
 0x339   : > { %v1078_v10 = vpop.xlane.xlu0 %1077 }
 0x346   : > { %v1069_v11 = vpop.xlane.xlu1 %1068 }
 0x347   : > { %7251 = vrcp.f32 %v1069_v11 }
 0x348   : > { %7253 = vrcp.f32 %v1078_v10 }
 0x34c   : > { %v1419_v28 = vpop.permute.xlu0 %1418 }
 0x34d   : > { %v7252_v12 = vpop.eup %7251 }
 0x34e   : > { %v1093_v5 = vmul.f32 %v7252_v12, %v7947_v26  ;;  %v1075_v13 = vpop.xlane.xlu1 %1074  ;;  %v7254_v16 = vpop.eup %7253 }
 0x34f   : > { %7255 = vrcp.f32 %v1075_v13  ;;  %v1096_v15 = vmul.f32 %v7254_v16, %v7940_v14  ;;  %v1505_v26 = vpop.permute.xlu2 %1504 }
 0x350   : > { %6761 = vmatmul.msk.f32.vlgmr.msra.gmra.mxu3 %vm796_vm1, %v1093_v5 }
 0x351   : > { %6768 = vmatpush.xpose.msk.msra.mxu3 %vm796_vm1, %v7905_v31 }
 0x354   : > { %v7090_v18 = vpop.permute.xlu0 %7089 }
 0x355   : > { %v7256_v19 = vpop.eup %7255  ;;  %v7092_v24 = vunpack.i.h.bf16 %v7090_v18  ;;  %v7091_v41 = vunpack.i.l.bf16 %v7090_v18 }
 0x356   : > { %v1095_v34 = vmul.f32 %v7256_v19, %v7951_v23 }
 0x357   : > { %1639 = vmatpush.msra.mxu1 %v7092_v24  ;;  %v8061_v12 = vpop.permute.xlu2 %1856 }
 0x358   : > { %6763 = vmatmul.msk.f32.vlgmr.msra.gmra.mxu2 %vm796_vm1, %v1095_v34  ;;  %6764 = vmatmul.msk.f32.vlgmr.msrb.gmra.mxu3 %vm796_vm1, %v1096_v15 }
 0x359   : > { %6772 = vmatpush.xpose.msk.msra.mxu2 %vm796_vm1, %v1393_v54  ;;  %6774 = vmatpush.xpose.msk.msrb.mxu3 %vm796_vm1, %v1421_v25 }
 0x360   : > { %6767 = vmatmul.msk.f32.vlgmr.msrb.gmra.mxu2 %vm796_vm1, %v7903_v30  ;;  %6769 = vmatmul.msk.f32.vlgmr.msra.gmra.mxu3 %vm796_vm1, %v7909_v39 }
 0x361   : > { %6778 = vmatpush.xpose.msk.msrb.mxu2 %vm796_vm1, %v1477_v2  ;;  %6780 = vmatpush.xpose.msk.msra.mxu3 %vm796_vm1, %v1505_v26 }
 0x366   : > { %v1475_v31 = vpop.permute.xlu1 %1474 }
 0x368   : > { %6773 = vmatmul.msk.f32.vlgmr.msra.gmra.mxu2 %vm796_vm1, %v7960_v36  ;;  %6775 = vmatmul.msk.f32.vlgmr.msrb.gmra.mxu3 %vm796_vm1, %v1419_v28 }
 0x36e   : > { %v1503_v14 = vpop.permute.xlu1 %1502 }
 0x370   : > { %6779 = vmatmul.msk.f32.vlgmr.msrb.gmra.mxu2 %vm796_vm1, %v1475_v31  ;;  %6781 = vmatmul.msk.f32.vlgmr.msra.gmra.mxu3 %vm796_vm1, %v1503_v14 }
 0x376   : > { %v7085_v23 = vpop.permute.xlu1 %7084 }
 0x377   : > { %v7087_v30 = vunpack.i.h.bf16 %v7085_v23  ;;  %v7086_v20 = vunpack.i.l.bf16 %v7085_v23  ;;  %v8072_v23 = vpop.permute.xlu0 %1854 }
 0x379   : > { %1665 = vmatpush.msra.mxu2 %v7086_v20  ;;  %1691 = vmatpush.msrb.mxu3 %v7087_v30 }
 0x37b   : > { %1769 = vmatpush.msrb.mxu2 %v7091_v41 }
 0x37e   : > { %v7095_v39 = vpop.permute.xlu1 %7094 }
 0x37f   : > { %v7097_v46 = vunpack.i.h.bf16 %v7095_v39  ;;  %v7096_v50 = vunpack.i.l.bf16 %v7095_v39  ;;  %v8074_v30 = vpop.permute.xlu0 %1968 }
 0x381   : > { %1743 = vmatpush.msrb.mxu1 %v7097_v46  ;;  %1795 = vmatpush.msra.mxu3 %v7096_v50 }
 0x386   : > { %v8057_v11 = vpop.permute.xlu1 %1884 }
 0x387   : > { %v8076_v20 = vpop.permute.xlu0 %1882 }
 0x388   : > { %v8034_v61 = vpop.f32.mrf.mxu2 }
 0x38e   : > { %v8059_v28 = vpop.permute.xlu1 %1828 }
 0x390   : > { %v8032_v59 = vpop.f32.mrf.mxu3 }
 0x392   : > { %v8024_v36 = vpop.f32.mrf.mxu1 }
 0x396   : > { %v8063_v5 = vpop.permute.xlu1 %1966 }
 0x39a   : > { %v8026_v51 = vpop.f32.mrf.mxu1 }
 0x3a2   : > { %v8028_v52 = vpop.f32.mrf.mxu1 }
 0x3aa   : > { %v1387_v54 = vpop.f32.mrf.mxu1 }
 0x3ab   : > { %v1536_v56 = vsel %vm796_vm1, %v1387_v54, -inf }
 0x3ac   : > { %1537 = vmax.xlane.f32.xlu2 %v1536_v56 }
 0x3b2   : > { %v1471_v57 = vpop.f32.mrf.mxu1 }
 0x3b3   : > { %v1545_v58 = vsel %vm796_vm1, %v1471_v57, -inf }
 0x3b4   : > { %1546 = vmax.xlane.f32.xlu1 %v1545_v58 }
 0x3d3   : > { %v8036_v62 = vpop.f32.mrf.mxu3 }
 0x3db   : > { %v8038_v63 = vpop.f32.mrf.mxu2  ;;  %v8040_v48 = vpop.f32.mrf.mxu3 }
 0x3e3   : > { %v1331_v0 = vpop.f32.mrf.mxu2  ;;  %v1359_v3 = vpop.f32.mrf.mxu3 }
 0x3e4   : > { %v1530_v27 = vsel %vm796_vm1, %v1331_v0, -inf  ;;  %v1533_v6 = vsel %vm796_vm1, %v1359_v3, -inf }
 0x3e5   : > { %1531 = vmax.xlane.f32.xlu0 %v1530_v27 }
 0x3eb   : > { %v8043_v55 = vpop.f32.mrf.mxu2  ;;  %v8045_v4 = vpop.f32.mrf.mxu3 }
 0x3ec   : > { %v1542_v21 = vsel %vm796_vm1, %v8045_v4, -inf  ;;  %v1539_v25 = vsel %vm796_vm1, %v8043_v55, -inf }
 0x3ed   : > { %1534 = vmax.xlane.f32.xlu0 %v1533_v6  ;;  %1543 = vmax.xlane.f32.xlu1 %v1542_v21 }
 0x3f3   : > { %v8050_v60 = vpop.f32.mrf.mxu2  ;;  %v1527_v2 = vpop.f32.mrf.mxu3 }
 0x3f4   : > { %v1548_v8 = vsel %vm796_vm1, %v8050_v60, -inf  ;;  %v1551_v10 = vsel %vm796_vm1, %v1527_v2, -inf }
 0x3f5   : > { %1549 = vmax.xlane.f32.xlu2 %v1548_v8 }
 0x3fd   : > { %1552 = vmax.xlane.f32.xlu2 %v1551_v10 }
 0x401   : > { %1826 = vrot.lane.b32.xlu0 %v7790_v33, %s9941_s18 }
 0x41f   : > { %v1538_v13 = vpop.xlane.xlu2 %1537 }
 0x420   : > { %v1556_v16 = vsub.f32 %v1387_v54, %v1538_v13 }
 0x422   : > { %v1566_v18 = vmul.f32 1.442695, %v1556_v16 }
 0x424   : > { %7257 = vpow2.f32 %v1566_v18 }
 0x427   : > { %v1547_v19 = vpop.xlane.xlu1 %1546 }
 0x428   : > { %v1559_v24 = vsub.f32 %v1471_v57, %v1547_v19 }
 0x42a   : > { %v1572_v15 = vmul.f32 1.442695, %v1559_v24  ;;  %v7258_v34 = vpop.eup %7257 }
 0x42b   : > { %1540 = vmax.xlane.f32.xlu0 %v1539_v25  ;;  %v1584_v26 = vsel %vm796_vm1, %v7258_v34, 0.0 }
 0x42c   : > { %7259 = vpow2.f32 %v1572_v15 }
 0x432   : > { %v8068_v31 = vpop.eup %7259 }
 0x433   : > { %1585 = vadd.xlane.f32.xlu0 %v1584_v26  ;;  %v1593_v14 = vsel %vm796_vm1, %v8068_v31, 0.0  ;;  %v7103_v26 = vpack.i.bf16 %v7818_v43, %v7798_v32 }
 0x434   : > { %1594 = vadd.xlane.f32.xlu2 %v1593_v14 }
 0x458   : > { %v1532_v41 = vpop.xlane.xlu0 %1531 }
 0x459   : > { %v1554_v39 = vsub.f32 %v1331_v0, %v1532_v41 }
 0x45b   : > { %v1562_v46 = vmul.f32 1.442695, %v1554_v39 }
 0x45d   : > { %7261 = vpow2.f32 %v1562_v46 }
 0x460   : > { %v1535_v50 = vpop.xlane.xlu0 %1534  ;;  %v1544_v8 = vpop.xlane.xlu1 %1543 }
 0x461   : > { %v1555_v54 = vsub.f32 %v1359_v3, %v1535_v50  ;;  %v1558_v18 = vsub.f32 %v8045_v4, %v1544_v8  ;;  %v7098_v8 = vpack.i.bf16 %v7790_v33, %v7794_v22 }
 0x463   : > { %v7262_v56 = vpop.eup %7261  ;;  %v1564_v57 = vmul.f32 1.442695, %v1555_v54  ;;  %v1570_v25 = vmul.f32 1.442695, %v1558_v18 }
 0x464   : > { %v1578_v58 = vsel %vm796_vm1, %v7262_v56, 0.0 }
 0x465   : > { %7263 = vpow2.f32 %v1564_v57  ;;  %1579 = vadd.xlane.f32.xlu0 %v1578_v58 }
 0x468   : > { %v1550_v0 = vpop.xlane.xlu2 %1549 }
 0x46b   : > { %v8079_v27 = vpop.eup %7263 }
 0x46c   : > { %v1581_v6 = vsel %vm796_vm1, %v8079_v27, 0.0 }
 0x46d   : > { %1582 = vadd.xlane.f32.xlu1 %v1581_v6 }
 0x470   : > { %v1553_v21 = vpop.xlane.xlu2 %1552 }
 0x471   : > { %v1561_v10 = vsub.f32 %v1527_v2, %v1553_v21 }
 0x473   : > { %v8093_v3 = vpop.permute.xlu0 %1826  ;;  %v1576_v24 = vmul.f32 1.442695, %v1561_v10 }
 0x479   : > { %1940 = vrot.lane.b32.xlu0 %v7806_v38, %s9945_s0 }
 0x481   : > { %1994 = vrot.lane.b32.xlu0 %v7832_v47, %s9941_s18 }
 0x486   : > { %1996 = vrot.lane.b32.xlu1 %v7832_v47, %s9945_s0 }
 0x489   : > { %1696 = vrot.lane.b32.xlu0 %v7802_v35, %s9943_s30 }
 0x491   : > { %1800 = vrot.lane.b32.xlu0 %v7810_v40, %s9943_s30  ;;  %s9966_s30 = smov 48  }
 0x499   : > { %1912 = vrot.lane.b32.xlu0 %v7802_v35, %s9945_s0 }
 0x49e   : > { %v1541_v13 = vpop.xlane.xlu0 %1540 }
 0x49f   : > { %v1557_v16 = vsub.f32 %v8043_v55, %v1541_v13  ;;  %v1560_v55 = vsub.f32 %v8050_v60, %v1550_v0 }
 0x4a1   : > { %v1568_v19 = vmul.f32 1.442695, %v1557_v16  ;;  %1910 = vrot.lane.b32.xlu0 %v7802_v35, %s9941_s18  ;;  %v1574_v39 = vmul.f32 1.442695, %v1560_v55 }
 0x4a3   : > { %7265 = vpow2.f32 %v1568_v19 }
 0x4a4   : > { %7267 = vpow2.f32 %v1576_v24 }
 0x4a6   : > { %v1586_v15 = vpop.xlane.xlu0 %1585 }
 0x4a7   : > { %7269 = vrcp.f32 %v1586_v15  ;;  %v1595_v10 = vpop.xlane.xlu2 %1594 }
 0x4a8   : > { %7271 = vpow2.f32 %v1570_v25 }
 0x4a9   : > { %v8103_v14 = vpop.eup %7265  ;;  %7104 = vrot.lane.b32.xlu0 %v7103_v26, %s9939_s19  ;;  %7273 = vpow2.f32 %v1574_v39 }
 0x4aa   : > { %v1587_v4 = vsel %vm796_vm1, %v8103_v14, 0.0  ;;  %v8109_v2 = vpop.eup %7267 }
 0x4ab   : > { %1588 = vadd.xlane.f32.xlu2 %v1587_v4  ;;  %v1599_v54 = vsel %vm796_vm1, %v8109_v2, 0.0 }
 0x4ad   : > { %v7270_v41 = vpop.eup %7269 }
 0x4ae   : > { %v1612_v46 = vmul.f32 %v7270_v41, %v7258_v34  ;;  %v7272_v50 = vpop.eup %7271  ;;  %v7108_v34 = vpack.i.bf16 %v7832_v47, %v7806_v38 }
 0x4af   : > { %v1590_v60 = vsel %vm796_vm1, %v7272_v50, 0.0  ;;  %v7274_v57 = vpop.eup %7273 }
 0x4b0   : > { %6784 = vmatmul.msk.f32.vlgmr.msrb.gmra.mxu3 %vm796_vm1, %v1612_v46  ;;  %1600 = vadd.xlane.f32.xlu1 %v1599_v54  ;;  %v1596_v58 = vsel %vm796_vm1, %v7274_v57, 0.0 }
 0x4b1   : > { %6794 = vmatpush.xpose.msk.msrb.mxu3 %vm796_vm1, %v8057_v11 }
 0x4b3   : > { %1591 = vadd.xlane.f32.xlu2 %v1590_v60 }
 0x4bb   : > { %1597 = vadd.xlane.f32.xlu2 %v1596_v58 }
 0x4c9   : > { %2024 = vrot.lane.b32.xlu1 %v7810_v40, %s9945_s0  ;;  %s9965_s0 = smov 112  }
 0x4d1   : > { %7109 = vrot.lane.b32.xlu1 %v7108_v34, %s9939_s19 }
 0x4d3   : > { %1938 = vrot.lane.b32.xlu2 %v7806_v38, %s9941_s18 }
 0x4d8   : > { %v1580_v6 = vpop.xlane.xlu0 %1579 }
 0x4d9   : > { %7275 = vrcp.f32 %v1580_v6 }
 0x4db   : > { %2022 = vrot.lane.b32.xlu2 %v7810_v40, %s9941_s18  ;;  %s9967_s18 = smov 104  }
 0x4df   : > { %v7276_v11 = vpop.eup %7275 }
 0x4e0   : > { %v1610_v0 = vmul.f32 %v7276_v11, %v7262_v56  ;;  %v1583_v21 = vpop.xlane.xlu1 %1582 }
 0x4e1   : > { %7277 = vrcp.f32 %v1583_v21 }
 0x4e2   : > { %6782 = vmatmul.msk.f32.vlgmr.msra.gmra.mxu1 %vm796_vm1, %v1610_v0  ;;  %7279 = vrcp.f32 %v1595_v10 }
 0x4e3   : > { %6790 = vmatpush.xpose.msk.msra.mxu1 %vm796_vm1, %v8059_v28  ;;  %7099 = vrot.lane.b32.xlu2 %v7098_v8, %s9939_s19 }
 0x4e7   : > { %v7278_v13 = vpop.eup %7277 }
 0x4e8   : > { %v1611_v16 = vmul.f32 %v7278_v13, %v8079_v27  ;;  %v7280_v18 = vpop.eup %7279 }
 0x4e9   : > { %v1615_v28 = vmul.f32 %v7280_v18, %v8068_v31 }
 0x4ea   : > { %6783 = vmatmul.msk.f32.vlgmr.msra.gmra.mxu2 %vm796_vm1, %v1611_v16 }
 0x4eb   : > { %6792 = vmatpush.xpose.msk.msra.mxu2 %vm796_vm1, %v8061_v12  ;;  %v1941_v56 = vpop.permute.xlu0 %1940  ;;  %2376 = vrot.lane.b32.xlu2 %v7794_v22, %s9933_s1 }
 0x4f2   : > { %6787 = vmatmul.msk.f32.vlgmr.msrb.gmra.mxu2 %vm796_vm1, %v1615_v28 }
 0x4f3   : > { %6800 = vmatpush.xpose.msk.msrb.mxu2 %vm796_vm1, %v8074_v30  ;;  %v1995_v19 = vpop.permute.xlu0 %1994 }
 0x4f8   : > { %v1997_v24 = vpop.permute.xlu1 %1996 }
 0x4fa   : > { %6793 = vmatmul.msk.f32.vlgmr.msra.gmra.mxu2 %vm796_vm1, %v8072_v23 }
 0x4fb   : > { %v1697_v27 = vpop.permute.xlu0 %1696 }
 0x4fc   : > { %1717 = vmatpush.msrb.mxu0 %v1697_v27 }
 0x502   : > { %6801 = vmatmul.msk.f32.vlgmr.msrb.gmra.mxu2 %vm796_vm1, %v8063_v5 }
 0x503   : > { %v1801_v12 = vpop.permute.xlu0 %1800 }
 0x504   : > { %1821 = vmatpush.msra.mxu0 %v1801_v12 }
 0x50b   : > { %v1913_v55 = vpop.permute.xlu0 %1912 }
 0x51e   : > { %v1589_v25 = vpop.xlane.xlu2 %1588 }
 0x51f   : > { %7281 = vrcp.f32 %v1589_v25 }
 0x523   : > { %v1601_v31 = vpop.xlane.xlu1 %1600 }
 0x524   : > { %7283 = vrcp.f32 %v1601_v31 }
 0x525   : > { %v7282_v15 = vpop.eup %7281 }
 0x526   : > { %v1592_v26 = vpop.xlane.xlu2 %1591  ;;  %v1613_v30 = vmul.f32 %v7282_v15, %v8103_v14  ;;  %v1911_v14 = vpop.permute.xlu0 %1910 }
 0x527   : > { %7285 = vrcp.f32 %v1592_v26 }
 0x528   : > { %6785 = vmatmul.msk.f32.vlgmr.msrb.gmra.mxu0 %vm796_vm1, %v1613_v30 }
 0x529   : > { %6796 = vmatpush.xpose.msk.msrb.mxu0 %vm796_vm1, %v1913_v55 }
 0x52a   : > { %v7284_v23 = vpop.eup %7283 }
 0x52b   : > { %v1617_v5 = vmul.f32 %v7284_v23, %v8109_v2 }
 0x52d   : > { %v7286_v4 = vpop.eup %7285 }
 0x52e   : > { %v1614_v41 = vmul.f32 %v7286_v4, %v7272_v50  ;;  %v1598_v39 = vpop.xlane.xlu2 %1597  ;;  %v7105_v50 = vpop.permute.xlu0 %7104 }
 0x52f   : > { %7287 = vrcp.f32 %v1598_v39  ;;  %v7106_v34 = vunpack.i.l.bf16 %v7105_v50  ;;  %v7107_v8 = vunpack.i.h.bf16 %v7105_v50 }
 0x530   : > { %6786 = vmatmul.msk.f32.vlgmr.msrb.gmra.mxu1 %vm796_vm1, %v1614_v41  ;;  %6789 = vmatmul.msk.f32.vlgmr.msra.gmra.mxu0 %vm796_vm1, %v1617_v5 }
 0x531   : > { %6798 = vmatpush.xpose.msk.msrb.mxu1 %vm796_vm1, %v1941_v56 }
 0x535   : > { %v7288_v46 = vpop.eup %7287 }
 0x536   : > { %v1616_v54 = vmul.f32 %v7288_v46, %v7274_v57  ;;  %v1939_v60 = vpop.permute.xlu2 %1938 }
 0x538   : > { %6788 = vmatmul.msk.f32.vlgmr.msra.gmra.mxu3 %vm796_vm1, %v1616_v54  ;;  %6791 = vmatmul.msk.f32.vlgmr.msra.gmra.mxu1 %vm796_vm1, %v8093_v3 }
 0x539   : > { %6797 = vmatmul.msk.f32.vlgmr.msrb.gmra.mxu0 %vm796_vm1, %v1911_v14  ;;  %6802 = vmatpush.xpose.msk.msra.mxu3 %vm796_vm1, %v1997_v24  ;;  %v8182_v24 = vpop.f32.mrf.mxu3 }
 0x53b   : > { %v2025_v2 = vpop.permute.xlu1 %2024 }
 0x53c   : > { %6804 = vmatpush.xpose.msk.msra.mxu0 %vm796_vm1, %v2025_v2 }
 0x53e   : > { %v2023_v58 = vpop.permute.xlu2 %2022 }
 0x540   : > { %6795 = vmatmul.msk.f32.vlgmr.msrb.gmra.mxu3 %vm796_vm1, %v8076_v20  ;;  %6799 = vmatmul.msk.f32.vlgmr.msrb.gmra.mxu1 %vm796_vm1, %v1939_v60 }
 0x541   : > { %6805 = vmatmul.msk.f32.vlgmr.msra.gmra.mxu0 %vm796_vm1, %v2023_v58  ;;  %2211 = vmatpush.msrb.mxu3 %v7106_v34 }
 0x543   : > { %v7110_v57 = vpop.permute.xlu1 %7109 }
 0x544   : > { %v7112_v6 = vunpack.i.h.bf16 %v7110_v57  ;;  %v7111_v21 = vunpack.i.l.bf16 %v7110_v57 }
 0x546   : > { %v7100_v3 = vpop.permute.xlu2 %7099 }
 0x547   : > { %v7102_v11 = vunpack.i.h.bf16 %v7100_v3  ;;  %v7101_v0 = vunpack.i.l.bf16 %v7100_v3 }
 0x548   : > { %6803 = vmatmul.msk.f32.vlgmr.msra.gmra.mxu3 %vm796_vm1, %v1995_v19 }
 0x549   : > { %2315 = vmatpush.msra.mxu3 %v7112_v6  ;;  %2159 = vmatpush.msra.mxu1 %v7102_v11 }
 0x54a   : > { %2185 = vmatpush.msra.mxu2 %v7101_v0 }
 0x54b   : > { %2263 = vmatpush.msrb.mxu1 %v7111_v21 }
 0x54c   : > { %2289 = vmatpush.msrb.mxu2 %v7107_v8 }
 0x54e   : > { %v8207_v34 = vpop.permute.xlu2 %2376 }
 0x55f   : > { %v8174_v28 = vpop.f32.mrf.mxu1 }
 0x56d   : > { %v8165_v20 = vpop.f32.mrf.mxu2 }
 0x575   : > { %v8167_v10 = vpop.f32.mrf.mxu2 }
 0x57d   : > { %v1879_v13 = vpop.f32.mrf.mxu2 }
 0x57e   : > { %v2053_v16 = vsel %vm796_vm1, %v1879_v13, -inf }
 0x57f   : > { %2054 = vmax.xlane.f32.xlu0 %v2053_v16 }
 0x585   : > { %v8170_v56 = vpop.f32.mrf.mxu2 }
 0x586   : > { %v2065_v18 = vsel %vm796_vm1, %v8170_v56, -inf }
 0x587   : > { %2066 = vmax.xlane.f32.xlu0 %v2065_v18 }
 0x5a5   : > { %v8176_v19 = vpop.f32.mrf.mxu0 }
 0x5ad   : > { %v8178_v27 = vpop.f32.mrf.mxu1  ;;  %v8180_v12 = vpop.f32.mrf.mxu0 }
 0x5b5   : > { %v1851_v25 = vpop.f32.mrf.mxu1 }
 0x5b6   : > { %v1935_v31 = vpop.f32.mrf.mxu0  ;;  %v2050_v15 = vsel %vm796_vm1, %v1851_v25, -inf }
 0x5b7   : > { %2051 = vmax.xlane.f32.xlu2 %v2050_v15  ;;  %v2059_v39 = vsel %vm796_vm1, %v1935_v31, -inf }
 0x5bb   : > { %v8185_v26 = vpop.f32.mrf.mxu3 }
 0x5bd   : > { %v1963_v30 = vpop.f32.mrf.mxu1 }
 0x5be   : > { %v8187_v55 = vpop.f32.mrf.mxu0  ;;  %v2062_v23 = vsel %vm796_vm1, %v1963_v30, -inf }
 0x5bf   : > { %2063 = vmax.xlane.f32.xlu2 %v2062_v23  ;;  %v2071_v4 = vsel %vm796_vm1, %v8187_v55, -inf }
 0x5c0   : > { %2072 = vmax.xlane.f32.xlu0 %v2071_v4 }
 0x5c3   : > { %v1907_v5 = vpop.f32.mrf.mxu3 }
 0x5c4   : > { %v2056_v41 = vsel %vm796_vm1, %v1907_v5, -inf }
 0x5c5   : > { %2057 = vmax.xlane.f32.xlu1 %v2056_v41 }
 0x5c7   : > { %2060 = vmax.xlane.f32.xlu2 %v2059_v39 }
 0x5cb   : > { %v2019_v14 = vpop.f32.mrf.mxu3 }
 0x5cc   : > { %v2068_v46 = vsel %vm796_vm1, %v2019_v14, -inf }
 0x5cd   : > { %2069 = vmax.xlane.f32.xlu0 %v2068_v46 }
 0x5df   : > { %2348 = vrot.lane.b32.xlu2 %v7790_v33, %s9933_s1 }
 0x5e1   : > { %2374 = vrot.lane.b32.xlu0 %v7794_v22, %s9937_s20 }
 0x5f2   : > { %v2055_v54 = vpop.xlane.xlu0 %2054 }
 0x5f3   : > { %v2075_v60 = vsub.f32 %v1879_v13, %v2055_v54 }
 0x5f5   : > { %v2084_v2 = vmul.f32 1.442695, %v2075_v60 }
 0x5f7   : > { %7289 = vpow2.f32 %v2084_v2 }
 0x5fa   : > { %v2067_v39 = vpop.xlane.xlu0 %2066 }
 0x5fb   : > { %v2079_v54 = vsub.f32 %v8170_v56, %v2067_v39 }
 0x5fd   : > { %v8199_v50 = vpop.eup %7289  ;;  %v2092_v60 = vmul.f32 1.442695, %v2079_v54 }
 0x5fe   : > { %v2101_v58 = vsel %vm796_vm1, %v8199_v50, 0.0 }
 0x5ff   : > { %2102 = vadd.xlane.f32.xlu1 %v2101_v58 }
 0x618   : > { %2346 = vrot.lane.b32.xlu1 %v7790_v33, %s9937_s20 }
 0x620   : > { %2402 = vrot.lane.b32.xlu1 %v7798_v32, %s9937_s20 }
 0x628   : > { %2216 = vrot.lane.b32.xlu1 %v7802_v35, %s9939_s19 }
 0x62a   : > { %v2052_v22 = vpop.xlane.xlu2 %2051 }
 0x62b   : > { %v2074_v57 = vsub.f32 %v1851_v25, %v2052_v22 }
 0x62d   : > { %v2082_v3 = vmul.f32 1.442695, %v2074_v57 }
 0x62f   : > { %7291 = vpow2.f32 %v2082_v3 }
 0x630   : > { %2320 = vrot.lane.b32.xlu1 %v7810_v40, %s9939_s19  ;;  %s9968_s19 = smov 72  }
 0x632   : > { %v2064_v6 = vpop.xlane.xlu2 %2063 }
 0x633   : > { %v2078_v11 = vsub.f32 %v1963_v30, %v2064_v6  ;;  %v2073_v46 = vpop.xlane.xlu0 %2072 }
 0x635   : > { %v8213_v0 = vpop.eup %7291  ;;  %v2090_v33 = vmul.f32 1.442695, %v2078_v11 }
 0x636   : > { %v2098_v21 = vsel %vm796_vm1, %v8213_v0, 0.0 }
 0x637   : > { %7293 = vpow2.f32 %v2090_v33  ;;  %2099 = vadd.xlane.f32.xlu2 %v2098_v21 }
 0x638   : > { %2432 = vrot.lane.b32.xlu1 %v7802_v35, %s9933_s1  ;;  %v2058_v8 = vpop.xlane.xlu1 %2057 }
 0x639   : > { %v2076_v13 = vsub.f32 %v1907_v5, %v2058_v8 }
 0x63a   : > { %v2061_v16 = vpop.xlane.xlu2 %2060 }
 0x63b   : > { %v2086_v18 = vmul.f32 1.442695, %v2076_v13  ;;  %v2077_v15 = vsub.f32 %v1935_v31, %v2061_v16 }
 0x63d   : > { %v8219_v25 = vpop.eup %7293  ;;  %7295 = vpow2.f32 %v2086_v18  ;;  %v2088_v23 = vmul.f32 1.442695, %v2077_v15 }
 0x63e   : > { %v2110_v30 = vsel %vm796_vm1, %v8219_v25, 0.0 }
 0x63f   : > { %2111 = vadd.xlane.f32.xlu0 %v2110_v30  ;;  %7297 = vpow2.f32 %v2088_v23 }
 0x640   : > { %2488 = vrot.lane.b32.xlu1 %v7818_v43, %s9933_s1  ;;  %v2070_v2 = vpop.xlane.xlu0 %2069  ;;  %7299 = vpow2.f32 %v2092_v60 }
 0x641   : > { %v2080_v58 = vsub.f32 %v2019_v14, %v2070_v2 }
 0x643   : > { %v8225_v4 = vpop.eup %7295  ;;  %v2094_v57 = vmul.f32 1.442695, %v2080_v58 }
 0x644   : > { %v2104_v5 = vsel %vm796_vm1, %v8225_v4, 0.0 }
 0x645   : > { %v8231_v41 = vpop.eup %7297 }
 0x646   : > { %v2107_v31 = vsel %vm796_vm1, %v8231_v41, 0.0 }
 0x647   : > { %2105 = vadd.xlane.f32.xlu0 %v2104_v5 }
 0x648   : > { %2486 = vrot.lane.b32.xlu1 %v7818_v43, %s9937_s20  ;;  %v2081_v43 = vsub.f32 %v8187_v55, %v2073_v46 }
 0x64a   : > { %v2096_v22 = vmul.f32 1.442695, %v2081_v43 }
 0x64c   : > { %7301 = vpow2.f32 %v2096_v22 }
 0x64d   : > { %7303 = vpow2.f32 %v2094_v57 }
 0x64f   : > { %2404 = vrot.lane.b32.xlu2 %v7798_v32, %s9933_s1  ;;  %2108 = vadd.xlane.f32.xlu0 %v2107_v31  ;;  %v8243_v32 = vpop.eup %7299 }
 0x650   : > { %v2113_v56 = vsel %vm796_vm1, %v8243_v32, 0.0 }
 0x652   : > { %v8249_v55 = vpop.eup %7301 }
 0x653   : > { %v8251_v14 = vpop.eup %7303  ;;  %v2119_v3 = vsel %vm796_vm1, %v8249_v55, 0.0 }
 0x654   : > { %v2116_v11 = vsel %vm796_vm1, %v8251_v14, 0.0 }
 0x663   : > { %2430 = vrot.lane.b32.xlu0 %v7802_v35, %s9937_s20 }
 0x66b   : > { %2516 = vrot.lane.b32.xlu0 %v7832_v47, %s9933_s1 }
 0x672   : > { %2114 = vadd.xlane.f32.xlu1 %v2113_v56  ;;  %v2103_v35 = vpop.xlane.xlu1 %2102 }
 0x673   : > { %7305 = vrcp.f32 %v2103_v35  ;;  %2544 = vrot.lane.b32.xlu0 %v7810_v40, %s9933_s1 }
 0x678   : > { %2120 = vadd.xlane.f32.xlu2 %v2119_v3 }
 0x679   : > { %v7306_v6 = vpop.eup %7305 }
 0x67a   : > { %v2131_v33 = vmul.f32 %v7306_v6, %v8199_v50  ;;  %2117 = vadd.xlane.f32.xlu1 %v2116_v11  ;;  %v2349_v50 = vpop.permute.xlu2 %2348 }
 0x67c   : > { %6807 = vmatmul.msk.f32.vlgmr.msra.gmra.mxu2 %vm796_vm1, %v2131_v33 }
 0x67d   : > { %6816 = vmatpush.xpose.msk.msra.mxu2 %vm796_vm1, %v8207_v34  ;;  %v2375_v34 = vpop.permute.xlu0 %2374 }
 0x68a   : > { %v2347_v21 = vpop.permute.xlu1 %2346 }
 0x690   : > { %2460 = vrot.lane.b32.xlu2 %v7806_v38, %s9933_s1  ;;  %s9955_s1 = smov 8  }
 0x692   : > { %v8263_v8 = vpop.permute.xlu1 %2402 }
 0x693   : > { %2458 = vrot.lane.b32.xlu1 %v7806_v38, %s9937_s20 }
 0x69a   : > { %v2217_v13 = vpop.permute.xlu1 %2216 }
 0x69b   : > { %2237 = vmatpush.msrb.mxu0 %v2217_v13  ;;  %2514 = vrot.lane.b32.xlu1 %v7832_v47, %s9937_s20 }
 0x6a2   : > { %v2321_v16 = vpop.permute.xlu1 %2320 }
 0x6a3   : > { %2341 = vmatpush.msra.mxu0 %v2321_v16  ;;  %2542 = vrot.lane.b32.xlu1 %v7810_v40, %s9937_s20  ;;  %s9969_s20 = smov 40  }
 0x6aa   : > { %v2100_v18 = vpop.xlane.xlu2 %2099  ;;  %v2433_v2 = vpop.permute.xlu1 %2432 }
 0x6ab   : > { %7307 = vrcp.f32 %v2100_v18 }
 0x6b1   : > { %v7308_v15 = vpop.eup %7307 }
 0x6b2   : > { %v2130_v30 = vmul.f32 %v7308_v15, %v8213_v0  ;;  %v2112_v23 = vpop.xlane.xlu0 %2111  ;;  %v2405_v60 = vpop.permute.xlu2 %2404 }
 0x6b3   : > { %7309 = vrcp.f32 %v2112_v23  ;;  %v2489_v43 = vpop.permute.xlu1 %2488 }
 0x6b4   : > { %6806 = vmatmul.msk.f32.vlgmr.msra.gmra.mxu1 %vm796_vm1, %v2130_v30 }
 0x6b5   : > { %6814 = vmatpush.xpose.msk.msra.mxu1 %vm796_vm1, %v2349_v50 }
 0x6b9   : > { %v7310_v38 = vpop.eup %7309 }
 0x6ba   : > { %v2134_v5 = vmul.f32 %v7310_v38, %v8219_v25  ;;  %v2106_v31 = vpop.xlane.xlu0 %2105 }
 0x6bb   : > { %7311 = vrcp.f32 %v2106_v31  ;;  %v2487_v58 = vpop.permute.xlu1 %2486 }
 0x6bc   : > { %6810 = vmatmul.msk.f32.vlgmr.msrb.gmra.mxu1 %vm796_vm1, %v2134_v5 }
 0x6c1   : > { %v7312_v39 = vpop.eup %7311 }
 0x6c2   : > { %v2132_v46 = vmul.f32 %v7312_v39, %v8225_v4  ;;  %v2109_v54 = vpop.xlane.xlu0 %2108 }
 0x6c3   : > { %7313 = vrcp.f32 %v2109_v54 }
 0x6c4   : > { %6808 = vmatmul.msk.f32.vlgmr.msrb.gmra.mxu3 %vm796_vm1, %v2132_v46  ;;  %6815 = vmatmul.msk.f32.vlgmr.msra.gmra.mxu1 %vm796_vm1, %v2347_v21 }
 0x6c5   : > { %6818 = vmatpush.xpose.msk.msrb.mxu3 %vm796_vm1, %v2405_v60 }
 0x6c9   : > { %v7314_v0 = vpop.eup %7313 }
 0x6ca   : > { %v2133_v25 = vmul.f32 %v7314_v0, %v8231_v41 }
 0x6cc   : > { %6809 = vmatmul.msk.f32.vlgmr.msrb.gmra.mxu0 %vm796_vm1, %v2133_v25 }
 0x6cd   : > { %6820 = vmatpush.xpose.msk.msrb.mxu0 %vm796_vm1, %v2433_v2 }
 0x6d5   : > { %v2431_v4 = vpop.permute.xlu0 %2430 }
 0x6dd   : > { %v2517_v57 = vpop.permute.xlu0 %2516 }
 0x6e5   : > { %v2115_v22 = vpop.xlane.xlu1 %2114  ;;  %v2545_v13 = vpop.permute.xlu0 %2544 }
 0x6e6   : > { %7315 = vrcp.f32 %v2115_v22 }
 0x6eb   : > { %v2121_v56 = vpop.xlane.xlu2 %2120 }
 0x6ec   : > { %v7316_v35 = vpop.eup %7315  ;;  %7317 = vrcp.f32 %v2121_v56 }
 0x6ed   : > { %v2135_v3 = vmul.f32 %v7316_v35, %v8243_v32  ;;  %v2118_v6 = vpop.xlane.xlu1 %2117 }
 0x6ee   : > { %7319 = vrcp.f32 %v2118_v6 }
 0x6ef   : > { %6811 = vmatmul.msk.f32.vlgmr.msrb.gmra.mxu2 %vm796_vm1, %v2135_v3 }
 0x6f0   : > { %6824 = vmatpush.xpose.msk.msrb.mxu2 %vm796_vm1, %v2489_v43 }
 0x6f2   : > { %v7318_v41 = vpop.eup %7317 }
 0x6f3   : > { %v2137_v11 = vmul.f32 %v7318_v41, %v8249_v55  ;;  %v2461_v33 = vpop.permute.xlu2 %2460 }
 0x6f4   : > { %v7320_v21 = vpop.eup %7319  ;;  %6822 = vmatpush.xpose.msk.msrb.mxu1 %vm796_vm1, %v2461_v33 }
 0x6f5   : > { %v2136_v50 = vmul.f32 %v7320_v21, %v8251_v14  ;;  %6813 = vmatmul.msk.f32.vlgmr.msra.gmra.mxu0 %vm796_vm1, %v2137_v11 }
 0x6f6   : > { %6828 = vmatpush.xpose.msk.msra.mxu0 %vm796_vm1, %v2545_v13 }
 0x6f7   : > { %6812 = vmatmul.msk.f32.vlgmr.msra.gmra.mxu3 %vm796_vm1, %v2136_v50  ;;  %6817 = vmatmul.msk.f32.vlgmr.msra.gmra.mxu2 %vm796_vm1, %v2375_v34 }
 0x6f8   : > { %6826 = vmatpush.xpose.msk.msra.mxu3 %vm796_vm1, %v2517_v57 }
 0x6fd   : > { %6821 = vmatmul.msk.f32.vlgmr.msrb.gmra.mxu0 %vm796_vm1, %v2431_v4 }
 0x6ff   : > { %6819 = vmatmul.msk.f32.vlgmr.msrb.gmra.mxu3 %vm796_vm1, %v8263_v8  ;;  %6825 = vmatmul.msk.f32.vlgmr.msrb.gmra.mxu2 %vm796_vm1, %v2487_v58  ;;  %v8306_v8 = vpop.f32.mrf.mxu2 }
 0x705   : > { %v2459_v32 = vpop.permute.xlu1 %2458 }
 0x706   : > { %6823 = vmatmul.msk.f32.vlgmr.msrb.gmra.mxu1 %vm796_vm1, %v2459_v32 }
 0x70d   : > { %v2515_v55 = vpop.permute.xlu1 %2514 }
 0x70e   : > { %6827 = vmatmul.msk.f32.vlgmr.msra.gmra.mxu3 %vm796_vm1, %v2515_v55 }
 0x715   : > { %v2543_v14 = vpop.permute.xlu1 %2542 }
 0x716   : > { %6829 = vmatmul.msk.f32.vlgmr.msra.gmra.mxu0 %vm796_vm1, %v2543_v14 }
 0x731   : > { %v8301_v16 = vpop.f32.mrf.mxu1 }
 0x739   : > { %v8303_v34 = vpop.f32.mrf.mxu1 }
 0x741   : > { %v2371_v18 = vpop.f32.mrf.mxu1 }
 0x742   : > { %v2570_v15 = vsel %vm796_vm1, %v2371_v18, -inf }
 0x743   : > { %2571 = vmax.xlane.f32.xlu2 %v2570_v15 }
 0x747   : > { %v8310_v23 = vpop.f32.mrf.mxu3 }
 0x749   : > { %v8308_v30 = vpop.f32.mrf.mxu0 }
 0x772   : > { %v8312_v38 = vpop.f32.mrf.mxu2  ;;  %v8314_v5 = vpop.f32.mrf.mxu0 }
 0x77a   : > { %v8316_v31 = vpop.f32.mrf.mxu3  ;;  %v2399_v39 = vpop.f32.mrf.mxu2 }
 0x77b   : > { %v2455_v46 = vpop.f32.mrf.mxu0  ;;  %v2573_v54 = vsel %vm796_vm1, %v2399_v39, -inf }
 0x77c   : > { %v2579_v60 = vsel %vm796_vm1, %v2455_v46, -inf  ;;  %2574 = vmax.xlane.f32.xlu0 %v2573_v54 }
 0x77d   : > { %2580 = vmax.xlane.f32.xlu2 %v2579_v60 }
 0x782   : > { %v2427_v0 = vpop.f32.mrf.mxu3  ;;  %v2511_v58 = vpop.f32.mrf.mxu2 }
 0x783   : > { %v2483_v2 = vpop.f32.mrf.mxu1  ;;  %v2576_v25 = vsel %vm796_vm1, %v2427_v0, -inf  ;;  %v2585_v4 = vsel %vm796_vm1, %v2511_v58, -inf }
 0x784   : > { %2577 = vmax.xlane.f32.xlu1 %v2576_v25  ;;  %v2582_v43 = vsel %vm796_vm1, %v2483_v2, -inf }
 0x785   : > { %2583 = vmax.xlane.f32.xlu0 %v2582_v43 }
 0x78c   : > { %2586 = vmax.xlane.f32.xlu1 %v2585_v4 }
 0x791   : > { %v2539_v56 = vpop.f32.mrf.mxu3 }
 0x792   : > { %v2588_v35 = vsel %vm796_vm1, %v2539_v56, -inf }
 0x793   : > { %v8323_v22 = vpop.f32.mrf.mxu0 }
 0x794   : > { %v2591_v57 = vsel %vm796_vm1, %v8323_v22, -inf }
 0x795   : > { %2592 = vmax.xlane.f32.xlu2 %v2591_v57 }
 0x79d   : > { %2589 = vmax.xlane.f32.xlu2 %v2588_v35 }
 0x7a5   : > { %7124 = vrot.lane.b32.xlu1 %v7826_v45, %s9935_s21 }
 0x7b5   : > { %7119 = vrot.lane.b32.xlu2 %v7843_v49, %s9935_s21 }
 0x7b6   : > { %v2572_v3 = vpop.xlane.xlu2 %2571 }
 0x7b7   : > { %v2594_v6 = vsub.f32 %v2371_v18, %v2572_v3 }
 0x7b9   : > { %v2602_v41 = vmul.f32 1.442695, %v2594_v6 }
 0x7bb   : > { %7321 = vpow2.f32 %v2602_v41 }
 0x7c1   : > { %v8332_v11 = vpop.eup %7321 }
 0x7c2   : > { %v2618_v33 = vsel %vm796_vm1, %v8332_v11, 0.0 }
 0x7c3   : > { %2619 = vadd.xlane.f32.xlu0 %v2618_v33 }
 0x7d7   : > { %7114 = vrot.lane.b32.xlu0 %v7816_v42, %s9935_s21 }
 0x7ef   : > { %v2575_v21 = vpop.xlane.xlu0 %2574 }
 0x7f0   : > { %v2581_v13 = vpop.xlane.xlu2 %2580  ;;  %v2595_v32 = vsub.f32 %v2399_v39, %v2575_v21 }
 0x7f1   : > { %v2597_v50 = vsub.f32 %v2455_v46, %v2581_v13 }
 0x7f2   : > { %v2604_v49 = vmul.f32 1.442695, %v2595_v32 }
 0x7f3   : > { %v2608_v45 = vmul.f32 1.442695, %v2597_v50 }
 0x7f5   : > { %7323 = vpow2.f32 %v2608_v45 }
 0x7f6   : > { %7325 = vpow2.f32 %v2604_v49 }
 0x7f7   : > { %v2578_v55 = vpop.xlane.xlu1 %2577 }
 0x7f8   : > { %v2584_v14 = vpop.xlane.xlu0 %2583  ;;  %v2596_v54 = vsub.f32 %v2427_v0, %v2578_v55 }
 0x7f9   : > { %v2598_v18 = vsub.f32 %v2483_v2, %v2584_v14 }
 0x7fa   : > { %v2606_v42 = vmul.f32 1.442695, %v2596_v54 }
 0x7fb   : > { %v8338_v15 = vpop.eup %7323  ;;  %v2610_v60 = vmul.f32 1.442695, %v2598_v18 }
 0x7fc   : > { %v2627_v25 = vsel %vm796_vm1, %v8338_v15, 0.0  ;;  %v8342_v46 = vpop.eup %7325 }
 0x7fd   : > { %7327 = vpow2.f32 %v2610_v60  ;;  %2628 = vadd.xlane.f32.xlu1 %v2627_v25  ;;  %v2621_v2 = vsel %vm796_vm1, %v8342_v46, 0.0 }
 0x7fe   : > { %7329 = vpow2.f32 %v2606_v42 }
 0x7ff   : > { %v2587_v43 = vpop.xlane.xlu1 %2586 }
 0x800   : > { %v2599_v4 = vsub.f32 %v2511_v58, %v2587_v43 }
 0x802   : > { %v2612_v57 = vmul.f32 1.442695, %v2599_v4 }
 0x803   : > { %v8344_v39 = vpop.eup %7327 }
 0x804   : > { %v2630_v0 = vsel %vm796_vm1, %v8344_v39, 0.0  ;;  %v8350_v3 = vpop.eup %7329  ;;  %7331 = vpow2.f32 %v2612_v57 }
 0x805   : > { %2622 = vadd.xlane.f32.xlu1 %v2621_v2  ;;  %2631 = vadd.xlane.f32.xlu0 %v2630_v0  ;;  %v2624_v6 = vsel %vm796_vm1, %v8350_v3, 0.0 }
 0x808   : > { %v2593_v35 = vpop.xlane.xlu2 %2592 }
 0x80a   : > { %v8354_v33 = vpop.eup %7331 }
 0x80b   : > { %v2633_v13 = vsel %vm796_vm1, %v8354_v33, 0.0 }
 0x80d   : > { %2625 = vadd.xlane.f32.xlu1 %v2624_v6 }
 0x810   : > { %v2590_v41 = vpop.xlane.xlu2 %2589 }
 0x811   : > { %v2600_v58 = vsub.f32 %v2539_v56, %v2590_v41  ;;  %v2601_v56 = vsub.f32 %v8323_v22, %v2593_v35 }
 0x813   : > { %v2614_v21 = vmul.f32 1.442695, %v2600_v58  ;;  %v2616_v54 = vmul.f32 1.442695, %v2601_v56  ;;  %v2989_v56 = vld [vmem:[%s9919_s5 + $0x8] sm:$0xff] }
 0x815   : > { %7333 = vpow2.f32 %v2614_v21  ;;  %2634 = vadd.xlane.f32.xlu1 %v2633_v13 }
 0x817   : > { %v7125_v18 = vpop.permute.xlu1 %7124 }
 0x818   : > { %v7120_v50 = vpop.permute.xlu2 %7119  ;;  %v7127_v25 = vunpack.i.h.bf16 %v7125_v18  ;;  %v7126_v42 = vunpack.i.l.bf16 %v7125_v18 }
 0x819   : > { %v7122_v45 = vunpack.i.h.bf16 %v7120_v50  ;;  %v7121_v32 = vunpack.i.l.bf16 %v7120_v50  ;;  %2840 = vrot.lane.b32.xlu0 %v7810_v40, %s9935_s21 }
 0x81b   : > { %v8360_v49 = vpop.eup %7333  ;;  %2731 = vmatpush.msrb.mxu3 %v7121_v32  ;;  %2757 = vmatpush.msrb.mxu0 %v7122_v45 }
 0x81c   : > { %v2636_v55 = vsel %vm796_vm1, %v8360_v49, 0.0 }
 0x81d   : > { %2637 = vadd.xlane.f32.xlu2 %v2636_v55 }
 0x821   : > { %2906 = vrot.lane.b32.xlu0 %v8301_v16, %s9949_s22 }
 0x829   : > { %2908 = vrot.lane.b32.xlu0 %v8306_v8, %s9949_s22 }
 0x82e   : > { %2814 = vrot.lane.b32.xlu1 %v7832_v47, %s9935_s21  ;;  %s9953_s21 = smov 24  }
 0x835   : > { %2874 = vrot.lane.b32.xlu2 %v8174_v28, %s9955_s1 }
 0x836   : > { %v2620_v40 = vpop.xlane.xlu0 %2619 }
 0x837   : > { %7335 = vrcp.f32 %v2620_v40 }
 0x838   : > { %7337 = vpow2.f32 %v2616_v54 }
 0x83d   : > { %2876 = vrot.lane.b32.xlu2 %v8165_v20, %s9955_s1  ;;  %v7336_v14 = vpop.eup %7335 }
 0x83e   : > { %v2650_v47 = vmul.f32 %v7336_v14, %v8332_v11  ;;  %v7338_v20 = vpop.eup %7337 }
 0x83f   : > { %v2639_v28 = vsel %vm796_vm1, %v7338_v20, 0.0 }
 0x849   : > { %v7115_v16 = vpop.permute.xlu0 %7114 }
 0x84a   : > { %v7117_v60 = vunpack.i.h.bf16 %v7115_v16  ;;  %v7116_v8 = vunpack.i.l.bf16 %v7115_v16 }
 0x84c   : > { %2679 = vmatpush.msra.mxu1 %v7116_v8  ;;  %2705 = vmatpush.msra.mxu2 %v7117_v60 }
 0x84d   : > { %6830 = vmatmul.msk.f32.vlgmr.msra.gmra.mxu1 %vm796_vm1, %v2650_v47 }
 0x84e   : > { %2809 = vmatpush.msrb.mxu2 %v7127_v25  ;;  %2783 = vmatpush.msrb.mxu1 %v7126_v42 }
 0x858   : > { %2640 = vadd.xlane.f32.xlu1 %v2639_v28 }
 0x870   : > { %v2629_v22 = vpop.xlane.xlu1 %2628 }
 0x871   : > { %7339 = vrcp.f32 %v2629_v22  ;;  %2878 = vrot.lane.b32.xlu1 %v8182_v24, %s9955_s1 }
 0x877   : > { %v7340_v43 = vpop.eup %7339 }
 0x878   : > { %v2653_v11 = vmul.f32 %v7340_v43, %v8338_v15  ;;  %v2623_v4 = vpop.xlane.xlu1 %2622  ;;  %v2632_v2 = vpop.xlane.xlu0 %2631 }
 0x879   : > { %7341 = vrcp.f32 %v2623_v4  ;;  %2914 = vrot.lane.b32.xlu1 %v8303_v34, %s9949_s22 }
 0x87a   : > { %7343 = vrcp.f32 %v2632_v2  ;;  %6833 = vmatmul.msk.f32.vlgmr.msrb.gmra.mxu0 %vm796_vm1, %v2653_v11 }
 0x87f   : > { %v7342_v0 = vpop.eup %7341 }
 0x880   : > { %v7344_v57 = vpop.eup %7343  ;;  %v2651_v35 = vmul.f32 %v7342_v0, %v8342_v46  ;;  %v2626_v6 = vpop.xlane.xlu1 %2625 }
 0x881   : > { %v2654_v41 = vmul.f32 %v7344_v57, %v8344_v39  ;;  %7345 = vrcp.f32 %v2626_v6  ;;  %2916 = vrot.lane.b32.xlu1 %v8312_v38, %s9949_s22 }
 0x882   : > { %6831 = vmatmul.msk.f32.vlgmr.msra.gmra.mxu2 %vm796_vm1, %v2651_v35 }
 0x883   : > { %6834 = vmatmul.msk.f32.vlgmr.msrb.gmra.mxu1 %vm796_vm1, %v2654_v41 }
 0x887   : > { %v7346_v24 = vpop.eup %7345 }
 0x888   : > { %v2652_v34 = vmul.f32 %v7346_v24, %v8350_v3  ;;  %v2635_v15 = vpop.xlane.xlu1 %2634 }
 0x889   : > { %7347 = vrcp.f32 %v2635_v15  ;;  %2918 = vrot.lane.b32.xlu1 %v8316_v31, %s9949_s22 }
 0x88a   : > { %6832 = vmatmul.msk.f32.vlgmr.msrb.gmra.mxu3 %vm796_vm1, %v2652_v34 }
 0x88b   : > { %v2841_v46 = vpop.permute.xlu0 %2840 }
 0x88c   : > { %2861 = vmatpush.msra.mxu0 %v2841_v46 }
 0x88f   : > { %v7348_v39 = vpop.eup %7347 }
 0x890   : > { %v2655_v58 = vmul.f32 %v7348_v39, %v8354_v33  ;;  %v2638_v38 = vpop.xlane.xlu2 %2637 }
 0x891   : > { %2920 = vrot.lane.b32.xlu1 %v8314_v5, %s9949_s22  ;;  %7349 = vrcp.f32 %v2638_v38 }
 0x892   : > { %6835 = vmatmul.msk.f32.vlgmr.msrb.gmra.mxu2 %vm796_vm1, %v2655_v58 }
 0x893   : > { %v2907_v18 = vpop.permute.xlu0 %2906 }
 0x897   : > { %v7350_v3 = vpop.eup %7349 }
 0x898   : > { %v2656_v21 = vmul.f32 %v7350_v3, %v8360_v49 }
 0x89b   : > { %v2909_v16 = vpop.permute.xlu0 %2908 }
 0x8a0   : > { %v2815_v13 = vpop.permute.xlu1 %2814 }
 0x8a1   : > { %2835 = vmatpush.msra.mxu3 %v2815_v13 }
 0x8a2   : > { %6836 = vmatmul.msk.f32.vlgmr.msra.gmra.mxu3 %vm796_vm1, %v2656_v21 }
 0x8ca   : > { %v2681_v31 = vpop.f32.mrf.mxu1 }
 0x8cb   : > { %v2641_v50 = vpop.xlane.xlu1 %2640  ;;  %2938 = vrot.lane.b32.xlu0 %v2681_v31, %s9953_s21 }
 0x8cc   : > { %7351 = vrcp.f32 %v2641_v50 }
 0x8d2   : > { %v7352_v33 = vpop.eup %7351 }
 0x8d3   : > { %v2657_v45 = vmul.f32 %v7352_v33, %v7338_v20  ;;  %2910 = vrot.lane.b32.xlu0 %v8310_v23, %s9949_s22  ;;  %v2990_v23 = vld [vmem:[%s9919_s5 + $0x10] sm:$0xff] }
 0x8d5   : > { %6837 = vmatmul.msk.f32.vlgmr.msra.gmra.mxu0 %vm796_vm1, %v2657_v45 }
 0x8db   : > { %2880 = vrot.lane.b32.xlu0 %v8176_v19, %s9955_s1  ;;  %v2991_v19 = vld [vmem:[%s9919_s5 + $0x18] sm:$0xff] }
 0x8dc   : > { %3032 = vmatpush.msra.mxu1 %v2991_v19 }
 0x8de   : > { %3033 = vmatpush.msra.mxu1 %v2990_v23 }
 0x8e0   : > { %3034 = vmatpush.msra.mxu1 %v2989_v56 }
 0x8e3   : > { %v2879_v28 = vpop.permute.xlu1 %2878 }
 0x8e4   : > { %v2964_v22 = vsel %vm796_vm1, %v8034_v61, %v2879_v28 }
 0x8eb   : > { %v2915_v41 = vpop.permute.xlu1 %2914 }
 0x8f3   : > { %v2917_v58 = vpop.permute.xlu1 %2916 }
 0x8f7   : > { %v2759_v5 = vpop.f32.mrf.mxu0 }
 0x8f8   : > { %2944 = vrot.lane.b32.xlu0 %v2759_v5, %s9953_s21 }
 0x8fb   : > { %v2919_v31 = vpop.permute.xlu1 %2918 }
 0x900   : > { %v2785_v32 = vpop.f32.mrf.mxu1 }
 0x901   : > { %2946 = vrot.lane.b32.xlu0 %v2785_v32, %s9953_s21 }
 0x903   : > { %v2921_v19 = vpop.permute.xlu1 %2920 }
 0x905   : > { %v2707_v49 = vpop.f32.mrf.mxu2 }
 0x906   : > { %2940 = vrot.lane.b32.xlu2 %v2707_v49, %s9953_s21 }
 0x90d   : > { %v2733_v55 = vpop.f32.mrf.mxu3 }
 0x90e   : > { %2942 = vrot.lane.b32.xlu2 %v2733_v55, %s9953_s21 }
 0x915   : > { %v2811_v40 = vpop.f32.mrf.mxu2 }
 0x916   : > { %2912 = vrot.lane.b32.xlu2 %v8308_v30, %s9949_s22  ;;  %2948 = vrot.lane.b32.xlu0 %v2811_v40, %s9953_s21  ;;  %v2988_v30 = vld [vmem:[%s9919_s5] sm:$0xff]  ;;  %s9970_s22 = smov 8  }
 0x917   : > { %3035 = vmatpush.msra.mxu1 %v2988_v30 }
 0x91e   : > { %2882 = vrot.lane.b32.xlu2 %v8178_v27, %s9955_s1  ;;  %v2875_v27 = vpop.permute.xlu2 %2874 }
 0x91f   : > { %v2962_v54 = vsel %vm796_vm1, %v8032_v59, %v2875_v27 }
 0x920   : > { %v2971_v60 = vsel %vm2970_vm2, %v2962_v54, %v2907_v18 }
 0x925   : > { %v2837_v14 = vpop.f32.mrf.mxu3 }
 0x926   : > { %2884 = vrot.lane.b32.xlu2 %v8167_v10, %s9955_s1  ;;  %2950 = vrot.lane.b32.xlu0 %v2837_v14, %s9953_s21 }
 0x92e   : > { %2886 = vrot.lane.b32.xlu2 %v8185_v26, %s9955_s1  ;;  %v2877_v26 = vpop.permute.xlu2 %2876 }
 0x936   : > { %2888 = vrot.lane.b32.xlu2 %v8180_v12, %s9955_s1  ;;  %v2963_v12 = vsel %vm796_vm1, %v8024_v36, %v2877_v26  ;;  %s9971_s1 = smov 16  }
 0x937   : > { %v2972_v59 = vsel %vm2970_vm2, %v2963_v12, %v2909_v16 }
 0x93d   : > { %v2939_v8 = vpop.permute.xlu0 %2938 }
 0x93e   : > { %v2980_v10 = vsel %vm2979_vm3, %v2971_v60, %v2939_v8 }
 0x93f   : > { %6838 = vmatmul.msk.f32.vlgmr.msra.gmra.mxu1 %vm727_vm0, %v2980_v10 }
 0x945   : > { %v2911_v47 = vpop.permute.xlu0 %2910 }
 0x946   : > { %v2973_v43 = vsel %vm2970_vm2, %v2964_v22, %v2911_v47 }
 0x94d   : > { %v2881_v11 = vpop.permute.xlu0 %2880 }
 0x94e   : > { %v2965_v36 = vsel %vm796_vm1, %v8036_v62, %v2881_v11  ;;  %v7576_v11 = vmov 32.0  }
 0x94f   : > { %7353 = vrcp.f32 %v7576_v11 }
 0x952   : > { %v2863_v25 = vpop.f32.mrf.mxu0 }
 0x953   : > { %2952 = vrot.lane.b32.xlu0 %v2863_v25, %s9953_s21  ;;  %s9972_s21 = smov 24  }
 0x960   : > { %v2941_v42 = vpop.permute.xlu2 %2940 }
 0x961   : > { %v2981_v20 = vsel %vm2979_vm3, %v2972_v59, %v2941_v42 }
 0x962   : > { %6839 = vmatmul.msk.f32.gmra.mxu1 %vm727_vm0, %v2981_v20 }
 0x968   : > { %v2943_v4 = vpop.permute.xlu2 %2942 }
 0x969   : > { %v2982_v2 = vsel %vm2979_vm3, %v2973_v43, %v2943_v4 }
 0x96a   : > { %6840 = vmatmul.msk.f32.gmra.mxu1 %vm727_vm0, %v2982_v2  ;;  %v2945_v0 = vpop.permute.xlu0 %2944 }
 0x970   : > { %v2913_v57 = vpop.permute.xlu2 %2912 }
 0x971   : > { %v2974_v35 = vsel %vm2970_vm2, %v2965_v36, %v2913_v57 }
 0x972   : > { %v2983_v6 = vsel %vm2979_vm3, %v2974_v35, %v2945_v0 }
 0x973   : > { %6841 = vmatmul.msk.f32.gmra.mxu1 %vm727_vm0, %v2983_v6  ;;  %v2947_v34 = vpop.permute.xlu0 %2946 }
 0x978   : > { %v2883_v61 = vpop.permute.xlu2 %2882 }
 0x979   : > { %v2966_v24 = vsel %vm796_vm1, %v8026_v51, %v2883_v61 }
 0x97a   : > { %v2975_v15 = vsel %vm2970_vm2, %v2966_v24, %v2915_v41 }
 0x97b   : > { %v2984_v46 = vsel %vm2979_vm3, %v2975_v15, %v2947_v34 }
 0x97c   : > { %6842 = vmatmul.msk.f32.gmra.mxu1 %vm727_vm0, %v2984_v46 }
 0x980   : > { %v2885_v62 = vpop.permute.xlu2 %2884 }
 0x981   : > { %v2967_v39 = vsel %vm796_vm1, %v8038_v63, %v2885_v62  ;;  %v7209_v63 = vld [vmem:[%s9920_s6] ss:$0 sm:$0xff] }
 0x982   : > { %v2976_v3 = vsel %vm2970_vm2, %v2967_v39, %v2917_v58 }
 0x988   : > { %v2949_v38 = vpop.permute.xlu0 %2948  ;;  %v2887_v51 = vpop.permute.xlu2 %2886 }
 0x989   : > { %v2985_v21 = vsel %vm2979_vm3, %v2976_v3, %v2949_v38  ;;  %v2968_v13 = vsel %vm796_vm1, %v8040_v48, %v2887_v51 }
 0x98a   : > { %6843 = vmatmul.msk.f32.gmra.mxu1 %vm727_vm0, %v2985_v21  ;;  %v2977_v33 = vsel %vm2970_vm2, %v2968_v13, %v2919_v31 }
 0x990   : > { %v2889_v49 = vpop.permute.xlu2 %2888 }
 0x991   : > { %v2969_v48 = vsel %vm796_vm1, %v8028_v52, %v2889_v49 }
 0x992   : > { %v2978_v56 = vsel %vm2970_vm2, %v2969_v48, %v2921_v19 }
 0x998   : > { %v2951_v50 = vpop.permute.xlu0 %2950 }
 0x999   : > { %v2986_v45 = vsel %vm2979_vm3, %v2977_v33, %v2951_v50 }
 0x99a   : > { %6844 = vmatmul.msk.f32.gmra.mxu1 %vm727_vm0, %v2986_v45 }
 0x9bc   : > { %v3037_v5 = vpop.f32.mrf.mxu1 }
 0x9bd   : > { %v3038_v32 = vadd.f32 %v7209_v63, %v3037_v5 }
 0x9bf   : > { %v3061_v55 = vadd.f32 %v3038_v32, %v7730_v37 }
 0x9c1   : > { %v3071_v40 = vsel %vm727_vm0, %v3061_v55, 0.0 }
 0x9c2   : > { %3072 = vadd.xlane.f32.xlu2 %v3071_v40 }
 0x9c5   : > { %v2953_v23 = vpop.permute.xlu0 %2952 }
 0x9c6   : > { %v2987_v30 = vsel %vm2979_vm3, %v2978_v56, %v2953_v23 }
 0x9c7   : > { %6845 = vmatmul.msk.f32.gmra.mxu1 %vm727_vm0, %v2987_v30 }
 0x9df   : > { %v3040_v14 = vpop.f32.mrf.mxu1 }
 0x9e0   : > { %v3041_v18 = vadd.f32 %v7209_v63, %v3040_v14 }
 0x9e2   : > { %v3062_v16 = vadd.f32 %v3041_v18, %v7737_v44 }
 0x9e4   : > { %v3074_v37 = vsel %vm727_vm0, %v3062_v16, 0.0 }
 0x9e5   : > { %3075 = vadd.xlane.f32.xlu1 %v3074_v37 }
 0x9e7   : > { %v3043_v27 = vpop.f32.mrf.mxu1 }
 0x9e8   : > { %v3044_v54 = vadd.f32 %v7209_v63, %v3043_v27 }
 0x9ea   : > { %v3063_v52 = vadd.f32 %v3044_v54, %v7745_v53 }
 0x9ec   : > { %v3077_v60 = vsel %vm727_vm0, %v3063_v52, 0.0 }
 0x9ed   : > { %3078 = vadd.xlane.f32.xlu0 %v3077_v60  ;;  %v3278_v60 = vld [vmem:[%s9923_s9 + $0x10] sm:$0xff] }
 0x9f0   : > { %v3046_v8 = vpop.f32.mrf.mxu1 }
 0x9f1   : > { %v3047_v10 = vadd.f32 %v7209_v63, %v3046_v8  ;;  %v3277_v8 = vld [vmem:[%s9923_s9 + $0x8] sm:$0xff] }
 0x9f3   : > { %v3064_v25 = vadd.f32 %v3047_v10, %v7755_v1  ;;  %v3276_v10 = vld [vmem:[%s9923_s9] sm:$0xff] }
 0x9f5   : > { %v3080_v26 = vsel %vm727_vm0, %v3064_v25, 0.0 }
 0x9f6   : > { %3081 = vadd.xlane.f32.xlu2 %v3080_v26 }
 0x9f9   : > { %v3049_v12 = vpop.f32.mrf.mxu1 }
 0x9fa   : > { %v3050_v47 = vadd.f32 %v7209_v63, %v3049_v12 }
 0x9fc   : > { %v3065_v44 = vadd.f32 %v3050_v47, %v7767_v9  ;;  %v7354_v9 = vpop.eup %7353 }
 0x9fd   : > { %v3096_v2 = vmul.f32 32.0, %v7354_v9  ;;  %vm3100_vm4 = vweird.f32 %v7354_v9 }
 0x9fe   : > { %v3083_v42 = vsel %vm727_vm0, %v3065_v44, 0.0 }
 0x9ff   : > { %3084 = vadd.xlane.f32.xlu1 %v3083_v42  ;;  %v3097_v36 = vsub.f32 1.0, %v3096_v2 }
 0xa01   : > { %v3098_v0 = vmul.f32 %v7354_v9, %v3097_v36  ;;  %v8566_v36 = vld [vmem:[%s9922_s8] ss:$0 sm:$0xff] }
 0xa03   : > { %v3099_v57 = vadd.f32 %v7354_v9, %v3098_v0 }
 0xa05   : > { %v8492_v35 = vsel %vm3100_vm4, %v7354_v9, %v3099_v57 }
 0xa07   : > { %v3052_v59 = vpop.f32.mrf.mxu1 }
 0xa08   : > { %v3053_v20 = vadd.f32 %v7209_v63, %v3052_v59 }
 0xa0a   : > { %v3066_v53 = vadd.f32 %v3053_v20, %v7775_v17 }
 0xa0c   : > { %v3086_v28 = vsel %vm727_vm0, %v3066_v53, 0.0 }
 0xa0d   : > { %3087 = vadd.xlane.f32.xlu0 %v3086_v28 }
 0xa17   : > { %v3055_v22 = vpop.f32.mrf.mxu1 }
 0xa18   : > { %v3056_v43 = vadd.f32 %v7209_v63, %v3055_v22 }
 0xa1a   : > { %v3067_v1 = vadd.f32 %v3056_v43, %v7783_v29 }
 0xa1c   : > { %v3089_v4 = vsel %vm727_vm0, %v3067_v1, 0.0 }
 0xa1d   : > { %3090 = vadd.xlane.f32.xlu1 %v3089_v4  ;;  %v8560_v4 = vld [vmem:[%s9921_s7] ss:$0 sm:$0xff] }
 0xa35   : > { %v3073_v17 = vpop.xlane.xlu2 %3072 }
 0xa36   : > { %v3102_v6 = vmul.f32 %v8492_v35, %v3073_v17 }
 0xa38   : > { %v8495_v61 = vsub.f32 %v3061_v55, %v3102_v6 }
 0xa3a   : > { %v3118_v29 = vmul.f32 %v8495_v61, %v8495_v61 }
 0xa3c   : > { %v3126_v41 = vsel %vm727_vm0, %v3118_v29, 0.0 }
 0xa3d   : > { %3127 = vadd.xlane.f32.xlu2 %v3126_v41 }
 0xa44   : > { %v3058_v24 = vpop.f32.mrf.mxu1 }
 0xa45   : > { %v3059_v34 = vadd.f32 %v7209_v63, %v3058_v24 }
 0xa47   : > { %v3068_v15 = vadd.f32 %v3059_v34, %v7762_v7 }
 0xa49   : > { %v3092_v46 = vsel %vm727_vm0, %v3068_v15, 0.0 }
 0xa4a   : > { %3093 = vadd.xlane.f32.xlu2 %v3092_v46 }
 0xa58   : > { %v3076_v62 = vpop.xlane.xlu1 %3075 }
 0xa59   : > { %v3103_v39 = vmul.f32 %v8492_v35, %v3076_v62 }
 0xa5b   : > { %v8503_v58 = vsub.f32 %v3062_v16, %v3103_v39 }
 0xa5d   : > { %v3119_v38 = vmul.f32 %v8503_v58, %v8503_v58 }
 0xa5f   : > { %v3129_v3 = vsel %vm727_vm0, %v3119_v38, 0.0 }
 0xa60   : > { %v3079_v21 = vpop.xlane.xlu0 %3078  ;;  %3130 = vadd.xlane.f32.xlu0 %v3129_v3 }
 0xa61   : > { %v3104_v51 = vmul.f32 %v8492_v35, %v3079_v21 }
 0xa63   : > { %v8509_v13 = vsub.f32 %v3063_v52, %v3104_v51  ;;  %v3279_v52 = vld [vmem:[%s9923_s9 + $0x18] sm:$0xff] }
 0xa64   : > { %3320 = vmatpush.msra.mxu2 %v3279_v52  ;;  %7017 = vmatpush.msrb.mxu3 %v3279_v52 }
 0xa65   : > { %v3120_v7 = vmul.f32 %v8509_v13, %v8509_v13 }
 0xa66   : > { %3321 = vmatpush.msra.mxu2 %v3278_v60  ;;  %7018 = vmatpush.msrb.mxu3 %v3278_v60 }
 0xa67   : > { %v3132_v31 = vsel %vm727_vm0, %v3120_v7, 0.0 }
 0xa68   : > { %3133 = vadd.xlane.f32.xlu1 %v3132_v31  ;;  %3322 = vmatpush.msra.mxu2 %v3277_v8 }
 0xa69   : > { %v3082_v50 = vpop.xlane.xlu2 %3081  ;;  %7019 = vmatpush.msrb.mxu3 %v3277_v8 }
 0xa6a   : > { %v3105_v33 = vmul.f32 %v8492_v35, %v3082_v50  ;;  %3323 = vmatpush.msra.mxu2 %v3276_v10 }
 0xa6b   : > { %7020 = vmatpush.msrb.mxu3 %v3276_v10 }
 0xa6c   : > { %v8515_v45 = vsub.f32 %v3064_v25, %v3105_v33 }
 0xa6e   : > { %v3121_v63 = vmul.f32 %v8515_v45, %v8515_v45 }
 0xa70   : > { %v3135_v5 = vsel %vm727_vm0, %v3121_v63, 0.0 }
 0xa71   : > { %3136 = vadd.xlane.f32.xlu0 %v3135_v5 }
 0xa72   : > { %v3085_v32 = vpop.xlane.xlu1 %3084 }
 0xa73   : > { %v3106_v49 = vmul.f32 %v8492_v35, %v3085_v32 }
 0xa75   : > { %v8521_v55 = vsub.f32 %v3065_v44, %v3106_v49 }
 0xa77   : > { %v3122_v40 = vmul.f32 %v8521_v55, %v8521_v55 }
 0xa79   : > { %v3138_v48 = vsel %vm727_vm0, %v3122_v40, 0.0 }
 0xa7a   : > { %3139 = vadd.xlane.f32.xlu2 %v3138_v48 }
 0xa80   : > { %v3088_v19 = vpop.xlane.xlu0 %3087 }
 0xa81   : > { %v3107_v23 = vmul.f32 %v8492_v35, %v3088_v19 }
 0xa83   : > { %v8527_v56 = vsub.f32 %v3066_v53, %v3107_v23 }
 0xa85   : > { %v3123_v30 = vmul.f32 %v8527_v56, %v8527_v56 }
 0xa87   : > { %v3141_v14 = vsel %vm727_vm0, %v3123_v30, 0.0 }
 0xa88   : > { %3142 = vadd.xlane.f32.xlu1 %v3141_v14 }
 0xa90   : > { %v3091_v18 = vpop.xlane.xlu1 %3090 }
 0xa91   : > { %v3108_v16 = vmul.f32 %v8492_v35, %v3091_v18 }
 0xa93   : > { %v8533_v37 = vsub.f32 %v3067_v1, %v3108_v16 }
 0xa95   : > { %v3124_v27 = vmul.f32 %v8533_v37, %v8533_v37 }
 0xa97   : > { %v3144_v54 = vsel %vm727_vm0, %v3124_v27, 0.0 }
 0xa98   : > { %3145 = vadd.xlane.f32.xlu0 %v3144_v54 }
 0xab0   : > { %v3128_v25 = vpop.xlane.xlu2 %3127 }
 0xab1   : > { %v3150_v26 = vmul.f32 %v3128_v25, %v8492_v35 }
 0xab3   : > { %v3158_v12 = vadd.f32 1e-05, %v3150_v26 }
 0xab5   : > { %7355 = vrsqrt.f32 %v3158_v12  ;;  %vm3172_vm6 = vweird.f32 %v3158_v12 }
 0xabb   : > { %v7356_v47 = vpop.eup %7355 }
 0xabc   : > { %v3167_v44 = vmul.f32 %v7356_v47, %v3158_v12  ;;  %vm3173_vm5 = vweird.f32 %v7356_v47 }
 0xabd   : > { %v3094_v42 = vpop.xlane.xlu2 %3093  ;;  %vm3174_vm7 = vmor %vm3172_vm6, %vm3173_vm5 }
 0xabe   : > { %v3168_v59 = vmul.f32 %v7356_v47, %v3167_v44  ;;  %v3109_v20 = vmul.f32 %v8492_v35, %v3094_v42 }
 0xac0   : > { %v3169_v53 = vmul.f32 0.5, %v3168_v59  ;;  %v8552_v28 = vsub.f32 %v3068_v15, %v3109_v20 }
 0xac2   : > { %v3170_v22 = vsub.f32 1.5, %v3169_v53  ;;  %v3125_v43 = vmul.f32 %v8552_v28, %v8552_v28 }
 0xac4   : > { %v3171_v1 = vmul.f32 %v7356_v47, %v3170_v22  ;;  %v3147_v11 = vsel %vm727_vm0, %v3125_v43, 0.0 }
 0xac5   : > { %3148 = vadd.xlane.f32.xlu2 %v3147_v11 }
 0xac6   : > { %v3175_v9 = vsel %vm3174_vm7, %v7356_v47, %v3171_v1 }
 0xac7   : > { %v3246_v2 = vmul.f32 %v3175_v9, %v8495_v61 }
 0xac9   : > { %v3257_v0 = vmul.f32 %v8560_v4, %v3246_v2 }
 0xacb   : > { %v8570_v57 = vadd.f32 %v8566_v36, %v3257_v0 }
 0xacd   : > { %6846 = vmatmul.msk.f32.vlgmr.msra.gmra.mxu2 %vm727_vm0, %v8570_v57 }
 0xad3   : > { %v3131_v17 = vpop.xlane.xlu0 %3130 }
 0xad4   : > { %v3151_v6 = vmul.f32 %v3131_v17, %v8492_v35 }
 0xad6   : > { %v3159_v29 = vadd.f32 1e-05, %v3151_v6  ;;  %v3372_v6 = vld [vmem:[%s9925_s11 + $0x78] sm:$0xff] }
 0xad7   : > { %3377 = vmatpush.msra.mxu3 %v3372_v6 }
 0xad8   : > { %7357 = vrsqrt.f32 %v3159_v29  ;;  %vm3182_vm9 = vweird.f32 %v3159_v29 }
 0xadb   : > { %v3134_v41 = vpop.xlane.xlu1 %3133 }
 0xadc   : > { %v3152_v61 = vmul.f32 %v3134_v41, %v8492_v35 }
 0xade   : > { %v7358_v24 = vpop.eup %7357  ;;  %v3160_v34 = vadd.f32 1e-05, %v3152_v61 }
 0xadf   : > { %v3177_v15 = vmul.f32 %v7358_v24, %v3159_v29  ;;  %vm3183_vm8 = vweird.f32 %v7358_v24  ;;  %v3371_v29 = vld [vmem:[%s9925_s11 + $0x70] sm:$0xff] }
 0xae0   : > { %7359 = vrsqrt.f32 %v3160_v34  ;;  %vm3184_vm10 = vmor %vm3182_vm9, %vm3183_vm8  ;;  %vm3192_vm12 = vweird.f32 %v3160_v34  ;;  %3378 = vmatpush.msra.mxu3 %v3371_v29 }
 0xae1   : > { %v3178_v46 = vmul.f32 %v7358_v24, %v3177_v15  ;;  %v3369_v15 = vld [vmem:[%s9925_s11 + $0x60] sm:$0xff] }
 0xae3   : > { %v3179_v62 = vmul.f32 0.5, %v3178_v46 }
 0xae4   : > { %v3137_v39 = vpop.xlane.xlu0 %3136 }
 0xae5   : > { %v3180_v38 = vsub.f32 1.5, %v3179_v62  ;;  %v3153_v3 = vmul.f32 %v3137_v39, %v8492_v35  ;;  %v3368_v39 = vld [vmem:[%s9925_s11 + $0x58] sm:$0xff] }
 0xae6   : > { %v7360_v21 = vpop.eup %7359 }
 0xae7   : > { %v3181_v51 = vmul.f32 %v7358_v24, %v3180_v38  ;;  %v3187_v7 = vmul.f32 %v7360_v21, %v3160_v34  ;;  %v3161_v31 = vadd.f32 1e-05, %v3153_v3  ;;  %vm3193_vm11 = vweird.f32 %v7360_v21 }
 0xae8   : > { %vm3194_vm13 = vmor %vm3192_vm12, %vm3193_vm11 }
 0xae9   : > { %v3185_v50 = vsel %vm3184_vm10, %v7358_v24, %v3181_v51  ;;  %v3188_v33 = vmul.f32 %v7360_v21, %v3187_v7  ;;  %7361 = vrsqrt.f32 %v3161_v31  ;;  %vm3202_vm15 = vweird.f32 %v3161_v31 }
 0xaea   : > { %v3247_v63 = vmul.f32 %v3185_v50, %v8503_v58 }
 0xaeb   : > { %v3189_v5 = vmul.f32 0.5, %v3188_v33 }
 0xaec   : > { %v3258_v32 = vmul.f32 %v8560_v4, %v3247_v63 }
 0xaed   : > { %v3190_v49 = vsub.f32 1.5, %v3189_v5  ;;  %v3140_v40 = vpop.xlane.xlu2 %3139 }
 0xaee   : > { %v3154_v48 = vmul.f32 %v3140_v40, %v8492_v35  ;;  %v8581_v19 = vadd.f32 %v8566_v36, %v3258_v32 }
 0xaef   : > { %v7362_v23 = vpop.eup %7361  ;;  %v3191_v30 = vmul.f32 %v7360_v21, %v3190_v49 }
 0xaf0   : > { %v3197_v14 = vmul.f32 %v7362_v23, %v3161_v31  ;;  %v3162_v18 = vadd.f32 1e-05, %v3154_v48  ;;  %6847 = vmatmul.msk.f32.vlgmr.msrb.gmra.mxu3 %vm727_vm0, %v8581_v19  ;;  %vm3203_vm14 = vweird.f32 %v7362_v23 }
 0xaf1   : > { %v3195_v58 = vsel %vm3194_vm13, %v7360_v21, %v3191_v30  ;;  %vm3204_vm4 = vmor %vm3202_vm15, %vm3203_vm14  ;;  %v3366_v30 = vld [vmem:[%s9925_s11 + $0x48] sm:$0xff] }
 0xaf2   : > { %v3198_v16 = vmul.f32 %v7362_v23, %v3197_v14  ;;  %7363 = vrsqrt.f32 %v3162_v18  ;;  %v3248_v27 = vmul.f32 %v3195_v58, %v8509_v13  ;;  %vm3212_vm6 = vweird.f32 %v3162_v18  ;;  %v3364_v14 = vld [vmem:[%s9925_s11 + $0x38] sm:$0xff]  ;;  %v3362_v58 = vld [vmem:[%s9925_s11 + $0x28] sm:$0xff] }
 0xaf4   : > { %v3199_v54 = vmul.f32 0.5, %v3198_v16  ;;  %v3259_v52 = vmul.f32 %v8560_v4, %v3248_v27  ;;  %v3361_v16 = vld [vmem:[%s9925_s11 + $0x20] sm:$0xff]  ;;  %v3360_v27 = vld [vmem:[%s9925_s11 + $0x18] sm:$0xff] }
 0xaf6   : > { %v3200_v60 = vsub.f32 1.5, %v3199_v54  ;;  %v8588_v8 = vadd.f32 %v8566_v36, %v3259_v52  ;;  %v3359_v54 = vld [vmem:[%s9925_s11 + $0x10] sm:$0xff] }
 0xaf8   : > { %v7364_v10 = vpop.eup %7363  ;;  %v3201_v25 = vmul.f32 %v7362_v23, %v3200_v60  ;;  %6848 = vmatmul.msk.f32.gmra.mxu3 %vm727_vm0, %v8588_v8  ;;  %v3358_v60 = vld [vmem:[%s9925_s11 + $0x8] sm:$0xff] }
 0xaf9   : > { %v3207_v26 = vmul.f32 %v7364_v10, %v3162_v18  ;;  %vm3213_vm5 = vweird.f32 %v7364_v10  ;;  %v3363_v18 = vld [vmem:[%s9925_s11 + $0x30] sm:$0xff] }
 0xafa   : > { %v3205_v12 = vsel %vm3204_vm4, %v7362_v23, %v3201_v25  ;;  %vm3214_vm7 = vmor %vm3212_vm6, %vm3213_vm5  ;;  %v3367_v23 = vld [vmem:[%s9925_s11 + $0x50] sm:$0xff]  ;;  %v3357_v25 = vld [vmem:[%s9925_s11] sm:$0xff] }
 0xafb   : > { %v3208_v47 = vmul.f32 %v7364_v10, %v3207_v26  ;;  %v3143_v44 = vpop.xlane.xlu1 %3142  ;;  %v3249_v13 = vmul.f32 %v3205_v12, %v8515_v45 }
 0xafc   : > { %v3155_v42 = vmul.f32 %v3143_v44, %v8492_v35 }
 0xafd   : > { %v3209_v59 = vmul.f32 0.5, %v3208_v47  ;;  %v3260_v20 = vmul.f32 %v8560_v4, %v3249_v13 }
 0xafe   : > { %v3163_v53 = vadd.f32 1e-05, %v3155_v42 }
 0xaff   : > { %v3210_v22 = vsub.f32 1.5, %v3209_v59  ;;  %v8596_v43 = vadd.f32 %v8566_v36, %v3260_v20 }
 0xb00   : > { %7365 = vrsqrt.f32 %v3163_v53  ;;  %vm3222_vm9 = vweird.f32 %v3163_v53 }
 0xb01   : > { %v3211_v1 = vmul.f32 %v7364_v10, %v3210_v22  ;;  %6849 = vmatmul.msk.f32.gmra.mxu3 %vm727_vm0, %v8596_v43 }
 0xb03   : > { %v3215_v11 = vsel %vm3214_vm7, %v7364_v10, %v3211_v1  ;;  %v7212_v1 = vld [vmem:[%s9924_s10] ss:$0 sm:$0xff] }
 0xb04   : > { %v3250_v45 = vmul.f32 %v3215_v11, %v8521_v55  ;;  %v3370_v55 = vld [vmem:[%s9925_s11 + $0x68] sm:$0xff] }
 0xb05   : > { %3379 = vmatpush.msra.mxu3 %v3370_v55 }
 0xb06   : > { %v7366_v9 = vpop.eup %7365  ;;  %v3261_v2 = vmul.f32 %v8560_v4, %v3250_v45 }
 0xb07   : > { %v3217_v0 = vmul.f32 %v7366_v9, %v3163_v53  ;;  %vm3223_vm8 = vweird.f32 %v7366_v9  ;;  %3380 = vmatpush.msra.mxu3 %v3369_v15 }
 0xb08   : > { %v8603_v17 = vadd.f32 %v8566_v36, %v3261_v2  ;;  %vm3224_vm10 = vmor %vm3222_vm9, %vm3223_vm8 }
 0xb09   : > { %v3218_v41 = vmul.f32 %v7366_v9, %v3217_v0  ;;  %3381 = vmatpush.msra.mxu3 %v3368_v39 }
 0xb0a   : > { %6850 = vmatmul.msk.f32.gmra.mxu3 %vm727_vm0, %v8603_v17 }
 0xb0b   : > { %v3219_v61 = vmul.f32 0.5, %v3218_v41  ;;  %v3146_v24 = vpop.xlane.xlu0 %3145  ;;  %3382 = vmatpush.msra.mxu3 %v3367_v23 }
 0xb0c   : > { %v3156_v34 = vmul.f32 %v3146_v24, %v8492_v35 }
 0xb0d   : > { %v3220_v46 = vsub.f32 1.5, %v3219_v61  ;;  %3383 = vmatpush.msra.mxu3 %v3366_v30 }
 0xb0e   : > { %v3164_v62 = vadd.f32 1e-05, %v3156_v34 }
 0xb0f   : > { %v3221_v38 = vmul.f32 %v7366_v9, %v3220_v46 }
 0xb10   : > { %7367 = vrsqrt.f32 %v3164_v62  ;;  %vm3232_vm12 = vweird.f32 %v3164_v62 }
 0xb11   : > { %v3225_v3 = vsel %vm3224_vm10, %v7366_v9, %v3221_v38 }
 0xb12   : > { %v3251_v21 = vmul.f32 %v3225_v3, %v8527_v56 }
 0xb14   : > { %v3262_v51 = vmul.f32 %v8560_v4, %v3251_v21 }
 0xb16   : > { %v7368_v7 = vpop.eup %7367  ;;  %v8626_v31 = vadd.f32 %v8566_v36, %v3262_v51 }
 0xb17   : > { %v3227_v50 = vmul.f32 %v7368_v7, %v3164_v62  ;;  %vm3233_vm11 = vweird.f32 %v7368_v7 }
 0xb18   : > { %6851 = vmatmul.msk.f32.gmra.mxu3 %vm727_vm0, %v8626_v31  ;;  %vm3234_vm13 = vmor %vm3232_vm12, %vm3233_vm11 }
 0xb19   : > { %v3228_v33 = vmul.f32 %v7368_v7, %v3227_v50 }
 0xb1b   : > { %v3229_v63 = vmul.f32 0.5, %v3228_v33  ;;  %v7213_v33 = vld [vmem:[%s9926_s12] ss:$0 sm:$0xff] }
 0xb1d   : > { %v3230_v5 = vsub.f32 1.5, %v3229_v63 }
 0xb1f   : > { %v3231_v32 = vmul.f32 %v7368_v7, %v3230_v5 }
 0xb21   : > { %v3235_v49 = vsel %vm3234_vm13, %v7368_v7, %v3231_v32 }
 0xb22   : > { %v3252_v56 = vmul.f32 %v3235_v49, %v8533_v37  ;;  %v3365_v37 = vld [vmem:[%s9925_s11 + $0x40] sm:$0xff] }
 0xb23   : > { %3384 = vmatpush.msra.mxu3 %v3365_v37 }
 0xb24   : > { %v3263_v40 = vmul.f32 %v8560_v4, %v3252_v56 }
 0xb25   : > { %3385 = vmatpush.msra.mxu3 %v3364_v14 }
 0xb26   : > { %v8633_v48 = vadd.f32 %v8566_v36, %v3263_v40 }
 0xb27   : > { %3386 = vmatpush.msra.mxu3 %v3363_v18 }
 0xb28   : > { %6852 = vmatmul.msk.f32.gmra.mxu3 %vm727_vm0, %v8633_v48 }
 0xb29   : > { %3387 = vmatpush.msra.mxu3 %v3362_v58 }
 0xb2b   : > { %3388 = vmatpush.msra.mxu3 %v3361_v16 }
 0xb2d   : > { %3389 = vmatpush.msra.mxu3 %v3360_v27 }
 0xb2f   : > { %3390 = vmatpush.msra.mxu3 %v3359_v54 }
 0xb31   : > { %3391 = vmatpush.msra.mxu3 %v3358_v60 }
 0xb33   : > { %3392 = vmatpush.msra.mxu3 %v3357_v25 }
 0xb38   : > { %v3149_v52 = vpop.xlane.xlu2 %3148 }
 0xb39   : > { %v3157_v10 = vmul.f32 %v3149_v52, %v8492_v35 }
 0xb3b   : > { %v3165_v26 = vadd.f32 1e-05, %v3157_v10 }
 0xb3d   : > { %7369 = vrsqrt.f32 %v3165_v26  ;;  %vm3242_vm15 = vweird.f32 %v3165_v26 }
 0xb43   : > { %v7370_v12 = vpop.eup %7369 }
 0xb44   : > { %v3237_v47 = vmul.f32 %v7370_v12, %v3165_v26  ;;  %vm3243_vm14 = vweird.f32 %v7370_v12 }
 0xb45   : > { %vm3244_vm4 = vmor %vm3242_vm15, %vm3243_vm14 }
 0xb46   : > { %v3238_v44 = vmul.f32 %v7370_v12, %v3237_v47 }
 0xb48   : > { %v3239_v13 = vmul.f32 0.5, %v3238_v44 }
 0xb4a   : > { %v3240_v42 = vsub.f32 1.5, %v3239_v13 }
 0xb4c   : > { %v3241_v59 = vmul.f32 %v7370_v12, %v3240_v42 }
 0xb4e   : > { %v3245_v20 = vsel %vm3244_vm4, %v7370_v12, %v3241_v59 }
 0xb4f   : > { %v3253_v53 = vmul.f32 %v3245_v20, %v8552_v28 }
 0xb50   : > { %v3325_v45 = vpop.f32.mrf.mxu2 }
 0xb51   : > { %v3264_v22 = vmul.f32 %v8560_v4, %v3253_v53  ;;  %v3326_v9 = vadd.f32 %v7212_v1, %v3325_v45 }
 0xb53   : > { %v8677_v11 = vadd.f32 %v8566_v36, %v3264_v22  ;;  %v3349_v2 = vmax.f32 %v3326_v9, 0.0 }
 0xb55   : > { %6853 = vmatmul.msk.f32.gmra.mxu3 %vm727_vm0, %v8677_v11 }
 0xb5d   : > { %3393 = vmatmul.f32.vlgmr.msra.gmra.mxu3 %v3349_v2 }
 0xb73   : > { %v3328_v0 = vpop.f32.mrf.mxu3 }
 0xb74   : > { %v3329_v6 = vadd.f32 %v7212_v1, %v3328_v0 }
 0xb76   : > { %v3350_v29 = vmax.f32 %v3329_v6, 0.0 }
 0xb78   : > { %3396 = vmatmul.f32.gmra.mxu3 %v3350_v29 }
 0xb7b   : > { %v3331_v28 = vpop.f32.mrf.mxu3 }
 0xb7c   : > { %v3332_v4 = vadd.f32 %v7212_v1, %v3331_v28 }
 0xb7e   : > { %v3351_v41 = vmax.f32 %v3332_v4, 0.0 }
 0xb80   : > { %3399 = vmatmul.f32.gmra.mxu3 %v3351_v41 }
 0xb84   : > { %v3334_v55 = vpop.f32.mrf.mxu3 }
 0xb85   : > { %v3335_v61 = vadd.f32 %v7212_v1, %v3334_v55 }
 0xb87   : > { %v3352_v24 = vmax.f32 %v3335_v61, 0.0 }
 0xb89   : > { %3402 = vmatmul.f32.gmra.mxu3 %v3352_v24 }
 0xb8d   : > { %v3337_v36 = vpop.f32.mrf.mxu3 }
 0xb8e   : > { %v3338_v34 = vadd.f32 %v7212_v1, %v3337_v36 }
 0xb90   : > { %v3353_v15 = vmax.f32 %v3338_v34, 0.0 }
 0xb92   : > { %3405 = vmatmul.f32.gmra.mxu3 %v3353_v15 }
 0xb9b   : > { %v3340_v46 = vpop.f32.mrf.mxu3 }
 0xb9c   : > { %v3341_v62 = vadd.f32 %v7212_v1, %v3340_v46 }
 0xb9e   : > { %v3354_v39 = vmax.f32 %v3341_v62, 0.0 }
 0xba0   : > { %3408 = vmatmul.f32.gmra.mxu3 %v3354_v39 }
 0xbab   : > { %v3343_v38 = vpop.f32.mrf.mxu3 }
 0xbac   : > { %v3344_v3 = vadd.f32 %v7212_v1, %v3343_v38 }
 0xbae   : > { %v3355_v21 = vmax.f32 %v3344_v3, 0.0 }
 0xbb0   : > { %3411 = vmatmul.f32.gmra.mxu3 %v3355_v21 }
 0xbd8   : > { %v3346_v51 = vpop.f32.mrf.mxu3 }
 0xbd9   : > { %v3347_v7 = vadd.f32 %v7212_v1, %v3346_v51 }
 0xbdb   : > { %v3356_v50 = vmax.f32 %v3347_v7, 0.0 }
 0xbdd   : > { %3414 = vmatmul.f32.gmra.mxu3 %v3356_v50 }
 0xbe0   : > { %v3394_v63 = vpop.f32.mrf.mxu3 }
 0xbe1   : > { %v3395_v5 = vadd.f32 %v7213_v33, %v3394_v63 }
 0xbe3   : > { %v3418_v32 = vadd.f32 %v3395_v5, %v8570_v57 }
 0xbe5   : > { %v3428_v49 = vsel %vm727_vm0, %v3418_v32, 0.0 }
 0xbe6   : > { %3429 = vadd.xlane.f32.xlu1 %v3428_v49 }
 0xbfb   : > { %v3397_v56 = vpop.f32.mrf.mxu3 }
 0xbfc   : > { %v3398_v40 = vadd.f32 %v7213_v33, %v3397_v56  ;;  %v6857_v56 = vld [vmem:[%s9917_s3 + $0x38] sm:$0xff] }
 0xbfd   : > { %3672 = vmatpush.msrb.mxu0 %v6857_v56 }
 0xbfe   : > { %v3419_v23 = vadd.f32 %v3398_v40, %v8581_v19  ;;  %v6856_v40 = vld [vmem:[%s9917_s3 + $0x30] sm:$0xff] }
 0xbff   : > { %3673 = vmatpush.msrb.mxu0 %v6856_v40 }
 0xc00   : > { %v3431_v30 = vsel %vm727_vm0, %v3419_v23, 0.0 }
 0xc01   : > { %3432 = vadd.xlane.f32.xlu0 %v3431_v30  ;;  %v6854_v30 = vld [vmem:[%s9917_s3 + $0x20] sm:$0xff] }
 0xc03   : > { %v3400_v37 = vpop.f32.mrf.mxu3 }
 0xc04   : > { %v3401_v14 = vadd.f32 %v7213_v33, %v3400_v37 }
 0xc06   : > { %v3420_v18 = vadd.f32 %v3401_v14, %v8588_v8 }
 0xc08   : > { %v3434_v58 = vsel %vm727_vm0, %v3420_v18, 0.0 }
 0xc09   : > { %3435 = vadd.xlane.f32.xlu2 %v3434_v58 }
 0xc0c   : > { %v3403_v16 = vpop.f32.mrf.mxu3 }
 0xc0d   : > { %v3404_v27 = vadd.f32 %v7213_v33, %v3403_v16 }
 0xc0f   : > { %v3421_v57 = vadd.f32 %v3404_v27, %v8596_v43 }
 0xc11   : > { %v3437_v54 = vsel %vm727_vm0, %v3421_v57, 0.0 }
 0xc12   : > { %3438 = vadd.xlane.f32.xlu1 %v3437_v54 }
 0xc15   : > { %v3406_v52 = vpop.f32.mrf.mxu3 }
 0xc16   : > { %v3407_v60 = vadd.f32 %v7213_v33, %v3406_v52 }
 0xc18   : > { %v3422_v19 = vadd.f32 %v3407_v60, %v8603_v17 }
 0xc1a   : > { %v3440_v10 = vsel %vm727_vm0, %v3422_v19, 0.0 }
 0xc1b   : > { %3441 = vadd.xlane.f32.xlu0 %v3440_v10 }
 0xc23   : > { %v3409_v25 = vpop.f32.mrf.mxu3 }
 0xc24   : > { %v3410_v26 = vadd.f32 %v7213_v33, %v3409_v25 }
 0xc26   : > { %v3423_v8 = vadd.f32 %v3410_v26, %v8626_v31 }
 0xc28   : > { %v3443_v12 = vsel %vm727_vm0, %v3423_v8, 0.0 }
 0xc29   : > { %3444 = vadd.xlane.f32.xlu2 %v3443_v12 }
 0xc33   : > { %v3412_v47 = vpop.f32.mrf.mxu3 }
 0xc34   : > { %v3413_v44 = vadd.f32 %v7213_v33, %v3412_v47 }
 0xc36   : > { %v3424_v43 = vadd.f32 %v3413_v44, %v8633_v48  ;;  %v8770_v44 = vld [vmem:[%s9928_s14] ss:$0 sm:$0xff] }
 0xc38   : > { %v3446_v13 = vsel %vm727_vm0, %v3424_v43, 0.0 }
 0xc39   : > { %3447 = vadd.xlane.f32.xlu0 %v3446_v13 }
 0xc59   : > { %v3430_v42 = vpop.xlane.xlu1 %3429 }
 0xc5a   : > { %v3452_v17 = vmul.f32 %v3430_v42, %v8492_v35 }
 0xc5c   : > { %v8699_v59 = vsub.f32 %v3418_v32, %v3452_v17 }
 0xc5e   : > { %v3468_v20 = vmul.f32 %v8699_v59, %v8699_v59 }
 0xc60   : > { %v3415_v53 = vpop.f32.mrf.mxu3  ;;  %v3476_v31 = vsel %vm727_vm0, %v3468_v20, 0.0 }
 0xc61   : > { %v3416_v22 = vadd.f32 %v7213_v33, %v3415_v53  ;;  %3477 = vadd.xlane.f32.xlu1 %v3476_v31 }
 0xc63   : > { %v3425_v1 = vadd.f32 %v3416_v22, %v8677_v11 }
 0xc65   : > { %v3449_v48 = vsel %vm727_vm0, %v3425_v1, 0.0 }
 0xc69   : > { %3450 = vadd.xlane.f32.xlu1 %v3449_v48 }
 0xc74   : > { %v3433_v45 = vpop.xlane.xlu0 %3432 }
 0xc75   : > { %v3453_v9 = vmul.f32 %v3433_v45, %v8492_v35 }
 0xc77   : > { %v8707_v2 = vsub.f32 %v3419_v23, %v3453_v9  ;;  %v6855_v23 = vld [vmem:[%s9917_s3 + $0x28] sm:$0xff] }
 0xc78   : > { %3674 = vmatpush.msrb.mxu0 %v6855_v23 }
 0xc79   : > { %v3469_v0 = vmul.f32 %v8707_v2, %v8707_v2 }
 0xc7a   : > { %3675 = vmatpush.msrb.mxu0 %v6854_v30 }
 0xc7b   : > { %v3479_v6 = vsel %vm727_vm0, %v3469_v0, 0.0 }
 0xc7c   : > { %v3436_v29 = vpop.xlane.xlu2 %3435  ;;  %3480 = vadd.xlane.f32.xlu2 %v3479_v6 }
 0xc7d   : > { %v3454_v28 = vmul.f32 %v3436_v29, %v8492_v35 }
 0xc7f   : > { %v8713_v4 = vsub.f32 %v3420_v18, %v3454_v28 }
 0xc81   : > { %v3470_v11 = vmul.f32 %v8713_v4, %v8713_v4 }
 0xc83   : > { %v3482_v41 = vsel %vm727_vm0, %v3470_v11, 0.0 }
 0xc84   : > { %3483 = vadd.xlane.f32.xlu0 %v3482_v41 }
 0xc85   : > { %v3439_v55 = vpop.xlane.xlu1 %3438 }
 0xc86   : > { %v3455_v61 = vmul.f32 %v3439_v55, %v8492_v35 }
 0xc88   : > { %v8719_v24 = vsub.f32 %v3421_v57, %v3455_v61 }
 0xc8a   : > { %v3471_v36 = vmul.f32 %v8719_v24, %v8719_v24 }
 0xc8c   : > { %v3485_v34 = vsel %vm727_vm0, %v3471_v36, 0.0 }
 0xc8d   : > { %3486 = vadd.xlane.f32.xlu2 %v3485_v34 }
 0xc8e   : > { %v3442_v15 = vpop.xlane.xlu0 %3441 }
 0xc8f   : > { %v3456_v46 = vmul.f32 %v3442_v15, %v8492_v35 }
 0xc91   : > { %v8725_v62 = vsub.f32 %v3422_v19, %v3456_v46 }
 0xc93   : > { %v3472_v39 = vmul.f32 %v8725_v62, %v8725_v62 }
 0xc95   : > { %v3488_v38 = vsel %vm727_vm0, %v3472_v39, 0.0 }
 0xc96   : > { %3489 = vadd.xlane.f32.xlu1 %v3488_v38 }
 0xc9c   : > { %v3445_v3 = vpop.xlane.xlu2 %3444 }
 0xc9d   : > { %v3457_v21 = vmul.f32 %v3445_v3, %v8492_v35 }
 0xc9f   : > { %v8731_v51 = vsub.f32 %v3423_v8, %v3457_v21  ;;  %v8764_v8 = vld [vmem:[%s9927_s13] ss:$0 sm:$0xff] }
 0xca1   : > { %v3473_v7 = vmul.f32 %v8731_v51, %v8731_v51 }
 0xca3   : > { %v3491_v50 = vsel %vm727_vm0, %v3473_v7, 0.0 }
 0xca4   : > { %3492 = vadd.xlane.f32.xlu0 %v3491_v50 }
 0xcac   : > { %v3448_v33 = vpop.xlane.xlu0 %3447 }
 0xcad   : > { %v3458_v63 = vmul.f32 %v3448_v33, %v8492_v35 }
 0xcaf   : > { %v8737_v5 = vsub.f32 %v3424_v43, %v3458_v63 }
 0xcb1   : > { %v3474_v32 = vmul.f32 %v8737_v5, %v8737_v5 }
 0xcb3   : > { %v3494_v49 = vsel %vm727_vm0, %v3474_v32, 0.0 }
 0xcb4   : > { %3495 = vadd.xlane.f32.xlu2 %v3494_v49 }
 0xcd4   : > { %v3478_v37 = vpop.xlane.xlu1 %3477 }
 0xcd5   : > { %v3500_v14 = vmul.f32 %v3478_v37, %v8492_v35 }
 0xcd7   : > { %v3508_v18 = vadd.f32 1e-05, %v3500_v14 }
 0xcd9   : > { %7371 = vrsqrt.f32 %v3508_v18  ;;  %vm3522_vm6 = vweird.f32 %v3508_v18 }
 0xcdc   : > { %v3451_v58 = vpop.xlane.xlu1 %3450 }
 0xcdd   : > { %v3459_v16 = vmul.f32 %v3451_v58, %v8492_v35 }
 0xcdf   : > { %v7372_v27 = vpop.eup %7371  ;;  %v8756_v57 = vsub.f32 %v3425_v1, %v3459_v16 }
 0xce0   : > { %v3517_v54 = vmul.f32 %v7372_v27, %v3508_v18  ;;  %vm3523_vm5 = vweird.f32 %v7372_v27 }
 0xce1   : > { %v3475_v52 = vmul.f32 %v8756_v57, %v8756_v57  ;;  %vm3524_vm7 = vmor %vm3522_vm6, %vm3523_vm5 }
 0xce2   : > { %v3518_v60 = vmul.f32 %v7372_v27, %v3517_v54 }
 0xce3   : > { %v3497_v19 = vsel %vm727_vm0, %v3475_v52, 0.0 }
 0xce4   : > { %v3519_v10 = vmul.f32 0.5, %v3518_v60  ;;  %3498 = vadd.xlane.f32.xlu1 %v3497_v19 }
 0xce6   : > { %v3520_v25 = vsub.f32 1.5, %v3519_v10 }
 0xce8   : > { %v3521_v26 = vmul.f32 %v7372_v27, %v3520_v25 }
 0xcea   : > { %v3525_v12 = vsel %vm3524_vm7, %v7372_v27, %v3521_v26 }
 0xceb   : > { %v3596_v47 = vmul.f32 %v3525_v12, %v8699_v59 }
 0xced   : > { %v3607_v43 = vmul.f32 %v8764_v8, %v3596_v47 }
 0xcef   : > { %v3481_v13 = vpop.xlane.xlu2 %3480  ;;  %v8774_v42 = vadd.f32 %v8770_v44, %v3607_v43 }
 0xcf0   : > { %v3501_v17 = vmul.f32 %v3481_v13, %v8492_v35 }
 0xcf1   : > { %6859 = vmatmul.msk.f32.vlgmr.msrb.gmra.mxu0 %vm727_vm0, %v8774_v42 }
 0xcf2   : > { %v3509_v20 = vadd.f32 1e-05, %v3501_v17 }
 0xcf4   : > { %7373 = vrsqrt.f32 %v3509_v20  ;;  %vm3532_vm9 = vweird.f32 %v3509_v20 }
 0xcf7   : > { %v3484_v53 = vpop.xlane.xlu0 %3483 }
 0xcf8   : > { %v3502_v59 = vmul.f32 %v3484_v53, %v8492_v35 }
 0xcfa   : > { %v7374_v31 = vpop.eup %7373  ;;  %v3510_v22 = vadd.f32 1e-05, %v3502_v59 }
 0xcfb   : > { %v3527_v1 = vmul.f32 %v7374_v31, %v3509_v20  ;;  %vm3533_vm8 = vweird.f32 %v7374_v31 }
 0xcfc   : > { %7375 = vrsqrt.f32 %v3510_v22  ;;  %vm3534_vm10 = vmor %vm3532_vm9, %vm3533_vm8  ;;  %vm3542_vm12 = vweird.f32 %v3510_v22 }
 0xcfd   : > { %v3528_v48 = vmul.f32 %v7374_v31, %v3527_v1 }
 0xcff   : > { %v3529_v45 = vmul.f32 0.5, %v3528_v48 }
 0xd00   : > { %v3487_v9 = vpop.xlane.xlu2 %3486 }
 0xd01   : > { %v3530_v0 = vsub.f32 1.5, %v3529_v45  ;;  %v3503_v6 = vmul.f32 %v3487_v9, %v8492_v35 }
 0xd02   : > { %v7376_v29 = vpop.eup %7375 }
 0xd03   : > { %v3531_v28 = vmul.f32 %v7374_v31, %v3530_v0  ;;  %v3537_v11 = vmul.f32 %v7376_v29, %v3510_v22  ;;  %v3511_v41 = vadd.f32 1e-05, %v3503_v6  ;;  %vm3543_vm11 = vweird.f32 %v7376_v29 }
 0xd04   : > { %vm3544_vm13 = vmor %vm3542_vm12, %vm3543_vm11 }
 0xd05   : > { %v3538_v55 = vmul.f32 %v7376_v29, %v3537_v11  ;;  %7377 = vrsqrt.f32 %v3511_v41  ;;  %v3535_v61 = vsel %vm3534_vm10, %v7374_v31, %v3531_v28  ;;  %vm3552_vm15 = vweird.f32 %v3511_v41 }
 0xd06   : > { %v3597_v36 = vmul.f32 %v3535_v61, %v8707_v2 }
 0xd07   : > { %v3539_v34 = vmul.f32 0.5, %v3538_v55 }
 0xd08   : > { %v3608_v15 = vmul.f32 %v8764_v8, %v3597_v36 }
 0xd09   : > { %v3540_v46 = vsub.f32 1.5, %v3539_v34  ;;  %v3490_v39 = vpop.xlane.xlu1 %3489 }
 0xd0a   : > { %v3504_v38 = vmul.f32 %v3490_v39, %v8492_v35  ;;  %v8785_v3 = vadd.f32 %v8770_v44, %v3608_v15 }
 0xd0b   : > { %v7378_v21 = vpop.eup %7377  ;;  %v3541_v7 = vmul.f32 %v7376_v29, %v3540_v46 }
 0xd0c   : > { %v3547_v50 = vmul.f32 %v7378_v21, %v3511_v41  ;;  %v3512_v33 = vadd.f32 1e-05, %v3504_v38  ;;  %6860 = vmatmul.msk.f32.gmra.mxu0 %vm727_vm0, %v8785_v3  ;;  %vm3553_vm14 = vweird.f32 %v7378_v21 }
 0xd0d   : > { %v3545_v2 = vsel %vm3544_vm13, %v7376_v29, %v3541_v7  ;;  %vm3554_vm4 = vmor %vm3552_vm15, %vm3553_vm14 }
 0xd0e   : > { %v3548_v63 = vmul.f32 %v7378_v21, %v3547_v50  ;;  %7379 = vrsqrt.f32 %v3512_v33  ;;  %v3598_v32 = vmul.f32 %v3545_v2, %v8713_v4  ;;  %vm3562_vm6 = vweird.f32 %v3512_v33 }
 0xd10   : > { %v3549_v49 = vmul.f32 0.5, %v3548_v63  ;;  %v3609_v56 = vmul.f32 %v8764_v8, %v3598_v32 }
 0xd12   : > { %v3550_v40 = vsub.f32 1.5, %v3549_v49  ;;  %v8792_v23 = vadd.f32 %v8770_v44, %v3609_v56 }
 0xd14   : > { %v7380_v30 = vpop.eup %7379  ;;  %v3551_v37 = vmul.f32 %v7378_v21, %v3550_v40  ;;  %6861 = vmatmul.msk.f32.gmra.mxu0 %vm727_vm0, %v8792_v23 }
 0xd15   : > { %v3557_v14 = vmul.f32 %v7380_v30, %v3512_v33  ;;  %vm3563_vm5 = vweird.f32 %v7380_v30  ;;  %v7216_v33 = vld [vmem:[%s9918_s4 + $0x1] ss:$0 sm:$0xff] }
 0xd16   : > { %v3555_v18 = vsel %vm3554_vm4, %v7378_v21, %v3551_v37  ;;  %vm3564_vm7 = vmor %vm3562_vm6, %vm3563_vm5 }
 0xd17   : > { %v3558_v58 = vmul.f32 %v7380_v30, %v3557_v14  ;;  %v3493_v16 = vpop.xlane.xlu0 %3492  ;;  %v3599_v4 = vmul.f32 %v3555_v18, %v8719_v24 }
 0xd18   : > { %v3505_v27 = vmul.f32 %v3493_v16, %v8492_v35 }
 0xd19   : > { %v3559_v54 = vmul.f32 0.5, %v3558_v58  ;;  %v3610_v52 = vmul.f32 %v8764_v8, %v3599_v4 }
 0xd1a   : > { %v3513_v60 = vadd.f32 1e-05, %v3505_v27 }
 0xd1b   : > { %v3560_v19 = vsub.f32 1.5, %v3559_v54  ;;  %v8800_v10 = vadd.f32 %v8770_v44, %v3610_v52 }
 0xd1c   : > { %7381 = vrsqrt.f32 %v3513_v60  ;;  %vm3572_vm9 = vweird.f32 %v3513_v60 }
 0xd1d   : > { %v3561_v25 = vmul.f32 %v7380_v30, %v3560_v19  ;;  %6862 = vmatmul.msk.f32.gmra.mxu0 %vm727_vm0, %v8800_v10 }
 0xd1f   : > { %v3565_v26 = vsel %vm3564_vm7, %v7380_v30, %v3561_v25 }
 0xd20   : > { %v3600_v24 = vmul.f32 %v3565_v26, %v8725_v62 }
 0xd22   : > { %v7382_v12 = vpop.eup %7381  ;;  %v3611_v47 = vmul.f32 %v8764_v8, %v3600_v24 }
 0xd23   : > { %v3567_v43 = vmul.f32 %v7382_v12, %v3513_v60  ;;  %vm3573_vm8 = vweird.f32 %v7382_v12 }
 0xd24   : > { %v8807_v13 = vadd.f32 %v8770_v44, %v3611_v47  ;;  %vm3574_vm10 = vmor %vm3572_vm9, %vm3573_vm8 }
 0xd25   : > { %v3568_v17 = vmul.f32 %v7382_v12, %v3567_v43 }
 0xd26   : > { %6863 = vmatmul.msk.f32.gmra.mxu0 %vm727_vm0, %v8807_v13 }
 0xd27   : > { %v3569_v20 = vmul.f32 0.5, %v3568_v17  ;;  %v3496_v53 = vpop.xlane.xlu2 %3495 }
 0xd28   : > { %v3506_v59 = vmul.f32 %v3496_v53, %v8492_v35 }
 0xd29   : > { %v3570_v31 = vsub.f32 1.5, %v3569_v20 }
 0xd2a   : > { %v3514_v22 = vadd.f32 1e-05, %v3506_v59 }
 0xd2b   : > { %v3571_v1 = vmul.f32 %v7382_v12, %v3570_v31 }
 0xd2c   : > { %7383 = vrsqrt.f32 %v3514_v22  ;;  %vm3582_vm12 = vweird.f32 %v3514_v22 }
 0xd2d   : > { %v3575_v62 = vsel %vm3574_vm10, %v7382_v12, %v3571_v1 }
 0xd2e   : > { %v3601_v48 = vmul.f32 %v3575_v62, %v8731_v51 }
 0xd30   : > { %v3612_v45 = vmul.f32 %v8764_v8, %v3601_v48 }
 0xd32   : > { %v7384_v9 = vpop.eup %7383  ;;  %v8815_v0 = vadd.f32 %v8770_v44, %v3612_v45 }
 0xd33   : > { %v3577_v6 = vmul.f32 %v7384_v9, %v3514_v22  ;;  %vm3583_vm11 = vweird.f32 %v7384_v9 }
 0xd34   : > { %6864 = vmatmul.msk.f32.gmra.mxu0 %vm727_vm0, %v8815_v0  ;;  %vm3584_vm13 = vmor %vm3582_vm12, %vm3583_vm11 }
 0xd35   : > { %v3578_v29 = vmul.f32 %v7384_v9, %v3577_v6 }
 0xd37   : > { %v3579_v28 = vmul.f32 0.5, %v3578_v29 }
 0xd39   : > { %v3580_v11 = vsub.f32 1.5, %v3579_v28 }
 0xd3b   : > { %v3581_v41 = vmul.f32 %v7384_v9, %v3580_v11 }
 0xd3d   : > { %v3585_v55 = vsel %vm3584_vm13, %v7384_v9, %v3581_v41 }
 0xd3e   : > { %v3602_v51 = vmul.f32 %v3585_v55, %v8737_v5 }
 0xd40   : > { %v3613_v61 = vmul.f32 %v8764_v8, %v3602_v51 }
 0xd42   : > { %v8822_v36 = vadd.f32 %v8770_v44, %v3613_v61 }
 0xd44   : > { %6865 = vmatmul.msk.f32.gmra.mxu0 %vm727_vm0, %v8822_v36 }
 0xd57   : > { %v3499_v34 = vpop.xlane.xlu1 %3498 }
 0xd58   : > { %v3507_v15 = vmul.f32 %v3499_v34, %v8492_v35 }
 0xd5a   : > { %v3515_v46 = vadd.f32 1e-05, %v3507_v15 }
 0xd5c   : > { %7385 = vrsqrt.f32 %v3515_v46  ;;  %vm3592_vm15 = vweird.f32 %v3515_v46 }
 0xd62   : > { %v7386_v39 = vpop.eup %7385 }
 0xd63   : > { %v3587_v38 = vmul.f32 %v7386_v39, %v3515_v46  ;;  %vm3593_vm14 = vweird.f32 %v7386_v39 }
 0xd64   : > { %vm3594_vm4 = vmor %vm3592_vm15, %vm3593_vm14 }
 0xd65   : > { %v3588_v21 = vmul.f32 %v7386_v39, %v3587_v38 }
 0xd67   : > { %v3589_v7 = vmul.f32 0.5, %v3588_v21 }
 0xd69   : > { %v3590_v50 = vsub.f32 1.5, %v3589_v7 }
 0xd6b   : > { %v3591_v5 = vmul.f32 %v7386_v39, %v3590_v50 }
 0xd6d   : > { %v3595_v2 = vsel %vm3594_vm4, %v7386_v39, %v3591_v5 }
 0xd6e   : > { %v3603_v63 = vmul.f32 %v3595_v2, %v8756_v57  ;;  %v3677_v32 = vpop.f32.mrf.mxu0 }
 0xd6f   : > { %v8831_v49 = vadd.f32 %v7216_v33, %v3677_v32 }
 0xd70   : > { %v3614_v56 = vmul.f32 %v8764_v8, %v3603_v63 }
 0xd71   : > { %3702 = vrot.lane.b32.xlu0 %v8831_v49, %s7562_s23 }
 0xd72   : > { %v8837_v40 = vadd.f32 %v8770_v44, %v3614_v56 }
 0xd74   : > { %6866 = vmatmul.msk.f32.gmra.mxu0 %vm727_vm0, %v8837_v40 }
 0xd89   : > { %v3680_v30 = vpop.f32.mrf.mxu0 }
 0xd8a   : > { %v8841_v37 = vadd.f32 %v7216_v33, %v3680_v30 }
 0xd8c   : > { %3729 = vrot.lane.b32.xlu2 %v8841_v37, %s7562_s23 }
 0xd91   : > { %v3683_v57 = vpop.f32.mrf.mxu0 }
 0xd92   : > { %v8845_v14 = vadd.f32 %v7216_v33, %v3683_v57 }
 0xd94   : > { %3756 = vrot.lane.b32.xlu1 %v8845_v14, %s7562_s23  ;;  %v8873_v60 = vpack.i.bf16 %v8831_v49, %v8845_v14 }
 0xd9a   : > { %v3686_v8 = vpop.f32.mrf.mxu0 }
 0xd9b   : > { %v8849_v18 = vadd.f32 %v7216_v33, %v3686_v8 }
 0xd9d   : > { %3783 = vrot.lane.b32.xlu0 %v8849_v18, %s7562_s23 }
 0xda3   : > { %v3689_v44 = vpop.f32.mrf.mxu0 }
 0xda4   : > { %v8853_v58 = vadd.f32 %v7216_v33, %v3689_v44 }
 0xda6   : > { %3810 = vrot.lane.b32.xlu2 %v8853_v58, %s7562_s23  ;;  %v8879_v19 = vpack.i.bf16 %v8853_v58, %v8841_v37 }
 0xdb1   : > { %v3692_v16 = vpop.f32.mrf.mxu0 }
 0xdb2   : > { %v8857_v4 = vadd.f32 %v7216_v33, %v3692_v16 }
 0xdb4   : > { %3837 = vrot.lane.b32.xlu2 %v8857_v4, %s7562_s23 }
 0xdc1   : > { %v3695_v27 = vpop.f32.mrf.mxu0 }
 0xdc2   : > { %v8861_v54 = vadd.f32 %v7216_v33, %v3695_v27 }
 0xdc4   : > { %3864 = vrot.lane.b32.xlu0 %v8861_v54, %s7562_s23  ;;  %v8867_v52 = vpack.i.bf16 %v8861_v54, %v8849_v18 }
 0xdc6   : > { %7134 = vrot.lane.b32.xlu2 %v8867_v52, %s7563_s26 }
 0xdcc   : > { %7129 = vrot.lane.b32.xlu0 %v8873_v60, %s7563_s26 }
 0xdce   : > { %7139 = vrot.lane.b32.xlu2 %v8879_v19, %s7563_s26 }
 0xdd4   : > { %4297 = vrot.lane.b32.xlu0 %v8849_v18, %s9961_s27 }
 0xdd6   : > { %4269 = vrot.lane.b32.xlu2 %v8845_v14, %s9961_s27 }
 0xdde   : > { %4299 = vrot.lane.b32.xlu2 %v8849_v18, %s9962_s28 }
 0xde3   : > { %v3703_v25 = vpop.permute.xlu0 %3702 }
 0xde4   : > { %6867 = vmatpush.xpose.msk.msrb.mxu1 %vm796_vm1, %v3703_v25 }
 0xde6   : > { %v3730_v26 = vpop.permute.xlu2 %3729  ;;  %4213 = vrot.lane.b32.xlu2 %v8831_v49, %s9961_s27 }
 0xde7   : > { %6868 = vmatmul.msk.f32.vlgmr.msrb.gmra.mxu1 %vm796_vm1, %v8831_v49  ;;  %6869 = vmatpush.xpose.msk.msrb.mxu2 %vm796_vm1, %v3730_v26 }
 0xdea   : > { %6870 = vmatmul.msk.f32.vlgmr.msrb.gmra.mxu2 %vm796_vm1, %v8841_v37 }
 0xdee   : > { %4243 = vrot.lane.b32.xlu2 %v8841_v37, %s9962_s28 }
 0xdf1   : > { %v3698_v24 = vpop.f32.mrf.mxu0 }
 0xdf2   : > { %v8899_v12 = vadd.f32 %v7216_v33, %v3698_v24 }
 0xdf4   : > { %3891 = vrot.lane.b32.xlu1 %v8899_v12, %s7562_s23  ;;  %v8927_v31 = vpack.i.bf16 %v8857_v4, %v8899_v12  ;;  %s9963_s23 = smov 80  }
 0xdfc   : > { %4271 = vrot.lane.b32.xlu1 %v8845_v14, %s9962_s28 }
 0xe00   : > { %v3811_v47 = vpop.permute.xlu2 %3810 }
 0xe01   : > { %6875 = vmatpush.xpose.msk.msra.mxu2 %vm796_vm1, %v3811_v47 }
 0xe04   : > { %6876 = vmatmul.msk.f32.vlgmr.msra.gmra.mxu2 %vm796_vm1, %v8853_v58  ;;  %4215 = vrot.lane.b32.xlu1 %v8831_v49, %s9962_s28 }
 0xe06   : > { %v3757_v43 = vpop.permute.xlu1 %3756 }
 0xe07   : > { %6871 = vmatpush.xpose.msk.msra.mxu0 %vm796_vm1, %v3757_v43 }
 0xe0a   : > { %6872 = vmatmul.msk.f32.vlgmr.msra.gmra.mxu0 %vm796_vm1, %v8845_v14 }
 0xe0c   : > { %4383 = vrot.lane.b32.xlu1 %v8861_v54, %s9962_s28 }
 0xe0e   : > { %v3838_v17 = vpop.permute.xlu2 %3837 }
 0xe0f   : > { %v3784_v20 = vpop.permute.xlu0 %3783  ;;  %6877 = vmatpush.xpose.msk.msrb.mxu0 %vm796_vm1, %v3838_v17 }
 0xe10   : > { %6873 = vmatpush.xpose.msk.msra.mxu1 %vm796_vm1, %v3784_v20 }
 0xe12   : > { %6878 = vmatmul.msk.f32.vlgmr.msrb.gmra.mxu0 %vm796_vm1, %v8857_v4 }
 0xe13   : > { %6874 = vmatmul.msk.f32.vlgmr.msra.gmra.mxu1 %vm796_vm1, %v8849_v18 }
 0xe14   : > { %4381 = vrot.lane.b32.xlu1 %v8861_v54, %s9961_s27 }
 0xe1c   : > { %4327 = vrot.lane.b32.xlu1 %v8853_v58, %s9962_s28 }
 0xe20   : > { %v7135_v53 = vpop.permute.xlu2 %7134 }
 0xe21   : > { %v7136_v59 = vunpack.i.l.bf16 %v7135_v53  ;;  %v7137_v41 = vunpack.i.h.bf16 %v7135_v53 }
 0xe23   : > { %4104 = vmatpush.msrb.mxu3 %v7136_v59 }
 0xe24   : > { %7144 = vrot.lane.b32.xlu1 %v8927_v31, %s7563_s26  ;;  %s9964_s26 = smov 56  }
 0xe28   : > { %v7140_v22 = vpop.permute.xlu2 %7139 }
 0xe29   : > { %v7141_v1 = vunpack.i.l.bf16 %v7140_v22  ;;  %v7142_v9 = vunpack.i.h.bf16 %v7140_v22 }
 0xe30   : > { %v8961_v16 = vpop.permute.xlu2 %4269 }
 0xe36   : > { %v3865_v62 = vpop.permute.xlu0 %3864 }
 0xe37   : > { %6879 = vmatpush.xpose.msk.msrb.mxu1 %vm796_vm1, %v3865_v62 }
 0xe38   : > { %v8963_v24 = vpop.permute.xlu2 %4299 }
 0xe3a   : > { %6880 = vmatmul.msk.f32.vlgmr.msrb.gmra.mxu1 %vm796_vm1, %v8861_v54 }
 0xe3b   : > { %4052 = vmatpush.msra.mxu1 %v7141_v1 }
 0xe3e   : > { %v7130_v48 = vpop.permute.xlu0 %7129 }
 0xe3f   : > { %v7132_v45 = vunpack.i.h.bf16 %v7130_v48  ;;  %v7131_v28 = vunpack.i.l.bf16 %v7130_v48 }
 0xe40   : > { %v8970_v53 = vpop.permute.xlu2 %4213 }
 0xe41   : > { %4026 = vmatpush.msra.mxu0 %v7132_v45 }
 0xe43   : > { %4130 = vmatpush.msrb.mxu0 %v7142_v9 }
 0xe46   : > { %v8972_v59 = vpop.permute.xlu0 %4297 }
 0xe48   : > { %v4244_v1 = vpop.permute.xlu2 %4243 }
 0xe64   : > { %v8934_v6 = vpop.f32.mrf.mxu1 }
 0xe65   : > { %v3917_v29 = vsel %vm796_vm1, %v8934_v6, -inf }
 0xe66   : > { %3918 = vmax.xlane.f32.xlu1 %v3917_v29  ;;  %v3892_v11 = vpop.permute.xlu1 %3891 }
 0xe67   : > { %6881 = vmatpush.xpose.msk.msrb.mxu2 %vm796_vm1, %v3892_v11 }
 0xe6a   : > { %6882 = vmatmul.msk.f32.vlgmr.msrb.gmra.mxu2 %vm796_vm1, %v8899_v12 }
 0xe6b   : > { %4078 = vmatpush.msra.mxu2 %v7131_v28 }
 0xe6d   : > { %4182 = vmatpush.msrb.mxu2 %v7137_v41  ;;  %v3752_v55 = vpop.f32.mrf.mxu2 }
 0xe6e   : > { %v8941_v51 = vpop.permute.xlu1 %4271  ;;  %v3920_v61 = vsel %vm796_vm1, %v3752_v55, -inf }
 0xe6f   : > { %3921 = vmax.xlane.f32.xlu1 %v3920_v61 }
 0xe76   : > { %v8944_v34 = vpop.permute.xlu1 %4215 }
 0xe7e   : > { %v8946_v15 = vpop.permute.xlu1 %4383 }
 0xe86   : > { %v8948_v46 = vpop.permute.xlu1 %4381 }
 0xe87   : > { %v3779_v39 = vpop.f32.mrf.mxu0  ;;  %v3833_v2 = vpop.f32.mrf.mxu2 }
 0xe88   : > { %v3923_v38 = vsel %vm796_vm1, %v3779_v39, -inf  ;;  %v3929_v30 = vsel %vm796_vm1, %v3833_v2, -inf }
 0xe89   : > { %3924 = vmax.xlane.f32.xlu0 %v3923_v38 }
 0xe8e   : > { %v8951_v21 = vpop.permute.xlu1 %4327 }
 0xe8f   : > { %v3860_v7 = vpop.f32.mrf.mxu0 }
 0xe90   : > { %v3806_v50 = vpop.f32.mrf.mxu1  ;;  %v3932_v5 = vsel %vm796_vm1, %v3860_v7, -inf }
 0xe91   : > { %3933 = vmax.xlane.f32.xlu1 %v3932_v5  ;;  %v3926_v33 = vsel %vm796_vm1, %v3806_v50, -inf }
 0xe92   : > { %3927 = vmax.xlane.f32.xlu2 %v3926_v33 }
 0xe96   : > { %v7145_v63 = vpop.permute.xlu1 %7144 }
 0xe97   : > { %v7147_v32 = vunpack.i.h.bf16 %v7145_v63  ;;  %v7146_v56 = vunpack.i.l.bf16 %v7145_v63 }
 0xe99   : > { %4156 = vmatpush.msrb.mxu1 %v7147_v32  ;;  %4208 = vmatpush.msra.mxu3 %v7146_v56 }
 0xe9a   : > { %3930 = vmax.xlane.f32.xlu2 %v3929_v30 }
 0xeaa   : > { %4325 = vrot.lane.b32.xlu1 %v8853_v58, %s9961_s27 }
 0xeb2   : > { %4411 = vrot.lane.b32.xlu2 %v8899_v12, %s9962_s28 }
 0xeb7   : > { %v3887_v57 = vpop.f32.mrf.mxu1 }
 0xeb8   : > { %v3935_v8 = vsel %vm796_vm1, %v3887_v57, -inf }
 0xeb9   : > { %3936 = vmax.xlane.f32.xlu0 %v3935_v8 }
 0xed9   : > { %v3919_v44 = vpop.xlane.xlu1 %3918 }
 0xeda   : > { %v3941_v33 = vsub.f32 %v8934_v6, %v3919_v44 }
 0xedc   : > { %v3949_v63 = vmul.f32 1.442695, %v3941_v33 }
 0xee2   : > { %v3922_v27 = vpop.xlane.xlu1 %3921 }
 0xee3   : > { %v3942_v25 = vsub.f32 %v3752_v55, %v3922_v27 }
 0xee5   : > { %v3951_v26 = vmul.f32 1.442695, %v3942_v25 }
 0xee7   : > { %7387 = vpow2.f32 %v3951_v26 }
 0xeed   : > { %v8965_v47 = vpop.eup %7387  ;;  %v3914_v43 = vpop.f32.mrf.mxu2 }
 0xeee   : > { %v3938_v17 = vsel %vm796_vm1, %v3914_v43, -inf  ;;  %v3968_v20 = vsel %vm796_vm1, %v8965_v47, 0.0 }
 0xeef   : > { %3939 = vmax.xlane.f32.xlu0 %v3938_v17  ;;  %3969 = vadd.xlane.f32.xlu1 %v3968_v20 }
 0xefc   : > { %v3925_v22 = vpop.xlane.xlu0 %3924 }
 0xefd   : > { %v3943_v62 = vsub.f32 %v3779_v39, %v3925_v22 }
 0xeff   : > { %v3953_v48 = vmul.f32 1.442695, %v3943_v62 }
 0xf01   : > { %7389 = vpow2.f32 %v3953_v48 }
 0xf03   : > { %4241 = vrot.lane.b32.xlu0 %v8841_v37, %s9961_s27 }
 0xf04   : > { %v3934_v32 = vpop.xlane.xlu1 %3933 }
 0xf05   : > { %v3928_v45 = vpop.xlane.xlu2 %3927 }
 0xf06   : > { %v3944_v9 = vsub.f32 %v3806_v50, %v3928_v45 }
 0xf07   : > { %v8976_v29 = vpop.eup %7389 }
 0xf08   : > { %v3955_v28 = vmul.f32 1.442695, %v3944_v9  ;;  %v3971_v11 = vsel %vm796_vm1, %v8976_v29, 0.0 }
 0xf09   : > { %3972 = vadd.xlane.f32.xlu2 %v3971_v11 }
 0xf0a   : > { %7391 = vpow2.f32 %v3955_v28 }
 0xf0d   : > { %v3931_v41 = vpop.xlane.xlu2 %3930 }
 0xf0e   : > { %v3945_v55 = vsub.f32 %v3833_v2, %v3931_v41  ;;  %v3946_v2 = vsub.f32 %v3860_v7, %v3934_v32 }
 0xf10   : > { %v8980_v61 = vpop.eup %7391  ;;  %v3957_v39 = vmul.f32 1.442695, %v3945_v55  ;;  %v3959_v56 = vmul.f32 1.442695, %v3946_v2 }
 0xf11   : > { %v3974_v38 = vsel %vm796_vm1, %v8980_v61, 0.0 }
 0xf12   : > { %7393 = vpow2.f32 %v3957_v39  ;;  %3975 = vadd.xlane.f32.xlu1 %v3974_v38 }
 0xf13   : > { %7395 = vpow2.f32 %v3949_v63 }
 0xf14   : > { %7397 = vpow2.f32 %v3959_v56 }
 0xf18   : > { %v8984_v5 = vpop.eup %7393 }
 0xf19   : > { %v3977_v50 = vsel %vm796_vm1, %v8984_v5, 0.0  ;;  %v7396_v30 = vpop.eup %7395 }
 0xf1a   : > { %3978 = vadd.xlane.f32.xlu2 %v3977_v50  ;;  %v3965_v27 = vsel %vm796_vm1, %v7396_v30, 0.0  ;;  %v8990_v17 = vpop.eup %7397 }
 0xf1b   : > { %v3980_v20 = vsel %vm796_vm1, %v8990_v17, 0.0 }
 0xf2c   : > { %v3937_v8 = vpop.xlane.xlu0 %3936 }
 0xf2d   : > { %v3947_v25 = vsub.f32 %v3887_v57, %v3937_v8  ;;  %3966 = vadd.xlane.f32.xlu0 %v3965_v27  ;;  %v9008_v57 = vpop.permute.xlu1 %4325 }
 0xf2f   : > { %v3961_v26 = vmul.f32 1.442695, %v3947_v25 }
 0xf31   : > { %7399 = vpow2.f32 %v3961_v26 }
 0xf35   : > { %3981 = vadd.xlane.f32.xlu0 %v3980_v20 }
 0xf37   : > { %v8994_v6 = vpop.eup %7399 }
 0xf38   : > { %v3983_v7 = vsel %vm796_vm1, %v8994_v6, 0.0 }
 0xf39   : > { %3984 = vadd.xlane.f32.xlu2 %v3983_v7 }
 0xf49   : > { %4355 = vrot.lane.b32.xlu0 %v8857_v4, %s9962_s28 }
 0xf51   : > { %4409 = vrot.lane.b32.xlu2 %v8899_v12, %s9961_s27  ;;  %4791 = vrot.lane.b32.xlu0 %v8845_v14, %s9963_s23 }
 0xf59   : > { %7149 = vrot.lane.b32.xlu2 %v8873_v60, %s9964_s26  ;;  %4903 = vrot.lane.b32.xlu0 %v8861_v54, %s9963_s23 }
 0xf61   : > { %7159 = vrot.lane.b32.xlu2 %v8879_v19, %s9964_s26  ;;  %4817 = vrot.lane.b32.xlu0 %v8849_v18, %s9965_s0 }
 0xf62   : > { %v3940_v44 = vpop.xlane.xlu0 %3939  ;;  %v3970_v22 = vpop.xlane.xlu1 %3969 }
 0xf63   : > { %v3948_v62 = vsub.f32 %v3914_v43, %v3940_v44  ;;  %7401 = vrcp.f32 %v3970_v22  ;;  %v9025_v43 = vpop.permute.xlu2 %4411 }
 0xf65   : > { %v3963_v48 = vmul.f32 1.442695, %v3948_v62 }
 0xf67   : > { %7403 = vpow2.f32 %v3963_v48 }
 0xf69   : > { %v7402_v45 = vpop.eup %7401  ;;  %7164 = vrot.lane.b32.xlu2 %v8927_v31, %s9964_s26 }
 0xf6a   : > { %v3998_v60 = vmul.f32 %v7402_v45, %v8965_v47 }
 0xf6c   : > { %6884 = vmatmul.msk.f32.vlgmr.msra.gmra.mxu1 %vm796_vm1, %v3998_v60 }
 0xf6d   : > { %v9018_v9 = vpop.eup %7403  ;;  %6893 = vmatpush.xpose.msk.msra.mxu1 %vm796_vm1, %v4244_v1 }
 0xf6e   : > { %v3986_v28 = vsel %vm796_vm1, %v9018_v9, 0.0 }
 0xf6f   : > { %3987 = vadd.xlane.f32.xlu1 %v3986_v28 }
 0xf71   : > { %4735 = vrot.lane.b32.xlu2 %v8831_v49, %s9963_s23 }
 0xf79   : > { %4733 = vrot.lane.b32.xlu2 %v8831_v49, %s9965_s0 }
 0xf7c   : > { %v3973_v31 = vpop.xlane.xlu2 %3972 }
 0xf7d   : > { %7405 = vrcp.f32 %v3973_v31 }
 0xf81   : > { %4763 = vrot.lane.b32.xlu2 %v8841_v37, %s9963_s23 }
 0xf83   : > { %v7406_v47 = vpop.eup %7405 }
 0xf84   : > { %v3999_v1 = vmul.f32 %v7406_v47, %v8976_v29  ;;  %v4242_v29 = vpop.permute.xlu0 %4241 }
 0xf85   : > { %v3976_v11 = vpop.xlane.xlu1 %3975 }
 0xf86   : > { %7407 = vrcp.f32 %v3976_v11  ;;  %6885 = vmatmul.msk.f32.vlgmr.msra.gmra.mxu2 %vm796_vm1, %v3999_v1 }
 0xf87   : > { %6895 = vmatpush.xpose.msk.msra.mxu2 %vm796_vm1, %v8941_v51 }
 0xf88   : > { %4353 = vrot.lane.b32.xlu1 %v8857_v4, %s9961_s27  ;;  %s6733_s27 = sshll.u32 %s9980_s25, 3 }
 0xf8c   : > { %v7408_v41 = vpop.eup %7407 }
 0xf8d   : > { %v4000_v55 = vmul.f32 %v7408_v41, %v8980_v61  ;;  %v3979_v51 = vpop.xlane.xlu2 %3978 }
 0xf8f   : > { %6886 = vmatmul.msk.f32.vlgmr.msrb.gmra.mxu3 %vm796_vm1, %v4000_v55 }
 0xf90   : > { %6897 = vmatpush.xpose.msk.msrb.mxu3 %vm796_vm1, %v8963_v24  ;;  %7154 = vrot.lane.b32.xlu1 %v8867_v52, %s9964_s26  ;;  %s548_s26 = scalar_lea.vmem %s9931_s17, %s6733_s27 }
 0xf98   : > { %4789 = vrot.lane.b32.xlu1 %v8845_v14, %s9965_s0 }
 0xfa0   : > { %v3967_v39 = vpop.xlane.xlu0 %3966  ;;  %4819 = vrot.lane.b32.xlu1 %v8849_v18, %s9963_s23 }
 0xfa1   : > { %7409 = vrcp.f32 %v3967_v39 }
 0xfa2   : > { %7411 = vrcp.f32 %v3979_v51 }
 0xfa7   : > { %v7410_v38 = vpop.eup %7409 }
 0xfa8   : > { %v3997_v61 = vmul.f32 %v7410_v38, %v7396_v30  ;;  %4847 = vrot.lane.b32.xlu1 %v8853_v58, %s9963_s23  ;;  %v3982_v24 = vpop.xlane.xlu0 %3981  ;;  %v7412_v33 = vpop.eup %7411 }
 0xfa9   : > { %7413 = vrcp.f32 %v3982_v24  ;;  %v4001_v32 = vmul.f32 %v7412_v33, %v8984_v5 }
 0xfaa   : > { %6883 = vmatmul.msk.f32.vlgmr.msra.gmra.mxu0 %vm796_vm1, %v3997_v61 }
 0xfab   : > { %6891 = vmatpush.xpose.msk.msra.mxu0 %vm796_vm1, %v8944_v34 }
 0xfac   : > { %v3985_v50 = vpop.xlane.xlu2 %3984 }
 0xfad   : > { %7415 = vrcp.f32 %v3985_v50 }
 0xfaf   : > { %v7414_v63 = vpop.eup %7413 }
 0xfb0   : > { %v4002_v2 = vmul.f32 %v7414_v63, %v8990_v17 }
 0xfb2   : > { %6887 = vmatmul.msk.f32.vlgmr.msrb.gmra.mxu0 %vm796_vm1, %v4001_v32  ;;  %6888 = vmatmul.msk.f32.vlgmr.msrb.gmra.mxu1 %vm796_vm1, %v4002_v2 }
 0xfb3   : > { %v7416_v56 = vpop.eup %7415  ;;  %6899 = vmatpush.xpose.msk.msrb.mxu0 %vm796_vm1, %v8951_v21 }
 0xfb4   : > { %v4003_v30 = vmul.f32 %v7416_v56, %v8994_v6  ;;  %v4410_v8 = vpop.permute.xlu2 %4409 }
 0xfb6   : > { %6889 = vmatmul.msk.f32.vlgmr.msrb.gmra.mxu2 %vm796_vm1, %v4003_v30 }
 0xfb7   : > { %6903 = vmatpush.xpose.msk.msrb.mxu2 %vm796_vm1, %v8946_v15 }
 0xfba   : > { %6892 = vmatmul.msk.f32.vlgmr.msra.gmra.mxu0 %vm796_vm1, %v8970_v53  ;;  %6894 = vmatmul.msk.f32.vlgmr.msra.gmra.mxu1 %vm796_vm1, %v4242_v29 }
 0xfbb   : > { %v4356_v34 = vpop.permute.xlu0 %4355 }
 0xfbc   : > { %v7150_v5 = vpop.permute.xlu2 %7149  ;;  %6901 = vmatpush.xpose.msk.msrb.mxu1 %vm796_vm1, %v4356_v34 }
 0xfbd   : > { %v7152_v27 = vunpack.i.h.bf16 %v7150_v5  ;;  %v7151_v25 = vunpack.i.l.bf16 %v7150_v5 }
 0xfbe   : > { %6896 = vmatmul.msk.f32.vlgmr.msra.gmra.mxu2 %vm796_vm1, %v8961_v16 }
 0xfbf   : > { %4546 = vmatpush.msra.mxu0 %v7152_v27  ;;  %4598 = vmatpush.msra.mxu2 %v7151_v25 }
 0xfc2   : > { %6900 = vmatmul.msk.f32.vlgmr.msrb.gmra.mxu0 %vm796_vm1, %v9008_v57 }
 0xfc3   : > { %v9115_v2 = vpop.permute.xlu0 %4791 }
 0xfc4   : > { %v7160_v15 = vpop.permute.xlu2 %7159 }
 0xfc5   : > { %v7162_v21 = vunpack.i.h.bf16 %v7160_v15  ;;  %v7161_v26 = vunpack.i.l.bf16 %v7160_v15 }
 0xfc6   : > { %6904 = vmatmul.msk.f32.vlgmr.msrb.gmra.mxu2 %vm796_vm1, %v8948_v46 }
 0xfc7   : > { %4572 = vmatpush.msra.mxu1 %v7161_v26  ;;  %4650 = vmatpush.msrb.mxu0 %v7162_v21 }
 0xfcb   : > { %v9123_v30 = vpop.permute.xlu0 %4903 }
 0xfcc   : > { %v7165_v16 = vpop.permute.xlu2 %7164 }
 0xfcd   : > { %v7167_v6 = vunpack.i.h.bf16 %v7165_v16  ;;  %v7166_v22 = vunpack.i.l.bf16 %v7165_v16 }
 0xfd3   : > { %v9129_v5 = vpop.permute.xlu0 %4817 }
 0xfe2   : > { %v3988_v53 = vpop.xlane.xlu1 %3987 }
 0xfe3   : > { %7417 = vrcp.f32 %v3988_v53 }
 0xfe9   : > { %v7418_v17 = vpop.eup %7417  ;;  %v9082_v48 = vpop.f32.mrf.mxu1 }
 0xfea   : > { %v4004_v20 = vmul.f32 %v7418_v17, %v9018_v9 }
 0xfec   : > { %6890 = vmatmul.msk.f32.vlgmr.msra.gmra.mxu3 %vm796_vm1, %v4004_v20 }
 0xfed   : > { %6905 = vmatpush.xpose.msk.msra.mxu3 %vm796_vm1, %v9025_v43 }
 0xff4   : > { %6898 = vmatmul.msk.f32.vlgmr.msrb.gmra.mxu3 %vm796_vm1, %v8972_v59 }
 0xffa   : > { %v4354_v7 = vpop.permute.xlu1 %4353 }
 0xffb   : > { %6902 = vmatmul.msk.f32.vlgmr.msrb.gmra.mxu1 %vm796_vm1, %v4354_v7 }
 0xffc   : > { %4676 = vmatpush.msrb.mxu1 %v7167_v6  ;;  %6906 = vmatmul.msk.f32.vlgmr.msra.gmra.mxu3 %vm796_vm1, %v4410_v8  ;;  %v9125_v8 = vpop.permute.xlu2 %4735 }
0x1002   : > { %v7155_v46 = vpop.permute.xlu1 %7154 }
0x1003   : > { %v7157_v57 = vunpack.i.h.bf16 %v7155_v46  ;;  %v7156_v44 = vunpack.i.l.bf16 %v7155_v46 }
0x1004   : > { %v9131_v27 = vpop.permute.xlu2 %4733 }
0x1005   : > { %4624 = vmatpush.msrb.mxu3 %v7156_v44  ;;  %4702 = vmatpush.msrb.mxu2 %v7157_v57 }
0x1007   : > { %4728 = vmatpush.msra.mxu3 %v7166_v22 }
0x1009   : > { %v9086_v45 = vpop.f32.mrf.mxu2 }
0x100a   : > { %v9119_v56 = vpop.permute.xlu1 %4789 }
0x100c   : > { %v9135_v21 = vpop.permute.xlu2 %4763 }
0x1012   : > { %v9097_v51 = vpop.f32.mrf.mxu3  ;;  %v9127_v34 = vpop.permute.xlu1 %4819 }
0x101a   : > { %v9133_v25 = vpop.permute.xlu1 %4847 }
0x1027   : > { %v9080_v62 = vpop.f32.mrf.mxu0 }
0x102f   : > { %v9084_v59 = vpop.f32.mrf.mxu0  ;;  %v9088_v60 = vpop.f32.mrf.mxu1 }
0x1037   : > { %v4238_v9 = vpop.f32.mrf.mxu0  ;;  %v4266_v31 = vpop.f32.mrf.mxu1 }
0x1038   : > { %v4437_v28 = vsel %vm796_vm1, %v4238_v9, -inf  ;;  %v4440_v11 = vsel %vm796_vm1, %v4266_v31, -inf }
0x1039   : > { %v9091_v43 = vpop.f32.mrf.mxu2  ;;  %4438 = vmax.xlane.f32.xlu0 %v4437_v28 }
0x103f   : > { %v4350_v47 = vpop.f32.mrf.mxu0 }
0x1040   : > { %v4449_v1 = vsel %vm796_vm1, %v4350_v47, -inf }
0x1041   : > { %v4294_v41 = vpop.f32.mrf.mxu2  ;;  %4450 = vmax.xlane.f32.xlu1 %v4449_v1  ;;  %4441 = vmax.xlane.f32.xlu0 %v4440_v11 }
0x1042   : > { %v4443_v55 = vsel %vm796_vm1, %v4294_v41, -inf }
0x1043   : > { %4444 = vmax.xlane.f32.xlu2 %v4443_v55 }
0x1049   : > { %v4406_v29 = vpop.f32.mrf.mxu2 }
0x104a   : > { %v4455_v39 = vsel %vm796_vm1, %v4406_v29, -inf }
0x104b   : > { %4456 = vmax.xlane.f32.xlu2 %v4455_v39 }
0x106f   : > { %v9099_v38 = vpop.f32.mrf.mxu3 }
0x1077   : > { %v9101_v61 = vpop.f32.mrf.mxu3 }
0x1078   : > { %v9103_v24 = vpop.f32.mrf.mxu1  ;;  %v4446_v50 = vsel %vm796_vm1, %v9101_v61, -inf }
0x1079   : > { %4447 = vmax.xlane.f32.xlu1 %v4446_v50  ;;  %v4452_v33 = vsel %vm796_vm1, %v9103_v24, -inf }
0x107a   : > { %4453 = vmax.xlane.f32.xlu0 %v4452_v33 }
0x107f   : > { %v9109_v63 = vpop.f32.mrf.mxu3 }
0x1080   : > { %v4458_v32 = vsel %vm796_vm1, %v9109_v63, -inf }
0x1081   : > { %4459 = vmax.xlane.f32.xlu2 %v4458_v32 }
0x108e   : > { %4845 = vrot.lane.b32.xlu0 %v8853_v58, %s9965_s0 }
0x1092   : > { %4761 = vrot.lane.b32.xlu1 %v8841_v37, %s9965_s0 }
0x1099   : > { %4901 = vrot.lane.b32.xlu2 %v8861_v54, %s9965_s0 }
0x10ac   : > { %v4439_v15 = vpop.xlane.xlu0 %4438 }
0x10ad   : > { %v4461_v26 = vsub.f32 %v4238_v9, %v4439_v15 }
0x10af   : > { %v4469_v53 = vmul.f32 1.442695, %v4461_v26 }
0x10b1   : > { %7419 = vpow2.f32 %v4469_v53 }
0x10b4   : > { %v4451_v17 = vpop.xlane.xlu1 %4450  ;;  %v4442_v20 = vpop.xlane.xlu0 %4441 }
0x10b5   : > { %v4465_v16 = vsub.f32 %v4350_v47, %v4451_v17  ;;  %v4462_v6 = vsub.f32 %v4266_v31, %v4442_v20 }
0x10b6   : > { %v4445_v7 = vpop.xlane.xlu2 %4444 }
0x10b7   : > { %v4477_v46 = vmul.f32 1.442695, %v4465_v16  ;;  %v4471_v57 = vmul.f32 1.442695, %v4462_v6  ;;  %v4463_v44 = vsub.f32 %v4294_v41, %v4445_v7  ;;  %v9137_v28 = vpop.eup %7419  ;;  %v7168_v16 = vpack.i.bf16 %v8845_v14, %v8831_v49 }
0x10b8   : > { %v4485_v41 = vsel %vm796_vm1, %v9137_v28, 0.0 }
0x10b9   : > { %7421 = vpow2.f32 %v4477_v46  ;;  %v4473_v22 = vmul.f32 1.442695, %v4463_v44  ;;  %v7183_v44 = vpack.i.bf16 %v8899_v12, %v8857_v4 }
0x10ba   : > { %7423 = vpow2.f32 %v4471_v57 }
0x10bb   : > { %7425 = vpow2.f32 %v4473_v22 }
0x10be   : > { %v4457_v1 = vpop.xlane.xlu2 %4456 }
0x10bf   : > { %v9139_v11 = vpop.eup %7421  ;;  %v4467_v9 = vsub.f32 %v4406_v29, %v4457_v1 }
0x10c0   : > { %v7424_v55 = vpop.eup %7423  ;;  %v4497_v47 = vsel %vm796_vm1, %v9139_v11, 0.0 }
0x10c1   : > { %v4488_v31 = vsel %vm796_vm1, %v7424_v55, 0.0  ;;  %4498 = vadd.xlane.f32.xlu1 %v4497_v47  ;;  %v4481_v39 = vmul.f32 1.442695, %v4467_v9  ;;  %v7426_v50 = vpop.eup %7425 }
0x10c2   : > { %4489 = vadd.xlane.f32.xlu0 %v4488_v31  ;;  %4486 = vadd.xlane.f32.xlu2 %v4485_v41  ;;  %v4491_v33 = vsel %vm796_vm1, %v7426_v50, 0.0 }
0x10c3   : > { %7427 = vpow2.f32 %v4481_v39 }
0x10c9   : > { %4492 = vadd.xlane.f32.xlu1 %v4491_v33  ;;  %v9147_v32 = vpop.eup %7427 }
0x10ca   : > { %v4503_v29 = vsel %vm796_vm1, %v9147_v32, 0.0 }
0x10d1   : > { %4504 = vadd.xlane.f32.xlu1 %v4503_v29 }
0x10da   : > { %4931 = vrot.lane.b32.xlu2 %v8899_v12, %s9963_s23 }
0x10e2   : > { %4873 = vrot.lane.b32.xlu2 %v8857_v4, %s9965_s0 }
0x10ea   : > { %4875 = vrot.lane.b32.xlu1 %v8857_v4, %s9963_s23  ;;  %7174 = vrot.lane.b32.xlu2 %v8879_v19, %s9966_s30 }
0x10ec   : > { %v4448_v15 = vpop.xlane.xlu1 %4447 }
0x10ed   : > { %v4454_v26 = vpop.xlane.xlu0 %4453  ;;  %v4464_v17 = vsub.f32 %v9101_v61, %v4448_v15 }
0x10ee   : > { %v4466_v53 = vsub.f32 %v9103_v24, %v4454_v26 }
0x10ef   : > { %v4475_v6 = vmul.f32 1.442695, %v4464_v17 }
0x10f0   : > { %v4479_v20 = vmul.f32 1.442695, %v4466_v53 }
0x10f2   : > { %7429 = vpow2.f32 %v4479_v20  ;;  %7169 = vrot.lane.b32.xlu1 %v7168_v16, %s9966_s30  ;;  %5253 = vrot.lane.b32.xlu2 %v8831_v49, %s9967_s18 }
0x10f3   : > { %7431 = vpow2.f32 %v4475_v6 }
0x10f4   : > { %v4460_v7 = vpop.xlane.xlu2 %4459 }
0x10f5   : > { %v4468_v19 = vsub.f32 %v9109_v63, %v4460_v7 }
0x10f7   : > { %v4483_v24 = vmul.f32 1.442695, %v4468_v19 }
0x10f8   : > { %v9166_v46 = vpop.eup %7429 }
0x10f9   : > { %v4500_v61 = vsel %vm796_vm1, %v9166_v46, 0.0  ;;  %v9173_v57 = vpop.eup %7431  ;;  %7433 = vpow2.f32 %v4483_v24 }
0x10fa   : > { %4501 = vadd.xlane.f32.xlu0 %v4500_v61  ;;  %5255 = vrot.lane.b32.xlu1 %v8831_v49, %s9968_s19  ;;  %v4494_v22 = vsel %vm796_vm1, %v9173_v57, 0.0 }
0x10fc   : > { %v4902_v47 = vpop.permute.xlu2 %4901 }
0x10ff   : > { %v9180_v63 = vpop.eup %7433 }
0x1100   : > { %v4506_v1 = vsel %vm796_vm1, %v9180_v63, 0.0  ;;  %v4846_v31 = vpop.permute.xlu0 %4845 }
0x1102   : > { %7184 = vrot.lane.b32.xlu1 %v7183_v44, %s9966_s30  ;;  %4495 = vadd.xlane.f32.xlu0 %v4494_v22 }
0x1104   : > { %v9188_v9 = vpop.permute.xlu1 %4761 }
0x110a   : > { %4507 = vadd.xlane.f32.xlu0 %v4506_v1 }
0x111e   : > { %4929 = vrot.lane.b32.xlu0 %v8899_v12, %s9965_s0 }
0x1126   : > { %7179 = vrot.lane.b32.xlu0 %v8867_v52, %s9966_s30 }
0x112e   : > { %5309 = vrot.lane.b32.xlu0 %v8845_v14, %s9967_s18 }
0x1134   : > { %v4499_v41 = vpop.xlane.xlu1 %4498 }
0x1135   : > { %v4490_v39 = vpop.xlane.xlu0 %4489  ;;  %v4487_v33 = vpop.xlane.xlu2 %4486 }
0x1136   : > { %7435 = vrcp.f32 %v4490_v39 }
0x1137   : > { %7437 = vrcp.f32 %v4487_v33 }
0x1138   : > { %7439 = vrcp.f32 %v4499_v41 }
0x113c   : > { %v7436_v29 = vpop.eup %7435  ;;  %v4493_v15 = vpop.xlane.xlu1 %4492 }
0x113d   : > { %v7438_v26 = vpop.eup %7437  ;;  %v4518_v53 = vmul.f32 %v7436_v29, %v7424_v55  ;;  %7441 = vrcp.f32 %v4493_v15 }
0x113e   : > { %v4517_v52 = vmul.f32 %v7438_v26, %v9137_v28  ;;  %v7440_v17 = vpop.eup %7439  ;;  %v4932_v28 = vpop.permute.xlu2 %4931 }
0x113f   : > { %6908 = vmatmul.msk.f32.vlgmr.msra.gmra.mxu1 %vm796_vm1, %v4518_v53  ;;  %v4521_v55 = vmul.f32 %v7440_v17, %v9139_v11 }
0x1140   : > { %6917 = vmatpush.xpose.msk.msra.mxu1 %vm796_vm1, %v9135_v21  ;;  %6907 = vmatmul.msk.f32.vlgmr.msra.gmra.mxu0 %vm796_vm1, %v4517_v52 }
0x1141   : > { %6915 = vmatpush.xpose.msk.msra.mxu0 %vm796_vm1, %v9125_v8 }
0x1143   : > { %v7442_v20 = vpop.eup %7441 }
0x1144   : > { %v4519_v16 = vmul.f32 %v7442_v20, %v7426_v50  ;;  %v4505_v6 = vpop.xlane.xlu1 %4504 }
0x1145   : > { %7443 = vrcp.f32 %v4505_v6 }
0x1146   : > { %6909 = vmatmul.msk.f32.vlgmr.msra.gmra.mxu2 %vm796_vm1, %v4519_v16 }
0x1147   : > { %6919 = vmatpush.xpose.msk.msra.mxu2 %vm796_vm1, %v9115_v2  ;;  %v4874_v2 = vpop.permute.xlu2 %4873 }
0x1148   : > { %6911 = vmatmul.msk.f32.vlgmr.msrb.gmra.mxu0 %vm796_vm1, %v4521_v55 }
0x1149   : > { %6923 = vmatpush.xpose.msk.msrb.mxu0 %vm796_vm1, %v9133_v25 }
0x114b   : > { %v7444_v21 = vpop.eup %7443 }
0x114c   : > { %v4523_v8 = vmul.f32 %v7444_v21, %v9147_v32 }
0x114e   : > { %6913 = vmatmul.msk.f32.vlgmr.msrb.gmra.mxu2 %vm796_vm1, %v4523_v8 }
0x114f   : > { %6927 = vmatpush.xpose.msk.msrb.mxu2 %vm796_vm1, %v9123_v30  ;;  %v7175_v25 = vpop.permute.xlu2 %7174 }
0x1150   : > { %6916 = vmatmul.msk.f32.vlgmr.msra.gmra.mxu0 %vm796_vm1, %v9131_v27  ;;  %v7177_v19 = vunpack.i.h.bf16 %v7175_v25 }
0x1156   : > { %6920 = vmatmul.msk.f32.vlgmr.msra.gmra.mxu2 %vm796_vm1, %v9119_v56 }
0x1158   : > { %6924 = vmatmul.msk.f32.vlgmr.msrb.gmra.mxu0 %vm796_vm1, %v4846_v31 }
0x115c   : > { %v4876_v11 = vpop.permute.xlu1 %4875 }
0x115e   : > { %6928 = vmatmul.msk.f32.vlgmr.msrb.gmra.mxu2 %vm796_vm1, %v4902_v47  ;;  %v7176_v47 = vunpack.i.l.bf16 %v7175_v25 }
0x1164   : > { %v7170_v50 = vpop.permute.xlu1 %7169 }
0x1165   : > { %v7172_v32 = vunpack.i.h.bf16 %v7170_v50  ;;  %v7171_v7 = vunpack.i.l.bf16 %v7170_v50 }
0x1167   : > { %5066 = vmatpush.msra.mxu0 %v7171_v7  ;;  %5118 = vmatpush.msra.mxu2 %v7172_v32 }
0x1169   : > { %5170 = vmatpush.msrb.mxu0 %v7177_v19 }
0x116c   : > { %v9219_v24 = vpop.permute.xlu1 %5255 }
0x116d   : > { %v4502_v30 = vpop.xlane.xlu0 %4501 }
0x116e   : > { %7445 = vrcp.f32 %v4502_v30 }
0x1174   : > { %v7446_v27 = vpop.eup %7445 }
0x1175   : > { %v4522_v61 = vmul.f32 %v7446_v27, %v9166_v46  ;;  %v4496_v56 = vpop.xlane.xlu0 %4495  ;;  %v7185_v46 = vpop.permute.xlu1 %7184 }
0x1176   : > { %7447 = vrcp.f32 %v4496_v56  ;;  %v7186_v39 = vunpack.i.l.bf16 %v7185_v46  ;;  %v7187_v29 = vunpack.i.h.bf16 %v7185_v46 }
0x1177   : > { %6912 = vmatmul.msk.f32.vlgmr.msrb.gmra.mxu1 %vm796_vm1, %v4522_v61 }
0x1178   : > { %6925 = vmatpush.xpose.msk.msrb.mxu1 %vm796_vm1, %v4876_v11 }
0x117c   : > { %v7448_v44 = vpop.eup %7447 }
0x117d   : > { %v4520_v22 = vmul.f32 %v7448_v44, %v9173_v57  ;;  %v4508_v1 = vpop.xlane.xlu0 %4507 }
0x117e   : > { %7449 = vrcp.f32 %v4508_v1 }
0x117f   : > { %6910 = vmatmul.msk.f32.vlgmr.msrb.gmra.mxu3 %vm796_vm1, %v4520_v22  ;;  %6918 = vmatmul.msk.f32.vlgmr.msra.gmra.mxu1 %vm796_vm1, %v9188_v9 }
0x1180   : > { %6921 = vmatpush.xpose.msk.msrb.mxu3 %vm796_vm1, %v9127_v34  ;;  %5092 = vmatpush.msra.mxu1 %v7176_v47 }
0x1184   : > { %v7450_v31 = vpop.eup %7449 }
0x1185   : > { %v4524_v41 = vmul.f32 %v7450_v31, %v9180_v63 }
0x1187   : > { %6914 = vmatmul.msk.f32.vlgmr.msra.gmra.mxu3 %vm796_vm1, %v4524_v41  ;;  %6926 = vmatmul.msk.f32.vlgmr.msrb.gmra.mxu1 %vm796_vm1, %v4874_v2 }
0x1188   : > { %6929 = vmatpush.xpose.msk.msra.mxu3 %vm796_vm1, %v4932_v28  ;;  %5196 = vmatpush.msrb.mxu1 %v7186_v39 }
0x118f   : > { %6922 = vmatmul.msk.f32.vlgmr.msrb.gmra.mxu3 %vm796_vm1, %v9129_v5 }
0x1190   : > { %v4930_v57 = vpop.permute.xlu0 %4929 }
0x1197   : > { %6930 = vmatmul.msk.f32.vlgmr.msra.gmra.mxu3 %vm796_vm1, %v4930_v57 }
0x1198   : > { %v7180_v34 = vpop.permute.xlu0 %7179 }
0x1199   : > { %v7182_v9 = vunpack.i.h.bf16 %v7180_v34  ;;  %v7181_v33 = vunpack.i.l.bf16 %v7180_v34 }
0x119b   : > { %5144 = vmatpush.msrb.mxu3 %v7181_v33  ;;  %5222 = vmatpush.msrb.mxu2 %v7182_v9 }
0x119d   : > { %5248 = vmatpush.msra.mxu3 %v7187_v29 }
0x11a0   : > { %v9268_v1 = vpop.permute.xlu0 %5309 }
0x11bc   : > { %v9245_v55 = vpop.f32.mrf.mxu1 }
0x11bd   : > { %v9234_v63 = vpop.f32.mrf.mxu0 }
0x11c5   : > { %v9236_v15 = vpop.f32.mrf.mxu0 }
0x11c9   : > { %v9238_v26 = vpop.f32.mrf.mxu2 }
0x11cd   : > { %v4758_v53 = vpop.f32.mrf.mxu0 }
0x11ce   : > { %v4957_v52 = vsel %vm796_vm1, %v4758_v53, -inf }
0x11cf   : > { %4958 = vmax.xlane.f32.xlu1 %v4957_v52 }
0x11d1   : > { %v9241_v5 = vpop.f32.mrf.mxu2 }
0x11d5   : > { %v4870_v17 = vpop.f32.mrf.mxu0 }
0x11d6   : > { %v4969_v20 = vsel %vm796_vm1, %v4870_v17, -inf }
0x11d7   : > { %4970 = vmax.xlane.f32.xlu1 %v4969_v20 }
0x11d9   : > { %v4814_v16 = vpop.f32.mrf.mxu2 }
0x11da   : > { %v4963_v6 = vsel %vm796_vm1, %v4814_v16, -inf }
0x11db   : > { %4964 = vmax.xlane.f32.xlu0 %v4963_v6 }
0x11e1   : > { %v4926_v2 = vpop.f32.mrf.mxu2 }
0x11e2   : > { %v4975_v50 = vsel %vm796_vm1, %v4926_v2, -inf }
0x11f4   : > { %v9247_v21 = vpop.f32.mrf.mxu1 }
0x11fc   : > { %v4786_v8 = vpop.f32.mrf.mxu1 }
0x11fd   : > { %v4960_v28 = vsel %vm796_vm1, %v4786_v8, -inf }
0x11fe   : > { %4961 = vmax.xlane.f32.xlu2 %v4960_v28 }
0x1202   : > { %v9250_v11 = vpop.f32.mrf.mxu3 }
0x1204   : > { %v4898_v25 = vpop.f32.mrf.mxu1 }
0x1205   : > { %v4972_v32 = vsel %vm796_vm1, %v4898_v25, -inf }
0x1206   : > { %4976 = vmax.xlane.f32.xlu2 %v4975_v50  ;;  %4973 = vmax.xlane.f32.xlu1 %v4972_v32 }
0x120a   : > { %v9254_v7 = vpop.f32.mrf.mxu3 }
0x1212   : > { %v9256_v19 = vpop.f32.mrf.mxu3 }
0x1213   : > { %v4966_v30 = vsel %vm796_vm1, %v9256_v19, -inf }
0x1214   : > { %4967 = vmax.xlane.f32.xlu0 %v4966_v30 }
0x121a   : > { %v9260_v27 = vpop.f32.mrf.mxu3 }
0x121b   : > { %v4978_v61 = vsel %vm796_vm1, %v9260_v27, -inf }
0x121c   : > { %4979 = vmax.xlane.f32.xlu0 %v4978_v61 }
0x121e   : > { %5283 = vrot.lane.b32.xlu2 %v8841_v37, %s9968_s19 }
0x121f   : > { %5311 = vrot.lane.b32.xlu1 %v8845_v14, %s9968_s19 }
0x1242   : > { %v4959_v56 = vpop.xlane.xlu1 %4958 }
0x1243   : > { %v4981_v44 = vsub.f32 %v4758_v53, %v4959_v56 }
0x1245   : > { %v4989_v22 = vmul.f32 1.442695, %v4981_v44 }
0x1247   : > { %7451 = vpow2.f32 %v4989_v22 }
0x124a   : > { %v4971_v47 = vpop.xlane.xlu1 %4970 }
0x124b   : > { %v4985_v46 = vsub.f32 %v4870_v17, %v4971_v47  ;;  %v9276_v17 = vpop.permute.xlu2 %5253 }
0x124d   : > { %v7452_v31 = vpop.eup %7451  ;;  %v4997_v41 = vmul.f32 1.442695, %v4985_v46 }
0x124e   : > { %v4965_v39 = vpop.xlane.xlu0 %4964  ;;  %v5005_v57 = vsel %vm796_vm1, %v7452_v31, 0.0 }
0x124f   : > { %7453 = vpow2.f32 %v4997_v41  ;;  %v4983_v34 = vsub.f32 %v4814_v16, %v4965_v39  ;;  %5006 = vadd.xlane.f32.xlu2 %v5005_v57 }
0x1251   : > { %v4993_v9 = vmul.f32 1.442695, %v4983_v34 }
0x1253   : > { %7455 = vpow2.f32 %v4993_v9 }
0x1255   : > { %v7454_v33 = vpop.eup %7453 }
0x1256   : > { %v5017_v29 = vsel %vm796_vm1, %v7454_v33, 0.0 }
0x1257   : > { %5018 = vadd.xlane.f32.xlu2 %v5017_v29 }
0x1259   : > { %v9272_v53 = vpop.eup %7455 }
0x125a   : > { %v5011_v52 = vsel %vm796_vm1, %v9272_v53, 0.0 }
0x125b   : > { %5012 = vadd.xlane.f32.xlu1 %v5011_v52 }
0x1271   : > { %v4962_v20 = vpop.xlane.xlu2 %4961 }
0x1272   : > { %v4982_v6 = vsub.f32 %v4786_v8, %v4962_v20 }
0x1274   : > { %v4991_v28 = vmul.f32 1.442695, %v4982_v6  ;;  %5281 = vrot.lane.b32.xlu1 %v8841_v37, %s9967_s18 }
0x1276   : > { %7457 = vpow2.f32 %v4991_v28 }
0x1279   : > { %v4974_v16 = vpop.xlane.xlu1 %4973  ;;  %v4977_v50 = vpop.xlane.xlu2 %4976 }
0x127a   : > { %v4986_v32 = vsub.f32 %v4898_v25, %v4974_v16  ;;  %v4987_v30 = vsub.f32 %v4926_v2, %v4977_v50 }
0x127c   : > { %v9280_v61 = vpop.eup %7457  ;;  %v4999_v56 = vmul.f32 1.442695, %v4986_v32  ;;  %v5001_v44 = vmul.f32 1.442695, %v4987_v30  ;;  %5367 = vrot.lane.b32.xlu1 %v8853_v58, %s9968_s19 }
0x127d   : > { %v5008_v22 = vsel %vm796_vm1, %v9280_v61, 0.0 }
0x127e   : > { %7459 = vpow2.f32 %v4999_v56  ;;  %5009 = vadd.xlane.f32.xlu0 %v5008_v22 }
0x127f   : > { %7461 = vpow2.f32 %v5001_v44 }
0x1281   : > { %v5284_v41 = vpop.permute.xlu2 %5283 }
0x1284   : > { %v9286_v8 = vpop.eup %7459  ;;  %5421 = vrot.lane.b32.xlu1 %v8861_v54, %s9967_s18 }
0x1285   : > { %v9290_v25 = vpop.eup %7461  ;;  %v5020_v2 = vsel %vm796_vm1, %v9286_v8, 0.0 }
0x1286   : > { %5021 = vadd.xlane.f32.xlu0 %v5020_v2  ;;  %v5023_v47 = vsel %vm796_vm1, %v9290_v25, 0.0 }
0x1287   : > { %5024 = vadd.xlane.f32.xlu2 %v5023_v47  ;;  %v4968_v46 = vpop.xlane.xlu0 %4967 }
0x1288   : > { %v4984_v39 = vsub.f32 %v9256_v19, %v4968_v46 }
0x128a   : > { %v4995_v57 = vmul.f32 1.442695, %v4984_v39 }
0x128c   : > { %5451 = vrot.lane.b32.xlu1 %v8899_v12, %s9968_s19  ;;  %7463 = vpow2.f32 %v4995_v57 }
0x128f   : > { %v4980_v34 = vpop.xlane.xlu0 %4979 }
0x1290   : > { %v4988_v9 = vsub.f32 %v9260_v27, %v4980_v34 }
0x1291   : > { %v5312_v20 = vpop.permute.xlu1 %5311 }
0x1292   : > { %v5003_v52 = vmul.f32 1.442695, %v4988_v9  ;;  %v7464_v6 = vpop.eup %7463 }
0x1293   : > { %v5014_v32 = vsel %vm796_vm1, %v7464_v6, 0.0 }
0x129a   : > { %5339 = vrot.lane.b32.xlu0 %v8849_v18, %s9968_s19 }
0x129f   : > { %5337 = vrot.lane.b32.xlu2 %v8849_v18, %s9967_s18 }
0x12a2   : > { %5365 = vrot.lane.b32.xlu0 %v8853_v58, %s9967_s18 }
0x12a7   : > { %5423 = vrot.lane.b32.xlu2 %v8861_v54, %s9968_s19 }
0x12af   : > { %5393 = vrot.lane.b32.xlu2 %v8857_v4, %s9967_s18 }
0x12c2   : > { %v5007_v29 = vpop.xlane.xlu2 %5006 }
0x12c3   : > { %7465 = vrcp.f32 %v5007_v29 }
0x12c4   : > { %7467 = vpow2.f32 %v5003_v52 }
0x12c9   : > { %v7466_v28 = vpop.eup %7465 }
0x12ca   : > { %v5037_v16 = vmul.f32 %v7466_v28, %v7452_v31  ;;  %v5019_v50 = vpop.xlane.xlu2 %5018  ;;  %v7468_v27 = vpop.eup %7467 }
0x12cb   : > { %7469 = vrcp.f32 %v5019_v50  ;;  %v5026_v44 = vsel %vm796_vm1, %v7468_v27, 0.0 }
0x12cc   : > { %6931 = vmatmul.msk.f32.vlgmr.msra.gmra.mxu0 %vm796_vm1, %v5037_v16  ;;  %5015 = vadd.xlane.f32.xlu0 %v5014_v32 }
0x12cd   : > { %6939 = vmatpush.xpose.msk.msra.mxu0 %vm796_vm1, %v9219_v24 }
0x12ce   : > { %v5013_v19 = vpop.xlane.xlu1 %5012 }
0x12cf   : > { %7471 = vrcp.f32 %v5013_v19 }
0x12d1   : > { %v7470_v30 = vpop.eup %7469 }
0x12d2   : > { %v5041_v56 = vmul.f32 %v7470_v30, %v7454_v33 }
0x12d4   : > { %6935 = vmatmul.msk.f32.vlgmr.msrb.gmra.mxu0 %vm796_vm1, %v5041_v56  ;;  %5027 = vadd.xlane.f32.xlu0 %v5026_v44 }
0x12d5   : > { %v7472_v31 = vpop.eup %7471 }
0x12d6   : > { %v5039_v22 = vmul.f32 %v7472_v31, %v9272_v53 }
0x12d8   : > { %6933 = vmatmul.msk.f32.vlgmr.msra.gmra.mxu2 %vm796_vm1, %v5039_v22 }
0x12d9   : > { %6943 = vmatpush.xpose.msk.msra.mxu2 %vm796_vm1, %v5312_v20 }
0x12dc   : > { %6940 = vmatmul.msk.f32.vlgmr.msra.gmra.mxu0 %vm796_vm1, %v9276_v17 }
0x12e6   : > { %v5282_v24 = vpop.permute.xlu1 %5281 }
0x12e8   : > { %5395 = vrot.lane.b32.xlu0 %v8857_v4, %s9968_s19 }
0x12ee   : > { %v5368_v33 = vpop.permute.xlu1 %5367 }
0x12ef   : > { %6947 = vmatpush.xpose.msk.msrb.mxu0 %vm796_vm1, %v5368_v33 }
0x12f0   : > { %5449 = vrot.lane.b32.xlu0 %v8899_v12, %s9967_s18 }
0x12f1   : > { %v5010_v2 = vpop.xlane.xlu0 %5009 }
0x12f2   : > { %7473 = vrcp.f32 %v5010_v2 }
0x12f6   : > { %v5422_v52 = vpop.permute.xlu1 %5421 }
0x12f8   : > { %v7474_v53 = vpop.eup %7473 }
0x12f9   : > { %v5038_v47 = vmul.f32 %v7474_v53, %v9280_v61  ;;  %v5022_v46 = vpop.xlane.xlu0 %5021 }
0x12fa   : > { %7475 = vrcp.f32 %v5022_v46  ;;  %v5025_v39 = vpop.xlane.xlu2 %5024 }
0x12fb   : > { %7477 = vrcp.f32 %v5025_v39  ;;  %6932 = vmatmul.msk.f32.vlgmr.msra.gmra.mxu1 %vm796_vm1, %v5038_v47 }
0x12fc   : > { %6941 = vmatpush.xpose.msk.msra.mxu1 %vm796_vm1, %v5284_v41 }
0x12fe   : > { %v5452_v19 = vpop.permute.xlu1 %5451 }
0x1300   : > { %v7476_v17 = vpop.eup %7475 }
0x1301   : > { %v7478_v57 = vpop.eup %7477  ;;  %v5042_v34 = vmul.f32 %v7476_v17, %v9286_v8 }
0x1302   : > { %v5043_v9 = vmul.f32 %v7478_v57, %v9290_v25  ;;  %v5338_v29 = vpop.permute.xlu2 %5337 }
0x1303   : > { %6936 = vmatmul.msk.f32.vlgmr.msrb.gmra.mxu1 %vm796_vm1, %v5042_v34 }
0x1304   : > { %6937 = vmatmul.msk.f32.vlgmr.msrb.gmra.mxu2 %vm796_vm1, %v5043_v9 }
0x130a   : > { %v5424_v61 = vpop.permute.xlu2 %5423 }
0x130b   : > { %6951 = vmatpush.xpose.msk.msrb.mxu2 %vm796_vm1, %v5424_v61  ;;  %6942 = vmatmul.msk.f32.vlgmr.msra.gmra.mxu1 %vm796_vm1, %v5282_v24 }
0x130c   : > { %6944 = vmatmul.msk.f32.vlgmr.msra.gmra.mxu2 %vm796_vm1, %v9268_v1  ;;  %v5340_v41 = vpop.permute.xlu0 %5339 }
0x1312   : > { %v5394_v31 = vpop.permute.xlu2 %5393 }
0x1314   : > { %6952 = vmatmul.msk.f32.vlgmr.msrb.gmra.mxu2 %vm796_vm1, %v5422_v52  ;;  %v5366_v8 = vpop.permute.xlu0 %5365 }
0x1315   : > { %6948 = vmatmul.msk.f32.vlgmr.msrb.gmra.mxu0 %vm796_vm1, %v5366_v8 }
0x133f   : > { %v5016_v25 = vpop.xlane.xlu0 %5015 }
0x1340   : > { %7479 = vrcp.f32 %v5016_v25 }
0x1346   : > { %v7480_v20 = vpop.eup %7479 }
0x1347   : > { %v5040_v28 = vmul.f32 %v7480_v20, %v7464_v6  ;;  %v5028_v16 = vpop.xlane.xlu0 %5027 }
0x1348   : > { %7481 = vrcp.f32 %v5028_v16 }
0x1349   : > { %v9339_v50 = vpop.f32.mrf.mxu0  ;;  %6934 = vmatmul.msk.f32.vlgmr.msrb.gmra.mxu3 %vm796_vm1, %v5040_v28 }
0x134a   : > { %6945 = vmatpush.xpose.msk.msrb.mxu3 %vm796_vm1, %v5340_v41 }
0x134e   : > { %v7482_v1 = vpop.eup %7481 }
0x134f   : > { %v5044_v32 = vmul.f32 %v7482_v1, %v7468_v27 }
0x1351   : > { %v9343_v30 = vpop.f32.mrf.mxu0  ;;  %6938 = vmatmul.msk.f32.vlgmr.msra.gmra.mxu3 %vm796_vm1, %v5044_v32 }
0x1352   : > { %6953 = vmatpush.xpose.msk.msra.mxu3 %vm796_vm1, %v5452_v19 }
0x1359   : > { %v5278_v56 = vpop.f32.mrf.mxu0  ;;  %6946 = vmatmul.msk.f32.vlgmr.msrb.gmra.mxu3 %vm796_vm1, %v5338_v29 }
0x135a   : > { %v5396_v6 = vpop.permute.xlu0 %5395  ;;  %v5477_v44 = vsel %vm796_vm1, %v5278_v56, -inf }
0x135b   : > { %5478 = vmax.xlane.f32.xlu2 %v5477_v44  ;;  %6949 = vmatpush.xpose.msk.msrb.mxu1 %vm796_vm1, %v5396_v6  ;;  %v9354_v24 = vpop.f32.mrf.mxu2 }
0x135e   : > { %6950 = vmatmul.msk.f32.vlgmr.msrb.gmra.mxu1 %vm796_vm1, %v5394_v31  ;;  %v7188_v31 = vpack.i.bf16 %v8841_v37, %v8831_v49 }
0x1362   : > { %v5450_v27 = vpop.permute.xlu0 %5449 }
0x1363   : > { %6954 = vmatmul.msk.f32.vlgmr.msra.gmra.mxu3 %vm796_vm1, %v5450_v27 }
0x1378   : > { %v9352_v22 = vpop.f32.mrf.mxu1 }
0x1380   : > { %v9356_v33 = vpop.f32.mrf.mxu1 }
0x1387   : > { %v9358_v2 = vpop.f32.mrf.mxu2 }
0x1388   : > { %v5306_v53 = vpop.f32.mrf.mxu1 }
0x1389   : > { %v5480_v47 = vsel %vm796_vm1, %v5306_v53, -inf }
0x138a   : > { %5481 = vmax.xlane.f32.xlu1 %v5480_v47 }
0x138f   : > { %v5334_v46 = vpop.f32.mrf.mxu2 }
0x1390   : > { %v5483_v39 = vsel %vm796_vm1, %v5334_v46, -inf }
0x1391   : > { %5484 = vmax.xlane.f32.xlu0 %v5483_v39 }
0x1392   : > { %v5390_v17 = vpop.f32.mrf.mxu0 }
0x1393   : > { %v5489_v57 = vsel %vm796_vm1, %v5390_v17, -inf }
0x1394   : > { %5490 = vmax.xlane.f32.xlu1 %v5489_v57 }
0x1397   : > { %v5446_v16 = vpop.f32.mrf.mxu2 }
0x1398   : > { %v5495_v32 = vsel %vm796_vm1, %v5446_v16, -inf }
0x13cc   : > { %v9363_v34 = vpop.f32.mrf.mxu3 }
0x13ce   : > { %v5479_v9 = vpop.xlane.xlu2 %5478 }
0x13cf   : > { %v5501_v29 = vsub.f32 %v5278_v56, %v5479_v9 }
0x13d1   : > { %v5509_v41 = vmul.f32 1.442695, %v5501_v29  ;;  %v7198_v29 = vpack.i.bf16 %v8857_v4, %v8853_v58 }
0x13d3   : > { %7483 = vpow2.f32 %v5509_v41 }
0x13d4   : > { %v9365_v61 = vpop.f32.mrf.mxu3 }
0x13d9   : > { %v9369_v28 = vpop.eup %7483 }
0x13da   : > { %v5525_v1 = vsel %vm796_vm1, %v9369_v28, 0.0 }
0x13db   : > { %v5418_v52 = vpop.f32.mrf.mxu1 }
0x13dc   : > { %v5362_v8 = vpop.f32.mrf.mxu3  ;;  %v5492_v25 = vsel %vm796_vm1, %v5418_v52, -inf }
0x13dd   : > { %5493 = vmax.xlane.f32.xlu0 %v5492_v25  ;;  %v5486_v20 = vsel %vm796_vm1, %v5362_v8, -inf }
0x13de   : > { %5487 = vmax.xlane.f32.xlu2 %v5486_v20 }
0x13e5   : > { %5526 = vadd.xlane.f32.xlu0 %v5525_v1 }
0x13e6   : > { %v5474_v19 = vpop.f32.mrf.mxu3  ;;  %5496 = vmax.xlane.f32.xlu2 %v5495_v32 }
0x13e7   : > { %v5498_v56 = vsel %vm796_vm1, %v5474_v19, -inf }
0x13e8   : > { %5499 = vmax.xlane.f32.xlu1 %v5498_v56 }
0x13fd   : > { %v5482_v6 = vpop.xlane.xlu1 %5481 }
0x13fe   : > { %v5502_v44 = vsub.f32 %v5306_v53, %v5482_v6 }
0x1400   : > { %v5511_v27 = vmul.f32 1.442695, %v5502_v44 }
0x1401   : > { %7189 = vrot.lane.b32.xlu1 %v7188_v31, %s9969_s20 }
0x1402   : > { %7485 = vpow2.f32 %v5511_v27 }
0x1404   : > { %v5485_v47 = vpop.xlane.xlu0 %5484 }
0x1405   : > { %v5503_v39 = vsub.f32 %v5334_v46, %v5485_v47 }
0x1407   : > { %v5513_v57 = vmul.f32 1.442695, %v5503_v39  ;;  %v5491_v9 = vpop.xlane.xlu1 %5490 }
0x1408   : > { %v9380_v41 = vpop.eup %7485  ;;  %v5505_v25 = vsub.f32 %v5390_v17, %v5491_v9  ;;  %v7193_v17 = vpack.i.bf16 %v8849_v18, %v8845_v14 }
0x1409   : > { %7487 = vpow2.f32 %v5513_v57  ;;  %7199 = vrot.lane.b32.xlu1 %v7198_v29, %s9969_s20  ;;  %v5528_v49 = vsel %vm796_vm1, %v9380_v41, 0.0 }
0x140a   : > { %v5517_v37 = vmul.f32 1.442695, %v5505_v25  ;;  %5529 = vadd.xlane.f32.xlu2 %v5528_v49 }
0x140c   : > { %7489 = vpow2.f32 %v5517_v37 }
0x140f   : > { %v9385_v53 = vpop.eup %7487 }
0x1410   : > { %v5531_v46 = vsel %vm796_vm1, %v9385_v53, 0.0 }
0x1411   : > { %5532 = vadd.xlane.f32.xlu0 %v5531_v46  ;;  %5721 = vrot.lane.b32.xlu1 %v8861_v54, %s9969_s20 }
0x1412   : > { %v9391_v58 = vpop.eup %7489 }
0x1413   : > { %v5537_v4 = vsel %vm796_vm1, %v9391_v58, 0.0 }
0x1414   : > { %5538 = vadd.xlane.f32.xlu2 %v5537_v4 }
0x1419   : > { %5781 = vrot.lane.b32.xlu1 %v9234_v63, %s9970_s22 }
0x1421   : > { %5813 = vrot.lane.b32.xlu1 %v9339_v50, %s9971_s1 }
0x1425   : > { %7194 = vrot.lane.b32.xlu0 %v7193_v17, %s9969_s20 }
0x1429   : > { %5815 = vrot.lane.b32.xlu1 %v9352_v22, %s9971_s1 }
0x1450   : > { %v5494_v54 = vpop.xlane.xlu0 %5493 }
0x1451   : > { %v5506_v20 = vsub.f32 %v5418_v52, %v5494_v54  ;;  %v5488_v1 = vpop.xlane.xlu2 %5487 }
0x1452   : > { %v5504_v31 = vsub.f32 %v5362_v8, %v5488_v1 }
0x1453   : > { %v5519_v32 = vmul.f32 1.442695, %v5506_v20 }
0x1454   : > { %v5515_v22 = vmul.f32 1.442695, %v5504_v31 }
0x1455   : > { %7491 = vpow2.f32 %v5519_v32 }
0x1459   : > { %v5497_v56 = vpop.xlane.xlu2 %5496 }
0x145a   : > { %v5507_v6 = vsub.f32 %v5446_v16, %v5497_v56  ;;  %v5527_v16 = vpop.xlane.xlu0 %5526 }
0x145b   : > { %v9404_v44 = vpop.eup %7491  ;;  %v5500_v63 = vpop.xlane.xlu1 %5499 }
0x145c   : > { %v5521_v50 = vmul.f32 1.442695, %v5507_v6  ;;  %v5508_v27 = vsub.f32 %v5474_v19, %v5500_v63  ;;  %v5540_v14 = vsel %vm796_vm1, %v9404_v44, 0.0 }
0x145d   : > { %5541 = vadd.xlane.f32.xlu2 %v5540_v14 }
0x145e   : > { %7493 = vpow2.f32 %v5521_v50  ;;  %v5523_v18 = vmul.f32 1.442695, %v5508_v27 }
0x1460   : > { %7495 = vpow2.f32 %v5523_v18 }
0x1461   : > { %7497 = vpow2.f32 %v5515_v22 }
0x1462   : > { %7499 = vrcp.f32 %v5527_v16 }
0x1464   : > { %v7494_v52 = vpop.eup %7493 }
0x1465   : > { %v5543_v47 = vsel %vm796_vm1, %v7494_v52, 0.0 }
0x1466   : > { %v9409_v39 = vpop.eup %7495  ;;  %5544 = vadd.xlane.f32.xlu2 %v5543_v47 }
0x1467   : > { %v5546_v8 = vsel %vm796_vm1, %v9409_v39, 0.0  ;;  %v7498_v19 = vpop.eup %7497 }
0x1468   : > { %5547 = vadd.xlane.f32.xlu0 %v5546_v8  ;;  %v5534_v57 = vsel %vm796_vm1, %v7498_v19, 0.0  ;;  %v7500_v9 = vpop.eup %7499 }
0x1469   : > { %v5557_v37 = vmul.f32 %v7500_v9, %v9369_v28 }
0x146e   : > { %5535 = vadd.xlane.f32.xlu2 %v5534_v57 }
0x1473   : > { %v7190_v29 = vpop.permute.xlu1 %7189 }
0x1474   : > { %v7192_v25 = vunpack.i.h.bf16 %v7190_v29  ;;  %v7191_v49 = vunpack.i.l.bf16 %v7190_v29 }
0x1476   : > { %5586 = vmatpush.msra.mxu0 %v7191_v49  ;;  %5612 = vmatpush.msra.mxu1 %v7192_v25 }
0x1477   : > { %6955 = vmatmul.msk.f32.vlgmr.msra.gmra.mxu0 %vm796_vm1, %v5557_v37 }
0x147b   : > { %v7200_v46 = vpop.permute.xlu1 %7199 }
0x147c   : > { %v7202_v4 = vunpack.i.h.bf16 %v7200_v46  ;;  %v7201_v17 = vunpack.i.l.bf16 %v7200_v46  ;;  %5817 = vrot.lane.b32.xlu0 %v9354_v24, %s9971_s1 }
0x147d   : > { %v5530_v54 = vpop.xlane.xlu2 %5529 }
0x147e   : > { %7501 = vrcp.f32 %v5530_v54  ;;  %5690 = vmatpush.msrb.mxu0 %v7201_v17  ;;  %5716 = vmatpush.msrb.mxu1 %v7202_v4 }
0x1484   : > { %v7502_v20 = vpop.eup %7501  ;;  %5821 = vrot.lane.b32.xlu0 %v9343_v30, %s9971_s1  ;;  %v5533_v24 = vpop.xlane.xlu0 %5532 }
0x1485   : > { %v5558_v28 = vmul.f32 %v7502_v20, %v9380_v41 }
0x1486   : > { %5747 = vrot.lane.b32.xlu2 %v8899_v12, %s9969_s20 }
0x1487   : > { %v5539_v1 = vpop.xlane.xlu2 %5538  ;;  %6956 = vmatmul.msk.f32.vlgmr.msra.gmra.mxu1 %vm796_vm1, %v5558_v28 }
0x1488   : > { %7503 = vrcp.f32 %v5539_v1 }
0x1489   : > { %7505 = vrcp.f32 %v5533_v24 }
0x148c   : > { %5823 = vrot.lane.b32.xlu0 %v9356_v33, %s9971_s1  ;;  %v5722_v33 = vpop.permute.xlu1 %5721 }
0x148e   : > { %v7504_v32 = vpop.eup %7503  ;;  %5783 = vrot.lane.b32.xlu2 %v9245_v55, %s9970_s22 }
0x148f   : > { %v5561_v56 = vmul.f32 %v7504_v32, %v9391_v58  ;;  %v7506_v12 = vpop.eup %7505 }
0x1490   : > { %v5559_v63 = vmul.f32 %v7506_v12, %v9385_v53 }
0x1491   : > { %6959 = vmatmul.msk.f32.vlgmr.msrb.gmra.mxu0 %vm796_vm1, %v5561_v56 }
0x1494   : > { %5825 = vrot.lane.b32.xlu0 %v9358_v2, %s9971_s1 }
0x1497   : > { %v7195_v30 = vpop.permute.xlu0 %7194 }
0x1498   : > { %v7197_v41 = vunpack.i.h.bf16 %v7195_v30  ;;  %v7196_v6 = vunpack.i.l.bf16 %v7195_v30 }
0x149a   : > { %5638 = vmatpush.msra.mxu2 %v7196_v6  ;;  %5664 = vmatpush.msrb.mxu3 %v7197_v41 }
0x149b   : > { %6957 = vmatmul.msk.f32.vlgmr.msra.gmra.mxu2 %vm796_vm1, %v5559_v63 }
0x149c   : > { %5742 = vmatpush.msrb.mxu2 %v5722_v33  ;;  %5827 = vrot.lane.b32.xlu0 %v9365_v61, %s9971_s1 }
0x14d0   : > { %v5542_v55 = vpop.xlane.xlu2 %5541 }
0x14d1   : > { %7507 = vrcp.f32 %v5542_v55 }
0x14d7   : > { %v7508_v58 = vpop.eup %7507 }
0x14d8   : > { %v5562_v2 = vmul.f32 %v7508_v58, %v9404_v44  ;;  %v9499_v58 = vld [vmem:[%s9920_s6 + $0x1] ss:$0 sm:$0xff] }
0x14d9   : > { %v5545_v31 = vpop.xlane.xlu2 %5544 }
0x14da   : > { %7509 = vrcp.f32 %v5545_v31  ;;  %6960 = vmatmul.msk.f32.vlgmr.msrb.gmra.mxu1 %vm796_vm1, %v5562_v2 }
0x14db   : > { %v5548_v14 = vpop.xlane.xlu0 %5547 }
0x14e0   : > { %v7510_v50 = vpop.eup %7509 }
0x14e1   : > { %v5563_v53 = vmul.f32 %v7510_v50, %v7494_v52  ;;  %v5536_v27 = vpop.xlane.xlu2 %5535 }
0x14e2   : > { %7511 = vrcp.f32 %v5536_v27 }
0x14e3   : > { %6961 = vmatmul.msk.f32.vlgmr.msrb.gmra.mxu2 %vm796_vm1, %v5563_v53  ;;  %7513 = vrcp.f32 %v5548_v14 }
0x14e8   : > { %v7512_v18 = vpop.eup %7511 }
0x14e9   : > { %v5560_v22 = vmul.f32 %v7512_v18, %v7498_v19  ;;  %v5748_v61 = vpop.permute.xlu2 %5747  ;;  %v7514_v47 = vpop.eup %7513 }
0x14ea   : > { %5768 = vmatpush.msra.mxu3 %v5748_v61  ;;  %v5564_v44 = vmul.f32 %v7514_v47, %v9409_v39 }
0x14eb   : > { %6958 = vmatmul.msk.f32.vlgmr.msrb.gmra.mxu3 %vm796_vm1, %v5560_v22 }
0x14ee   : > { %v5818_v20 = vpop.permute.xlu0 %5817 }
0x14f1   : > { %v5784_v19 = vpop.permute.xlu2 %5783 }
0x14f3   : > { %6962 = vmatmul.msk.f32.vlgmr.msra.gmra.mxu3 %vm796_vm1, %v5564_v44 }
0x14f4   : > { %v5588_v8 = vpop.f32.mrf.mxu0 }
0x14f5   : > { %5845 = vrot.lane.b32.xlu1 %v5588_v8, %s9972_s21 }
0x14f6   : > { %v5822_v33 = vpop.permute.xlu0 %5821 }
0x14fd   : > { %5785 = vrot.lane.b32.xlu1 %v9238_v26, %s9970_s22  ;;  %v6966_v26 = vld [vmem:[%s9919_s5 + $0x38] sm:$0xff] }
0x14fe   : > { %5939 = vmatpush.msra.mxu0 %v6966_v26  ;;  %v5824_v61 = vpop.permute.xlu0 %5823 }
0x1504   : > { %v5614_v52 = vpop.f32.mrf.mxu1 }
0x1505   : > { %5847 = vrot.lane.b32.xlu2 %v5614_v52, %s9972_s21  ;;  %5787 = vrot.lane.b32.xlu1 %v9250_v11, %s9970_s22  ;;  %v6965_v11 = vld [vmem:[%s9919_s5 + $0x30] sm:$0xff] }
0x1506   : > { %5940 = vmatpush.msra.mxu0 %v6965_v11 }
0x150e   : > { %v5692_v17 = vpop.f32.mrf.mxu0 }
0x151e   : > { %v5640_v16 = vpop.f32.mrf.mxu2 }
0x151f   : > { %5849 = vrot.lane.b32.xlu2 %v5640_v16, %s9972_s21 }
0x1527   : > { %5819 = vrot.lane.b32.xlu2 %v9363_v34, %s9971_s1 }
0x152f   : > { %5789 = vrot.lane.b32.xlu2 %v9236_v15, %s9970_s22  ;;  %v6964_v15 = vld [vmem:[%s9919_s5 + $0x28] sm:$0xff] }
0x1530   : > { %5941 = vmatpush.msra.mxu0 %v6964_v15  ;;  %v5826_v15 = vpop.permute.xlu0 %5825 }
0x1537   : > { %5791 = vrot.lane.b32.xlu2 %v9247_v21, %s9970_s22  ;;  %v5782_v21 = vpop.permute.xlu1 %5781 }
0x1538   : > { %v5869_v57 = vsel %vm796_vm1, %v9080_v62, %v5782_v21 }
0x153f   : > { %5793 = vrot.lane.b32.xlu2 %v9241_v5, %s9970_s22  ;;  %v6963_v5 = vld [vmem:[%s9919_s5 + $0x20] sm:$0xff]  ;;  %v5814_v34 = vpop.permute.xlu1 %5813 }
0x1540   : > { %5942 = vmatpush.msra.mxu0 %v6963_v5  ;;  %v5877_v9 = vsel %vm2970_vm2, %v5869_v57, %v5814_v34 }
0x1547   : > { %5795 = vrot.lane.b32.xlu2 %v9254_v7, %s9970_s22  ;;  %v5816_v39 = vpop.permute.xlu1 %5815  ;;  %v5870_v7 = vsel %vm796_vm1, %v9082_v48, %v5784_v19 }
0x1548   : > { %v5878_v46 = vsel %vm2970_vm2, %v5870_v7, %v5816_v39 }
0x1557   : > { %v5718_v24 = vpop.f32.mrf.mxu1 }
0x155f   : > { %v5848_v49 = vpop.permute.xlu2 %5847 }
0x1560   : > { %v5886_v4 = vsel %vm2979_vm3, %v5878_v46, %v5848_v49 }
0x1566   : > { %v5744_v32 = vpop.f32.mrf.mxu2 }
0x1567   : > { %v5846_v29 = vpop.permute.xlu1 %5845 }
0x1568   : > { %v5885_v25 = vsel %vm2979_vm3, %v5877_v9, %v5846_v29 }
0x1569   : > { %6968 = vmatmul.msk.f32.vlgmr.msra.gmra.mxu0 %vm727_vm0, %v5885_v25 }
0x156e   : > { %v5666_v37 = vpop.f32.mrf.mxu3 }
0x156f   : > { %5851 = vrot.lane.b32.xlu1 %v5666_v37, %s9972_s21  ;;  %v5786_v62 = vpop.permute.xlu1 %5785 }
0x1570   : > { %v5871_v54 = vsel %vm796_vm1, %v9086_v45, %v5786_v62 }
0x1571   : > { %6969 = vmatmul.msk.f32.gmra.mxu0 %vm727_vm0, %v5886_v4  ;;  %v5879_v48 = vsel %vm2970_vm2, %v5871_v54, %v5818_v20 }
0x1576   : > { %v5770_v56 = vpop.f32.mrf.mxu3 }
0x1577   : > { %5853 = vrot.lane.b32.xlu1 %v5692_v17, %s9972_s21  ;;  %v5788_v12 = vpop.permute.xlu1 %5787 }
0x1578   : > { %v5872_v41 = vsel %vm796_vm1, %v9097_v51, %v5788_v12 }
0x1579   : > { %v5850_v28 = vpop.permute.xlu2 %5849 }
0x157a   : > { %v5887_v1 = vsel %vm2979_vm3, %v5879_v48, %v5850_v28 }
0x157b   : > { %6970 = vmatmul.msk.f32.gmra.mxu0 %vm727_vm0, %v5887_v1 }
0x157f   : > { %5855 = vrot.lane.b32.xlu1 %v5718_v24, %s9972_s21 }
0x1581   : > { %v5820_v45 = vpop.permute.xlu2 %5819 }
0x1582   : > { %v5880_v6 = vsel %vm2970_vm2, %v5872_v41, %v5820_v45 }
0x1587   : > { %5857 = vrot.lane.b32.xlu1 %v5744_v32, %s9972_s21 }
0x1589   : > { %v5790_v30 = vpop.permute.xlu2 %5789 }
0x158a   : > { %v5873_v2 = vsel %vm796_vm1, %v9084_v59, %v5790_v30 }
0x158b   : > { %v5881_v14 = vsel %vm2970_vm2, %v5873_v2, %v5822_v33 }
0x158f   : > { %5859 = vrot.lane.b32.xlu1 %v5770_v56, %s9972_s21 }
0x1591   : > { %v5792_v50 = vpop.permute.xlu2 %5791 }
0x1592   : > { %v5874_v59 = vsel %vm796_vm1, %v9088_v60, %v5792_v50 }
0x1593   : > { %v5882_v16 = vsel %vm2970_vm2, %v5874_v59, %v5824_v61 }
0x1599   : > { %v5794_v8 = vpop.permute.xlu2 %5793 }
0x159a   : > { %v5875_v60 = vsel %vm796_vm1, %v9091_v43, %v5794_v8  ;;  %v5828_v43 = vpop.permute.xlu0 %5827  ;;  %v6978_v8 = vld [vmem:[%s9923_s9 + $0x20] sm:$0xff] }
0x159b   : > { %v5883_v34 = vsel %vm2970_vm2, %v5875_v60, %v5826_v15 }
0x15a1   : > { %v5796_v19 = vpop.permute.xlu2 %5795 }
0x15a2   : > { %v5876_v29 = vsel %vm796_vm1, %v9099_v38, %v5796_v19 }
0x15a3   : > { %v5884_v25 = vsel %vm2970_vm2, %v5876_v29, %v5828_v43 }
0x15e1   : > { %v5852_v63 = vpop.permute.xlu1 %5851 }
0x15e2   : > { %v5888_v55 = vsel %vm2979_vm3, %v5880_v6, %v5852_v63 }
0x15e3   : > { %6971 = vmatmul.msk.f32.gmra.mxu0 %vm727_vm0, %v5888_v55 }
0x15e6   : > { %v5944_v31 = vpop.f32.mrf.mxu0 }
0x15e7   : > { %v5945_v51 = vadd.f32 %v9499_v58, %v5944_v31 }
0x15e9   : > { %v5968_v53 = vadd.f32 %v5945_v51, %v8774_v42  ;;  %v5854_v27 = vpop.permute.xlu1 %5853 }
0x15ea   : > { %v5889_v18 = vsel %vm2979_vm3, %v5881_v14, %v5854_v27 }
0x15eb   : > { %6972 = vmatmul.msk.f32.gmra.mxu0 %vm727_vm0, %v5889_v18  ;;  %v5980_v22 = vsel %vm727_vm0, %v5968_v53, 0.0 }
0x15ec   : > { %5981 = vadd.xlane.f32.xlu2 %v5980_v22  ;;  %v6981_v22 = vld [vmem:[%s9923_s9 + $0x38] sm:$0xff] }
0x15ed   : > { %6224 = vmatpush.msra.mxu1 %v6981_v22 }
0x15ee   : > { %v5947_v47 = vpop.f32.mrf.mxu0 }
0x15ef   : > { %v5948_v44 = vadd.f32 %v9499_v58, %v5947_v47  ;;  %v6979_v47 = vld [vmem:[%s9923_s9 + $0x28] sm:$0xff] }
0x15f1   : > { %v5969_v42 = vadd.f32 %v5948_v44, %v8785_v3  ;;  %v5856_v52 = vpop.permute.xlu1 %5855 }
0x15f2   : > { %v5890_v26 = vsel %vm2979_vm3, %v5882_v16, %v5856_v52 }
0x15f3   : > { %6973 = vmatmul.msk.f32.gmra.mxu0 %vm727_vm0, %v5890_v26  ;;  %v5983_v11 = vsel %vm727_vm0, %v5969_v42, 0.0 }
0x15f4   : > { %5984 = vadd.xlane.f32.xlu0 %v5983_v11 }
0x15f8   : > { %v5950_v5 = vpop.f32.mrf.mxu0 }
0x15f9   : > { %v5951_v21 = vadd.f32 %v9499_v58, %v5950_v5  ;;  %v5858_v3 = vpop.permute.xlu1 %5857 }
0x15fa   : > { %v5891_v39 = vsel %vm2979_vm3, %v5883_v34, %v5858_v3 }
0x15fb   : > { %v5970_v57 = vadd.f32 %v5951_v21, %v8792_v23  ;;  %6974 = vmatmul.msk.f32.gmra.mxu0 %vm727_vm0, %v5891_v39 }
0x15fd   : > { %v5986_v9 = vsel %vm727_vm0, %v5970_v57, 0.0 }
0x15fe   : > { %5987 = vadd.xlane.f32.xlu1 %v5986_v9 }
0x1601   : > { %v5860_v7 = vpop.permute.xlu1 %5859 }
0x1602   : > { %v5892_v49 = vsel %vm2979_vm3, %v5884_v25, %v5860_v7 }
0x1603   : > { %6975 = vmatmul.msk.f32.gmra.mxu0 %vm727_vm0, %v5892_v49 }
0x165f   : > { %v5982_v37 = vpop.xlane.xlu2 %5981 }
0x1660   : > { %v5953_v46 = vpop.f32.mrf.mxu0  ;;  %v6004_v23 = vmul.f32 %v5982_v37, %v8492_v35 }
0x1661   : > { %v5954_v4 = vadd.f32 %v9499_v58, %v5953_v46 }
0x1662   : > { %v9533_v17 = vsub.f32 %v5968_v53, %v6004_v23 }
0x1663   : > { %v5971_v62 = vadd.f32 %v5954_v4, %v8800_v10 }
0x1664   : > { %v6020_v48 = vmul.f32 %v9533_v17, %v9533_v17 }
0x1665   : > { %v5989_v38 = vsel %vm727_vm0, %v5971_v62, 0.0 }
0x1666   : > { %5990 = vadd.xlane.f32.xlu2 %v5989_v38  ;;  %v6028_v24 = vsel %vm727_vm0, %v6020_v48, 0.0 }
0x1667   : > { %v5985_v32 = vpop.xlane.xlu0 %5984 }
0x1668   : > { %v5956_v54 = vpop.f32.mrf.mxu0  ;;  %v6005_v56 = vmul.f32 %v5985_v32, %v8492_v35 }
0x1669   : > { %v5957_v20 = vadd.f32 %v9499_v58, %v5956_v54  ;;  %v9604_v54 = vld [vmem:[%s9921_s7 + $0x1] ss:$0 sm:$0xff] }
0x166a   : > { %v9545_v30 = vsub.f32 %v5969_v42, %v6005_v56 }
0x166b   : > { %v5972_v28 = vadd.f32 %v5957_v20, %v8807_v13 }
0x166c   : > { %v6021_v55 = vmul.f32 %v9545_v30, %v9545_v30 }
0x166d   : > { %v5992_v1 = vsel %vm727_vm0, %v5972_v28, 0.0 }
0x166e   : > { %5993 = vadd.xlane.f32.xlu0 %v5992_v1  ;;  %6029 = vadd.xlane.f32.xlu2 %v6028_v24 }
0x1670   : > { %v5959_v10 = vpop.f32.mrf.mxu0 }
0x1671   : > { %v5960_v45 = vadd.f32 %v9499_v58, %v5959_v10  ;;  %v5988_v6 = vpop.xlane.xlu1 %5987 }
0x1672   : > { %v6006_v63 = vmul.f32 %v5988_v6, %v8492_v35 }
0x1673   : > { %v5973_v12 = vadd.f32 %v5960_v45, %v8815_v0  ;;  %v6031_v0 = vsel %vm727_vm0, %v6021_v55, 0.0 }
0x1674   : > { %v9553_v31 = vsub.f32 %v5970_v57, %v6006_v63 }
0x1675   : > { %v5995_v41 = vsel %vm727_vm0, %v5973_v12, 0.0 }
0x1676   : > { %5996 = vadd.xlane.f32.xlu1 %v5995_v41  ;;  %v6022_v27 = vmul.f32 %v9553_v31, %v9553_v31 }
0x1678   : > { %v5962_v13 = vpop.f32.mrf.mxu0  ;;  %v6034_v18 = vsel %vm727_vm0, %v6022_v27, 0.0 }
0x1679   : > { %v5963_v33 = vadd.f32 %v9499_v58, %v5962_v13 }
0x167b   : > { %v5974_v2 = vadd.f32 %v5963_v33, %v8822_v36 }
0x167d   : > { %v5998_v50 = vsel %vm727_vm0, %v5974_v2, 0.0 }
0x167e   : > { %6032 = vadd.xlane.f32.xlu1 %v6031_v0  ;;  %5999 = vadd.xlane.f32.xlu0 %v5998_v50 }
0x1680   : > { %v5965_v51 = vpop.f32.mrf.mxu0 }
0x1681   : > { %v5966_v53 = vadd.f32 %v9499_v58, %v5965_v51 }
0x1683   : > { %v9561_v14 = vadd.f32 %v5966_v53, %v8837_v40  ;;  %v6980_v40 = vld [vmem:[%s9923_s9 + $0x30] sm:$0xff] }
0x1684   : > { %6225 = vmatpush.msra.mxu1 %v6980_v40 }
0x1685   : > { %v6001_v36 = vsel %vm727_vm0, %v9561_v14, 0.0 }
0x1686   : > { %6002 = vadd.xlane.f32.xlu2 %v6001_v36  ;;  %6035 = vadd.xlane.f32.xlu0 %v6034_v18 }
0x1687   : > { %6226 = vmatpush.msra.mxu1 %v6979_v47 }
0x1689   : > { %6227 = vmatpush.msra.mxu1 %v6978_v8 }
0x16d9   : > { %v5991_v61 = vpop.xlane.xlu2 %5990 }
0x16da   : > { %v6007_v58 = vmul.f32 %v5991_v61, %v8492_v35 }
0x16dc   : > { %v9573_v59 = vsub.f32 %v5971_v62, %v6007_v58 }
0x16de   : > { %v6023_v44 = vmul.f32 %v9573_v59, %v9573_v59 }
0x16e0   : > { %v6037_v42 = vsel %vm727_vm0, %v6023_v44, 0.0 }
0x16e1   : > { %v5994_v52 = vpop.xlane.xlu0 %5993  ;;  %v6030_v16 = vpop.xlane.xlu2 %6029  ;;  %6038 = vadd.xlane.f32.xlu1 %v6037_v42 }
0x16e2   : > { %v6008_v26 = vmul.f32 %v5994_v52, %v8492_v35  ;;  %v6052_v11 = vmul.f32 %v6030_v16, %v8492_v35  ;;  %v7006_v52 = vld [vmem:[%s9925_s11 + $0xf8] sm:$0xff]  ;;  %v7005_v16 = vld [vmem:[%s9925_s11 + $0xf0] sm:$0xff] }
0x16e3   : > { %6283 = vmatpush.msra.mxu2 %v7006_v52 }
0x16e4   : > { %v9586_v15 = vsub.f32 %v5972_v28, %v6008_v26  ;;  %v6060_v60 = vadd.f32 1e-05, %v6052_v11  ;;  %v9611_v28 = vld [vmem:[%s9922_s8 + $0x1] ss:$0 sm:$0xff]  ;;  %v7002_v11 = vld [vmem:[%s9925_s11 + $0xd8] sm:$0xff] }
0x16e5   : > { %6284 = vmatpush.msra.mxu2 %v7005_v16  ;;  %v7003_v26 = vld [vmem:[%s9925_s11 + $0xe0] sm:$0xff] }
0x16e6   : > { %7515 = vrsqrt.f32 %v6060_v60  ;;  %v6024_v5 = vmul.f32 %v9586_v15, %v9586_v15  ;;  %vm6074_vm2 = vweird.f32 %v6060_v60 }
0x16e8   : > { %v6040_v21 = vsel %vm727_vm0, %v6024_v5, 0.0  ;;  %v7000_v5 = vld [vmem:[%s9925_s11 + $0xc8] sm:$0xff] }
0x16e9   : > { %6041 = vadd.xlane.f32.xlu2 %v6040_v21  ;;  %v5997_v34 = vpop.xlane.xlu1 %5996  ;;  %v6999_v21 = vld [vmem:[%s9925_s11 + $0xc0] sm:$0xff] }
0x16ea   : > { %v6009_v3 = vmul.f32 %v5997_v34, %v8492_v35  ;;  %v6998_v34 = vld [vmem:[%s9925_s11 + $0xb8] sm:$0xff] }
0x16ec   : > { %v7516_v39 = vpop.eup %7515  ;;  %v9592_v19 = vsub.f32 %v5973_v12, %v6009_v3 }
0x16ed   : > { %v6069_v57 = vmul.f32 %v7516_v39, %v6060_v60  ;;  %vm6075_vm1 = vweird.f32 %v7516_v39  ;;  %v7001_v60 = vld [vmem:[%s9925_s11 + $0xd0] sm:$0xff] }
0x16ee   : > { %v6025_v9 = vmul.f32 %v9592_v19, %v9592_v19  ;;  %vm6076_vm3 = vmor %vm6074_vm2, %vm6075_vm1 }
0x16ef   : > { %v6070_v29 = vmul.f32 %v7516_v39, %v6069_v57 }
0x16f0   : > { %v6043_v43 = vsel %vm727_vm0, %v6025_v9, 0.0  ;;  %v6996_v9 = vld [vmem:[%s9925_s11 + $0xa8] sm:$0xff] }
0x16f1   : > { %v6071_v25 = vmul.f32 0.5, %v6070_v29  ;;  %v6000_v7 = vpop.xlane.xlu0 %5999  ;;  %6044 = vadd.xlane.f32.xlu0 %v6043_v43  ;;  %v6033_v49 = vpop.xlane.xlu1 %6032  ;;  %v6995_v43 = vld [vmem:[%s9925_s11 + $0xa0] sm:$0xff] }
0x16f2   : > { %v6010_v37 = vmul.f32 %v6000_v7, %v8492_v35  ;;  %v6053_v46 = vmul.f32 %v6033_v49, %v8492_v35  ;;  %v6993_v49 = vld [vmem:[%s9925_s11 + $0x90] sm:$0xff] }
0x16f3   : > { %v6072_v23 = vsub.f32 1.5, %v6071_v25  ;;  %v6994_v25 = vld [vmem:[%s9925_s11 + $0x98] sm:$0xff] }
0x16f4   : > { %v9599_v4 = vsub.f32 %v5974_v2, %v6010_v37  ;;  %v6061_v62 = vadd.f32 1e-05, %v6053_v46  ;;  %v6992_v46 = vld [vmem:[%s9925_s11 + $0x88] sm:$0xff] }
0x16f5   : > { %v6073_v38 = vmul.f32 %v7516_v39, %v6072_v23 }
0x16f6   : > { %7517 = vrsqrt.f32 %v6061_v62  ;;  %v6026_v20 = vmul.f32 %v9599_v4, %v9599_v4  ;;  %vm6084_vm6 = vweird.f32 %v6061_v62 }
0x16f7   : > { %v6077_v48 = vsel %vm6076_vm3, %v7516_v39, %v6073_v38  ;;  %v6997_v39 = vld [vmem:[%s9925_s11 + $0xb0] sm:$0xff] }
0x16f8   : > { %v6148_v1 = vmul.f32 %v6077_v48, %v9533_v17  ;;  %v6046_v24 = vsel %vm727_vm0, %v6026_v20, 0.0  ;;  %v6991_v20 = vld [vmem:[%s9925_s11 + $0x80] sm:$0xff] }
0x16f9   : > { %6047 = vadd.xlane.f32.xlu1 %v6046_v24  ;;  %v6003_v32 = vpop.xlane.xlu2 %6002  ;;  %v6036_v10 = vpop.xlane.xlu0 %6035 }
0x16fa   : > { %v6159_v56 = vmul.f32 %v9604_v54, %v6148_v1  ;;  %v6011_v45 = vmul.f32 %v6003_v32, %v8492_v35  ;;  %v6054_v12 = vmul.f32 %v6036_v10, %v8492_v35 }
0x16fc   : > { %v7518_v41 = vpop.eup %7517  ;;  %v9619_v6 = vadd.f32 %v9611_v28, %v6159_v56  ;;  %v9622_v13 = vsub.f32 %v9561_v14, %v6011_v45  ;;  %v6062_v63 = vadd.f32 1e-05, %v6054_v12 }
0x16fd   : > { %v6079_v17 = vmul.f32 %v7518_v41, %v6061_v62  ;;  %vm6085_vm5 = vweird.f32 %v7518_v41 }
0x16fe   : > { %7519 = vrsqrt.f32 %v6062_v63  ;;  %6983 = vmatmul.msk.f32.vlgmr.msra.gmra.mxu1 %vm727_vm0, %v9619_v6  ;;  %v6027_v33 = vmul.f32 %v9622_v13, %v9622_v13  ;;  %vm6086_vm7 = vmor %vm6084_vm6, %vm6085_vm5  ;;  %vm6094_vm9 = vweird.f32 %v6062_v63 }
0x16ff   : > { %v6080_v55 = vmul.f32 %v7518_v41, %v6079_v17 }
0x1700   : > { %v6049_v2 = vsel %vm727_vm0, %v6027_v33, 0.0 }
0x1701   : > { %v6081_v0 = vmul.f32 0.5, %v6080_v55  ;;  %6050 = vadd.xlane.f32.xlu2 %v6049_v2 }
0x1703   : > { %v6082_v50 = vsub.f32 1.5, %v6081_v0 }
0x1704   : > { %v7520_v51 = vpop.eup %7519 }
0x1705   : > { %v6083_v53 = vmul.f32 %v7518_v41, %v6082_v50  ;;  %v6089_v27 = vmul.f32 %v7520_v51, %v6062_v63  ;;  %vm6095_vm8 = vweird.f32 %v7520_v51 }
0x1706   : > { %vm6096_vm10 = vmor %vm6094_vm9, %vm6095_vm8 }
0x1707   : > { %v6087_v14 = vsel %vm6086_vm7, %v7518_v41, %v6083_v53  ;;  %v6090_v36 = vmul.f32 %v7520_v51, %v6089_v27 }
0x1708   : > { %v6149_v18 = vmul.f32 %v6087_v14, %v9545_v30 }
0x1709   : > { %v6091_v22 = vmul.f32 0.5, %v6090_v36 }
0x170a   : > { %v6160_v61 = vmul.f32 %v9604_v54, %v6149_v18 }
0x170b   : > { %v6092_v58 = vsub.f32 1.5, %v6091_v22 }
0x170c   : > { %v9632_v40 = vadd.f32 %v9611_v28, %v6160_v61 }
0x170d   : > { %v6093_v47 = vmul.f32 %v7520_v51, %v6092_v58 }
0x170e   : > { %6984 = vmatmul.msk.f32.gmra.mxu1 %vm727_vm0, %v9632_v40 }
0x170f   : > { %v6097_v44 = vsel %vm6096_vm10, %v7520_v51, %v6093_v47 }
0x1710   : > { %v6150_v8 = vmul.f32 %v6097_v44, %v9553_v31  ;;  %v7004_v31 = vld [vmem:[%s9925_s11 + $0xe8] sm:$0xff] }
0x1711   : > { %6285 = vmatpush.msra.mxu2 %v7004_v31 }
0x1712   : > { %v6161_v42 = vmul.f32 %v9604_v54, %v6150_v8 }
0x1713   : > { %6286 = vmatpush.msra.mxu2 %v7003_v26 }
0x1714   : > { %v9639_v30 = vadd.f32 %v9611_v28, %v6161_v42 }
0x1715   : > { %6287 = vmatpush.msra.mxu2 %v7002_v11 }
0x1716   : > { %6985 = vmatmul.msk.f32.gmra.mxu1 %vm727_vm0, %v9639_v30 }
0x1717   : > { %6288 = vmatpush.msra.mxu2 %v7001_v60 }
0x1719   : > { %6289 = vmatpush.msra.mxu2 %v7000_v5 }
0x171b   : > { %6290 = vmatpush.msra.mxu2 %v6999_v21 }
0x171d   : > { %6291 = vmatpush.msra.mxu2 %v6998_v34 }
0x171f   : > { %6292 = vmatpush.msra.mxu2 %v6997_v39 }
0x1721   : > { %6293 = vmatpush.msra.mxu2 %v6996_v9 }
0x1723   : > { %6294 = vmatpush.msra.mxu2 %v6995_v43 }
0x1725   : > { %6295 = vmatpush.msra.mxu2 %v6994_v25 }
0x1727   : > { %6296 = vmatpush.msra.mxu2 %v6993_v49 }
0x1729   : > { %6297 = vmatpush.msra.mxu2 %v6992_v46 }
0x172b   : > { %6298 = vmatpush.msra.mxu2 %v6991_v20 }
0x1754   : > { %v6039_v3 = vpop.xlane.xlu1 %6038 }
0x1755   : > { %v6055_v57 = vmul.f32 %v6039_v3, %v8492_v35 }
0x1757   : > { %v6063_v29 = vadd.f32 1e-05, %v6055_v57 }
0x1759   : > { %7521 = vrsqrt.f32 %v6063_v29  ;;  %vm6104_vm12 = vweird.f32 %v6063_v29 }
0x175c   : > { %v6042_v7 = vpop.xlane.xlu2 %6041 }
0x175d   : > { %v6056_v37 = vmul.f32 %v6042_v7, %v8492_v35 }
0x175f   : > { %v7522_v23 = vpop.eup %7521  ;;  %v6064_v62 = vadd.f32 1e-05, %v6056_v37 }
0x1760   : > { %v6099_v38 = vmul.f32 %v7522_v23, %v6063_v29  ;;  %vm6105_vm11 = vweird.f32 %v7522_v23 }
0x1761   : > { %7523 = vrsqrt.f32 %v6064_v62  ;;  %vm6106_vm13 = vmor %vm6104_vm12, %vm6105_vm11  ;;  %vm6114_vm15 = vweird.f32 %v6064_v62 }
0x1762   : > { %v6100_v48 = vmul.f32 %v7522_v23, %v6099_v38 }
0x1764   : > { %v6101_v1 = vmul.f32 0.5, %v6100_v48  ;;  %v6045_v24 = vpop.xlane.xlu0 %6044 }
0x1765   : > { %v6057_v32 = vmul.f32 %v6045_v24, %v8492_v35 }
0x1766   : > { %v6102_v10 = vsub.f32 1.5, %v6101_v1 }
0x1767   : > { %v7524_v56 = vpop.eup %7523  ;;  %v6065_v45 = vadd.f32 1e-05, %v6057_v32 }
0x1768   : > { %v6103_v12 = vmul.f32 %v7522_v23, %v6102_v10  ;;  %v6109_v41 = vmul.f32 %v7524_v56, %v6064_v62  ;;  %vm6115_vm14 = vweird.f32 %v7524_v56 }
0x1769   : > { %7525 = vrsqrt.f32 %v6065_v45  ;;  %vm6116_vm4 = vmor %vm6114_vm15, %vm6115_vm14  ;;  %vm6124_vm2 = vweird.f32 %v6065_v45 }
0x176a   : > { %v6107_v63 = vsel %vm6106_vm13, %v7522_v23, %v6103_v12  ;;  %v6110_v17 = vmul.f32 %v7524_v56, %v6109_v41 }
0x176b   : > { %v6151_v33 = vmul.f32 %v6107_v63, %v9573_v59 }
0x176c   : > { %v6111_v55 = vmul.f32 0.5, %v6110_v17  ;;  %v6048_v2 = vpop.xlane.xlu1 %6047 }
0x176d   : > { %v6058_v0 = vmul.f32 %v6048_v2, %v8492_v35  ;;  %v6162_v50 = vmul.f32 %v9604_v54, %v6151_v33 }
0x176e   : > { %v6112_v51 = vsub.f32 1.5, %v6111_v55 }
0x176f   : > { %v7526_v53 = vpop.eup %7525  ;;  %v6066_v27 = vadd.f32 1e-05, %v6058_v0  ;;  %v9698_v14 = vadd.f32 %v9611_v28, %v6162_v50  ;;  %v7221_v50 = vld [vmem:[%s9926_s12 + $0x1] ss:$0 sm:$0xff] }
0x1770   : > { %v6113_v36 = vmul.f32 %v7524_v56, %v6112_v51  ;;  %v6119_v18 = vmul.f32 %v7526_v53, %v6065_v45  ;;  %vm6125_vm1 = vweird.f32 %v7526_v53 }
0x1771   : > { %7527 = vrsqrt.f32 %v6066_v27  ;;  %6986 = vmatmul.msk.f32.gmra.mxu1 %vm727_vm0, %v9698_v14  ;;  %vm6126_vm3 = vmor %vm6124_vm2, %vm6125_vm1  ;;  %vm6134_vm6 = vweird.f32 %v6066_v27 }
0x1772   : > { %v6117_v59 = vsel %vm6116_vm4, %v7524_v56, %v6113_v36  ;;  %v6120_v22 = vmul.f32 %v7526_v53, %v6119_v18 }
0x1773   : > { %v6152_v61 = vmul.f32 %v6117_v59, %v9586_v15  ;;  %v9711_v15 = vld [vmem:[%s9924_s10 + $0x1] ss:$0 sm:$0xff] }
0x1774   : > { %v6121_v58 = vmul.f32 0.5, %v6120_v22  ;;  %v6051_v47 = vpop.xlane.xlu2 %6050 }
0x1775   : > { %v6059_v44 = vmul.f32 %v6051_v47, %v8492_v35  ;;  %v6163_v8 = vmul.f32 %v9604_v54, %v6152_v61 }
0x1776   : > { %v6122_v42 = vsub.f32 1.5, %v6121_v58 }
0x1777   : > { %v7528_v52 = vpop.eup %7527  ;;  %v6067_v16 = vadd.f32 1e-05, %v6059_v44  ;;  %v9706_v31 = vadd.f32 %v9611_v28, %v6163_v8 }
0x1778   : > { %v6123_v26 = vmul.f32 %v7526_v53, %v6122_v42  ;;  %v6129_v11 = vmul.f32 %v7528_v52, %v6066_v27  ;;  %vm6135_vm5 = vweird.f32 %v7528_v52 }
0x1779   : > { %7529 = vrsqrt.f32 %v6067_v16  ;;  %6987 = vmatmul.msk.f32.gmra.mxu1 %vm727_vm0, %v9706_v31  ;;  %vm6136_vm7 = vmor %vm6134_vm6, %vm6135_vm5  ;;  %vm6144_vm9 = vweird.f32 %v6067_v16 }
0x177a   : > { %v6127_v60 = vsel %vm6126_vm3, %v7526_v53, %v6123_v26  ;;  %v6130_v5 = vmul.f32 %v7528_v52, %v6129_v11 }
0x177b   : > { %v6153_v21 = vmul.f32 %v6127_v60, %v9592_v19  ;;  %v6229_v34 = vpop.f32.mrf.mxu1 }
0x177c   : > { %v6131_v3 = vmul.f32 0.5, %v6130_v5  ;;  %v6230_v39 = vadd.f32 %v9711_v15, %v6229_v34 }
0x177d   : > { %v6164_v57 = vmul.f32 %v9604_v54, %v6153_v21 }
0x177e   : > { %v6132_v9 = vsub.f32 1.5, %v6131_v3  ;;  %v6253_v29 = vmax.f32 %v6230_v39, 0.0 }
0x177f   : > { %v7530_v43 = vpop.eup %7529  ;;  %v9719_v25 = vadd.f32 %v9611_v28, %v6164_v57 }
0x1780   : > { %v6133_v7 = vmul.f32 %v7528_v52, %v6132_v9  ;;  %v6139_v49 = vmul.f32 %v7530_v43, %v6067_v16  ;;  %6299 = vmatmul.f32.vlgmr.msra.gmra.mxu2 %v6253_v29  ;;  %vm6145_vm8 = vweird.f32 %v7530_v43 }
0x1781   : > { %6988 = vmatmul.msk.f32.gmra.mxu1 %vm727_vm0, %v9719_v25  ;;  %vm6146_vm10 = vmor %vm6144_vm9, %vm6145_vm8 }
0x1782   : > { %v6137_v19 = vsel %vm6136_vm7, %v7528_v52, %v6133_v7  ;;  %v6140_v37 = vmul.f32 %v7530_v43, %v6139_v49 }
0x1783   : > { %v6154_v46 = vmul.f32 %v6137_v19, %v9599_v4 }
0x1784   : > { %v6141_v23 = vmul.f32 0.5, %v6140_v37 }
0x1785   : > { %v6165_v62 = vmul.f32 %v9604_v54, %v6154_v46 }
0x1786   : > { %v6142_v38 = vsub.f32 1.5, %v6141_v23 }
0x1787   : > { %v9726_v20 = vadd.f32 %v9611_v28, %v6165_v62 }
0x1788   : > { %v6143_v48 = vmul.f32 %v7530_v43, %v6142_v38 }
0x1789   : > { %6989 = vmatmul.msk.f32.gmra.mxu1 %vm727_vm0, %v9726_v20 }
0x178a   : > { %v6147_v1 = vsel %vm6146_vm10, %v7530_v43, %v6143_v48 }
0x178b   : > { %v6155_v24 = vmul.f32 %v6147_v1, %v9622_v13  ;;  %v6232_v32 = vpop.f32.mrf.mxu1 }
0x178c   : > { %v6233_v4 = vadd.f32 %v9711_v15, %v6232_v32 }
0x178d   : > { %v6166_v10 = vmul.f32 %v9604_v54, %v6155_v24 }
0x178e   : > { %v6254_v56 = vmax.f32 %v6233_v4, 0.0 }
0x178f   : > { %v9734_v45 = vadd.f32 %v9611_v28, %v6166_v10 }
0x1790   : > { %6302 = vmatmul.f32.gmra.mxu2 %v6254_v56 }
0x1791   : > { %6990 = vmatmul.msk.f32.gmra.mxu1 %vm727_vm0, %v9734_v45 }
0x1793   : > { %v6235_v12 = vpop.f32.mrf.mxu1 }
0x1794   : > { %v6236_v41 = vadd.f32 %v9711_v15, %v6235_v12 }
0x1796   : > { %v6255_v63 = vmax.f32 %v6236_v41, 0.0 }
0x1798   : > { %6305 = vmatmul.f32.gmra.mxu2 %v6255_v63 }
0x17ee   : > { %v6238_v17 = vpop.f32.mrf.mxu1 }
0x17ef   : > { %v6239_v13 = vadd.f32 %v9711_v15, %v6238_v17 }
0x17f1   : > { %v6256_v33 = vmax.f32 %v6239_v13, 0.0 }
0x17f3   : > { %6308 = vmatmul.f32.gmra.mxu2 %v6256_v33 }
0x17f6   : > { %v6241_v55 = vpop.f32.mrf.mxu1 }
0x17f7   : > { %v6242_v54 = vadd.f32 %v9711_v15, %v6241_v55 }
0x17f9   : > { %v6257_v2 = vmax.f32 %v6242_v54, 0.0 }
0x17fb   : > { %6311 = vmatmul.f32.gmra.mxu2 %v6257_v2 }
0x17fe   : > { %v6244_v28 = vpop.f32.mrf.mxu1 }
0x17ff   : > { %v6245_v0 = vadd.f32 %v9711_v15, %v6244_v28 }
0x1801   : > { %v6258_v51 = vmax.f32 %v6245_v0, 0.0 }
0x1803   : > { %v6300_v53 = vpop.f32.mrf.mxu2  ;;  %6314 = vmatmul.f32.gmra.mxu2 %v6258_v51 }
0x1804   : > { %v6301_v27 = vadd.f32 %v7221_v50, %v6300_v53 }
0x1806   : > { %v6324_v36 = vadd.f32 %v6301_v27, %v9619_v6  ;;  %v6247_v18 = vpop.f32.mrf.mxu1 }
0x1807   : > { %v6248_v59 = vadd.f32 %v9711_v15, %v6247_v18 }
0x1808   : > { %v6336_v22 = vsel %vm727_vm0, %v6324_v36, 0.0 }
0x1809   : > { %v6259_v61 = vmax.f32 %v6248_v59, 0.0  ;;  %6337 = vadd.xlane.f32.xlu0 %v6336_v22 }
0x180b   : > { %6317 = vmatmul.f32.gmra.mxu2 %v6259_v61 }
0x180e   : > { %v6250_v58 = vpop.f32.mrf.mxu1 }
0x180f   : > { %v6251_v47 = vadd.f32 %v9711_v15, %v6250_v58 }
0x1811   : > { %v6260_v44 = vmax.f32 %v6251_v47, 0.0 }
0x1813   : > { %v6303_v8 = vpop.f32.mrf.mxu2  ;;  %6320 = vmatmul.f32.gmra.mxu2 %v6260_v44 }
0x1814   : > { %v6304_v42 = vadd.f32 %v7221_v50, %v6303_v8 }
0x1816   : > { %v6325_v52 = vadd.f32 %v6304_v42, %v9632_v40 }
0x1818   : > { %v6339_v16 = vsel %vm727_vm0, %v6325_v52, 0.0 }
0x1819   : > { %6340 = vadd.xlane.f32.xlu1 %v6339_v16 }
0x181b   : > { %v6306_v6 = vpop.f32.mrf.mxu2 }
0x181c   : > { %v6307_v26 = vadd.f32 %v7221_v50, %v6306_v6 }
0x181e   : > { %v6326_v11 = vadd.f32 %v6307_v26, %v9639_v30 }
0x1820   : > { %v6342_v60 = vsel %vm727_vm0, %v6326_v11, 0.0 }
0x1821   : > { %6343 = vadd.xlane.f32.xlu2 %v6342_v60 }
0x1876   : > { %v6309_v5 = vpop.f32.mrf.mxu2 }
0x1877   : > { %v6310_v21 = vadd.f32 %v7221_v50, %v6309_v5 }
0x1879   : > { %v6327_v15 = vadd.f32 %v6310_v21, %v9698_v14 }
0x187b   : > { %v6345_v34 = vsel %vm727_vm0, %v6327_v15, 0.0 }
0x187c   : > { %6346 = vadd.xlane.f32.xlu0 %v6345_v34  ;;  %v6338_v9 = vpop.xlane.xlu0 %6337 }
0x187d   : > { %v6360_v30 = vmul.f32 %v6338_v9, %v8492_v35 }
0x187e   : > { %v6312_v3 = vpop.f32.mrf.mxu2 }
0x187f   : > { %v6313_v39 = vadd.f32 %v7221_v50, %v6312_v3  ;;  %v9759_v49 = vsub.f32 %v6324_v36, %v6360_v30 }
0x1881   : > { %v6328_v40 = vadd.f32 %v6313_v39, %v9706_v31  ;;  %v6376_v23 = vmul.f32 %v9759_v49, %v9759_v49 }
0x1883   : > { %v6348_v57 = vsel %vm727_vm0, %v6328_v40, 0.0 }
0x1884   : > { %6349 = vadd.xlane.f32.xlu1 %v6348_v57 }
0x1886   : > { %v6315_v29 = vpop.f32.mrf.mxu2 }
0x1887   : > { %v6316_v43 = vadd.f32 %v7221_v50, %v6315_v29 }
0x1889   : > { %v6329_v7 = vadd.f32 %v6316_v43, %v9719_v25  ;;  %v6384_v25 = vsel %vm727_vm0, %v6376_v23, 0.0 }
0x188b   : > { %v6351_v14 = vsel %vm727_vm0, %v6329_v7, 0.0 }
0x188c   : > { %6352 = vadd.xlane.f32.xlu2 %v6351_v14  ;;  %v6341_v19 = vpop.xlane.xlu1 %6340 }
0x188d   : > { %v6361_v46 = vmul.f32 %v6341_v19, %v8492_v35 }
0x188e   : > { %v6318_v37 = vpop.f32.mrf.mxu2 }
0x188f   : > { %v6319_v31 = vadd.f32 %v7221_v50, %v6318_v37  ;;  %v9766_v38 = vsub.f32 %v6325_v52, %v6361_v46 }
0x1891   : > { %v6330_v62 = vadd.f32 %v6319_v31, %v9726_v20  ;;  %v6377_v10 = vmul.f32 %v9766_v38, %v9766_v38 }
0x1893   : > { %v6354_v48 = vsel %vm727_vm0, %v6330_v62, 0.0  ;;  %v6387_v41 = vsel %vm727_vm0, %v6377_v10, 0.0 }
0x1894   : > { %v6344_v1 = vpop.xlane.xlu2 %6343  ;;  %6355 = vadd.xlane.f32.xlu0 %v6354_v48  ;;  %6385 = vadd.xlane.f32.xlu2 %v6384_v25 }
0x1895   : > { %v6362_v32 = vmul.f32 %v6344_v1, %v8492_v35 }
0x1896   : > { %v6321_v24 = vpop.f32.mrf.mxu2 }
0x1897   : > { %v6322_v4 = vadd.f32 %v7221_v50, %v6321_v24  ;;  %v9774_v12 = vsub.f32 %v6326_v11, %v6362_v32 }
0x1899   : > { %v6331_v56 = vadd.f32 %v6322_v4, %v9734_v45  ;;  %v6378_v63 = vmul.f32 %v9774_v12, %v9774_v12 }
0x189b   : > { %v6357_v20 = vsel %vm727_vm0, %v6331_v56, 0.0  ;;  %v6390_v17 = vsel %vm727_vm0, %v6378_v63, 0.0 }
0x189c   : > { %6358 = vadd.xlane.f32.xlu1 %v6357_v20  ;;  %6388 = vadd.xlane.f32.xlu0 %v6387_v41 }
0x18a4   : > { %6391 = vadd.xlane.f32.xlu1 %v6390_v17 }
0x18ef   : > { %v6347_v13 = vpop.xlane.xlu0 %6346 }
0x18f0   : > { %v6363_v33 = vmul.f32 %v6347_v13, %v8492_v35 }
0x18f2   : > { %v9782_v55 = vsub.f32 %v6327_v15, %v6363_v33 }
0x18f4   : > { %v6379_v45 = vmul.f32 %v9782_v55, %v9782_v55 }
0x18f6   : > { %v6393_v54 = vsel %vm727_vm0, %v6379_v45, 0.0 }
0x18f7   : > { %v6350_v2 = vpop.xlane.xlu1 %6349  ;;  %6394 = vadd.xlane.f32.xlu2 %v6393_v54 }
0x18f8   : > { %v6364_v28 = vmul.f32 %v6350_v2, %v8492_v35 }
0x18fa   : > { %v9788_v0 = vsub.f32 %v6328_v40, %v6364_v28 }
0x18fc   : > { %v6380_v50 = vmul.f32 %v9788_v0, %v9788_v0 }
0x18fe   : > { %v6396_v51 = vsel %vm727_vm0, %v6380_v50, 0.0 }
0x18ff   : > { %v6353_v53 = vpop.xlane.xlu2 %6352  ;;  %6397 = vadd.xlane.f32.xlu0 %v6396_v51 }
0x1900   : > { %v6365_v27 = vmul.f32 %v6353_v53, %v8492_v35 }
0x1902   : > { %v9794_v36 = vsub.f32 %v6329_v7, %v6365_v27 }
0x1904   : > { %v6381_v18 = vmul.f32 %v9794_v36, %v9794_v36 }
0x1906   : > { %v6399_v59 = vsel %vm727_vm0, %v6381_v18, 0.0 }
0x1907   : > { %6400 = vadd.xlane.f32.xlu1 %v6399_v59  ;;  %v6356_v22 = vpop.xlane.xlu0 %6355  ;;  %v6386_v26 = vpop.xlane.xlu2 %6385 }
0x1908   : > { %v6366_v61 = vmul.f32 %v6356_v22, %v8492_v35  ;;  %v6408_v5 = vmul.f32 %v6386_v26, %v8492_v35 }
0x190a   : > { %v9800_v58 = vsub.f32 %v6330_v62, %v6366_v61  ;;  %v6416_v34 = vadd.f32 1e-05, %v6408_v5 }
0x190c   : > { %v6382_v47 = vmul.f32 %v9800_v58, %v9800_v58  ;;  %7531 = vrsqrt.f32 %v6416_v34  ;;  %vm6430_vm13 = vweird.f32 %v6416_v34 }
0x190e   : > { %v6402_v44 = vsel %vm727_vm0, %v6382_v47, 0.0 }
0x190f   : > { %v6359_v8 = vpop.xlane.xlu1 %6358  ;;  %6403 = vadd.xlane.f32.xlu2 %v6402_v44  ;;  %v6389_v11 = vpop.xlane.xlu0 %6388 }
0x1910   : > { %v6367_v42 = vmul.f32 %v6359_v8, %v8492_v35  ;;  %v6409_v21 = vmul.f32 %v6389_v11, %v8492_v35  ;;  %v9843_v11 = vld [vmem:[%s9927_s13 + $0x1] ss:$0 sm:$0xff] }
0x1912   : > { %v9806_v52 = vsub.f32 %v6331_v56, %v6367_v42  ;;  %v6417_v3 = vadd.f32 1e-05, %v6409_v21  ;;  %v9814_v40 = vpop.eup %7531 }
0x1913   : > { %v6425_v7 = vmul.f32 %v9814_v40, %v6416_v34  ;;  %vm6431_vm11 = vweird.f32 %v9814_v40 }
0x1914   : > { %v6383_v16 = vmul.f32 %v9806_v52, %v9806_v52  ;;  %7533 = vrsqrt.f32 %v6417_v3  ;;  %vm9826_vm15 = vmor %vm6430_vm13, %vm6431_vm11  ;;  %vm6440_vm4 = vweird.f32 %v6417_v3 }
0x1915   : > { %v6426_v37 = vmul.f32 %v9814_v40, %v6425_v7  ;;  %v6600_v7 = vld [vmem:[%s9929_s15 + $0x10] sm:$0xff] }
0x1916   : > { %v6405_v6 = vsel %vm727_vm0, %v6383_v16, 0.0 }
0x1917   : > { %6406 = vadd.xlane.f32.xlu0 %v6405_v6  ;;  %v6392_v60 = vpop.xlane.xlu1 %6391  ;;  %v6427_v1 = vmul.f32 0.5, %v6426_v37 }
0x1918   : > { %v6410_v15 = vmul.f32 %v6392_v60, %v8492_v35 }
0x1919   : > { %v6428_v56 = vsub.f32 1.5, %v6427_v1 }
0x191a   : > { %v6418_v39 = vadd.f32 1e-05, %v6410_v15  ;;  %v7534_v9 = vpop.eup %7533 }
0x191b   : > { %v6435_v14 = vmul.f32 %v7534_v9, %v6417_v3  ;;  %v6429_v2 = vmul.f32 %v9814_v40, %v6428_v56  ;;  %vm6441_vm12 = vweird.f32 %v7534_v9 }
0x191c   : > { %7535 = vrsqrt.f32 %v6418_v39  ;;  %vm9830_vm2 = vmor %vm6440_vm4, %vm6441_vm12  ;;  %vm6450_vm3 = vweird.f32 %v6418_v39 }
0x191d   : > { %v6436_v46 = vmul.f32 %v7534_v9, %v6435_v14  ;;  %v6433_v22 = vsel %vm9826_vm15, %v9814_v40, %v6429_v2 }
0x191e   : > { %v6504_v60 = vmul.f32 %v6433_v22, %v9759_v49  ;;  %v9856_v49 = vld [vmem:[%s9928_s14 + $0x1] ss:$0 sm:$0xff] }
0x191f   : > { %v6437_v24 = vmul.f32 0.5, %v6436_v46  ;;  %v6599_v46 = vld [vmem:[%s9929_s15 + $0x8] sm:$0xff] }
0x1921   : > { %v6438_v20 = vsub.f32 1.5, %v6437_v24  ;;  %v6598_v24 = vld [vmem:[%s9929_s15] sm:$0xff] }
0x1922   : > { %v7536_v30 = vpop.eup %7535 }
0x1923   : > { %v6445_v19 = vmul.f32 %v7536_v30, %v6418_v39  ;;  %v6439_v28 = vmul.f32 %v7534_v9, %v6438_v20  ;;  %vm6451_vm14 = vweird.f32 %v7536_v30 }
0x1924   : > { %vm6452_vm5 = vmor %vm6450_vm3, %vm6451_vm14 }
0x1925   : > { %v6446_v23 = vmul.f32 %v7536_v30, %v6445_v19  ;;  %v6443_v61 = vsel %vm9830_vm2, %v7534_v9, %v6439_v28 }
0x1926   : > { %v6505_v5 = vmul.f32 %v6443_v61, %v9766_v38  ;;  %v6515_v38 = vmul.f32 %v9843_v11, %v6504_v60 }
0x1927   : > { %v6447_v4 = vmul.f32 0.5, %v6446_v23 }
0x1928   : > { %v6526_v23 = vadd.f32 %v9856_v49, %v6515_v38 }
0x1929   : > { %v6448_v17 = vsub.f32 1.5, %v6447_v4 }
0x192b   : > { %v6449_v51 = vmul.f32 %v7536_v30, %v6448_v17 }
0x192d   : > { %v6453_v8 = vsel %vm6452_vm5, %v7536_v30, %v6449_v51  ;;  %vm6614_vm5 = vcmask 1041409  }
0x192e   : > { %v6506_v15 = vmul.f32 %v6453_v8, %v9774_v12  ;;  %v6516_v12 = vmul.f32 %v9843_v11, %v6505_v5 }
0x196a   : > { %v6395_v57 = vpop.xlane.xlu2 %6394 }
0x196b   : > { %v6411_v29 = vmul.f32 %v6395_v57, %v8492_v35 }
0x196d   : > { %v6419_v43 = vadd.f32 1e-05, %v6411_v29  ;;  %v6517_v29 = vmul.f32 %v9843_v11, %v6506_v15 }
0x196f   : > { %7537 = vrsqrt.f32 %v6419_v43  ;;  %vm6460_vm6 = vweird.f32 %v6419_v43 }
0x1972   : > { %v6398_v31 = vpop.xlane.xlu0 %6397 }
0x1973   : > { %v6412_v62 = vmul.f32 %v6398_v31, %v8492_v35 }
0x1975   : > { %v7538_v48 = vpop.eup %7537  ;;  %v6420_v25 = vadd.f32 1e-05, %v6412_v62  ;;  %v6527_v62 = vadd.f32 %v9856_v49, %v6516_v12 }
0x1976   : > { %v6455_v32 = vmul.f32 %v7538_v48, %v6419_v43  ;;  %vm6461_vm1 = vweird.f32 %v7538_v48  ;;  %v6601_v43 = vld [vmem:[%s9929_s15 + $0x18] sm:$0xff] }
0x1977   : > { %7539 = vrsqrt.f32 %v6420_v25  ;;  %vm6462_vm7 = vmor %vm6460_vm6, %vm6461_vm1  ;;  %vm6470_vm9 = vweird.f32 %v6420_v25  ;;  %6642 = vmatpush.msrb.mxu3 %v6601_v43  ;;  %v6541_v20 = vsel %vm727_vm0, %v6527_v62, 0.0  ;;  %vm6616_vm6 = vcmask 1042434  }
0x1978   : > { %v6456_v10 = vmul.f32 %v7538_v48, %v6455_v32 }
0x1979   : > { %6643 = vmatpush.msrb.mxu3 %v6600_v7 }
0x197a   : > { %v6457_v41 = vmul.f32 0.5, %v6456_v10  ;;  %v6401_v63 = vpop.xlane.xlu1 %6400 }
0x197b   : > { %v6413_v13 = vmul.f32 %v6401_v63, %v8492_v35  ;;  %6644 = vmatpush.msrb.mxu3 %v6599_v46  ;;  %v6534_v63 = vsel %vm727_vm0, %v6526_v23, 0.0 }
0x197c   : > { %v6458_v33 = vsub.f32 1.5, %v6457_v41  ;;  %v6535_v51 = vrot.slane %v6534_v63, 4 }
0x197d   : > { %v7540_v45 = vpop.eup %7539  ;;  %v9822_v54 = vadd.f32 1e-05, %v6413_v13  ;;  %6645 = vmatpush.msrb.mxu3 %v6598_v24 }
0x197e   : > { %v6465_v50 = vmul.f32 %v7540_v45, %v6420_v25  ;;  %v6459_v27 = vmul.f32 %v7538_v48, %v6458_v33  ;;  %vm6471_vm8 = vweird.f32 %v7540_v45  ;;  %v6528_v25 = vadd.f32 %v9856_v49, %v6517_v29 }
0x197f   : > { %7541 = vrsqrt.f32 %v9822_v54  ;;  %vm6472_vm10 = vmor %vm6470_vm9, %vm6471_vm8  ;;  %vm6480_vm12 = vweird.f32 %v9822_v54  ;;  %vm6620_vm8 = vcmask 1044484   ;;  %vm6622_vm9 = vcmask 1045509  }
0x1980   : > { %v6466_v18 = vmul.f32 %v7540_v45, %v6465_v50  ;;  %v6463_v16 = vsel %vm6462_vm7, %v7538_v48, %v6459_v27  ;;  %v6548_v17 = vsel %vm727_vm0, %v6528_v25, 0.0  ;;  %vm6618_vm7 = vcmask 1043459  }
0x1981   : > { %v6507_v39 = vmul.f32 %v6463_v16, %v9782_v55  ;;  %v6549_v53 = vrot.slane %v6548_v17, 4 }
0x1982   : > { %v6467_v47 = vmul.f32 0.5, %v6466_v18  ;;  %v6404_v44 = vpop.xlane.xlu2 %6403 }
0x1983   : > { %v6414_v42 = vmul.f32 %v6404_v44, %v8492_v35  ;;  %v6518_v14 = vmul.f32 %v9843_v11, %v6507_v39  ;;  %v6550_v16 = vadd.f32 %v6549_v53, %v6548_v17 }
0x1984   : > { %v6468_v6 = vsub.f32 1.5, %v6467_v47 }
0x1985   : > { %v7542_v26 = vpop.eup %7541  ;;  %v9847_v21 = vadd.f32 1e-05, %v6414_v42  ;;  %v6529_v32 = vadd.f32 %v9856_v49, %v6518_v14 }
0x1986   : > { %v6469_v34 = vmul.f32 %v7540_v45, %v6468_v6  ;;  %v6475_v3 = vmul.f32 %v7542_v26, %v9822_v54  ;;  %vm6481_vm11 = vweird.f32 %v7542_v26  ;;  %v6542_v54 = vrot.slane %v6541_v20, 4 }
0x1987   : > { %7543 = vrsqrt.f32 %v9847_v21  ;;  %vm6482_vm13 = vmor %vm6480_vm12, %vm6481_vm11  ;;  %v6555_v33 = vsel %vm727_vm0, %v6529_v32, 0.0  ;;  %vm6490_vm15 = vweird.f32 %v9847_v21  ;;  %vm6626_vm11 = vcmask 1047559  }
0x1988   : > { %v6473_v40 = vsel %vm6472_vm10, %v7540_v45, %v6469_v34  ;;  %v6476_v57 = vmul.f32 %v7542_v26, %v6475_v3  ;;  %v6556_v27 = vrot.slane %v6555_v33, 4  ;;  %v6543_v47 = vadd.f32 %v6542_v54, %v6541_v20 }
0x1989   : > { %v6508_v9 = vmul.f32 %v6473_v40, %v9788_v0  ;;  %v6551_v40 = vrot.slane %v6550_v16, 2  ;;  %vm6624_vm10 = vcmask 1046534  }
0x198a   : > { %v6477_v30 = vmul.f32 0.5, %v6476_v57  ;;  %v6407_v55 = vpop.xlane.xlu0 %6406  ;;  %v6557_v60 = vadd.f32 %v6556_v27, %v6555_v33  ;;  %v6544_v3 = vrot.slane %v6543_v47, 2 }
0x198b   : > { %v6415_v19 = vmul.f32 %v6407_v55, %v8492_v35  ;;  %v6519_v37 = vmul.f32 %v9843_v11, %v6508_v9  ;;  %v6552_v14 = vadd.f32 %v6551_v40, %v6550_v16 }
0x198c   : > { %v6478_v0 = vsub.f32 1.5, %v6477_v30  ;;  %v6558_v12 = vrot.slane %v6557_v60, 2  ;;  %v6545_v30 = vadd.f32 %v6544_v3, %v6543_v47 }
0x198d   : > { %v7544_v31 = vpop.eup %7543  ;;  %v6423_v48 = vadd.f32 1e-05, %v6415_v19  ;;  %v6530_v4 = vadd.f32 %v9856_v49, %v6519_v37 }
0x198e   : > { %v6479_v1 = vmul.f32 %v7542_v26, %v6478_v0  ;;  %v6485_v35 = vmul.f32 %v7544_v31, %v9847_v21  ;;  %vm6491_vm14 = vweird.f32 %v7544_v31  ;;  %v6559_v0 = vadd.f32 %v6558_v12, %v6557_v60 }
0x198f   : > { %7545 = vrsqrt.f32 %v6423_v48  ;;  %v6562_v2 = vsel %vm727_vm0, %v6530_v4, 0.0  ;;  %vm6492_vm4 = vmor %vm6490_vm15, %vm6491_vm14  ;;  %vm6500_vm2 = vweird.f32 %v6423_v48  ;;  %v6546_v62 = vrot.slane %v6545_v30, 1 }
0x1990   : > { %v6483_v10 = vsel %vm6482_vm13, %v7542_v26, %v6479_v1  ;;  %v6486_v56 = vmul.f32 %v7544_v31, %v6485_v35  ;;  %v6563_v22 = vrot.slane %v6562_v2, 4  ;;  %v6536_v26 = vadd.f32 %v6535_v51, %v6534_v63 }
0x1991   : > { %v6509_v41 = vmul.f32 %v6483_v10, %v9794_v36  ;;  %v6553_v1 = vrot.slane %v6552_v14, 1  ;;  %v6560_v32 = vrot.slane %v6559_v0, 1  ;;  %v6547_v20 = vadd.f32 %v6546_v62, %v6545_v30 }
0x1992   : > { %v6487_v13 = vmul.f32 0.5, %v6486_v56  ;;  %v6564_v15 = vadd.f32 %v6563_v22, %v6562_v2  ;;  %v6537_v38 = vrot.slane %v6536_v26, 2 }
0x1993   : > { %v6520_v45 = vmul.f32 %v9843_v11, %v6509_v41  ;;  %v6554_v63 = vadd.f32 %v6553_v1, %v6552_v14  ;;  %v6561_v33 = vadd.f32 %v6560_v32, %v6559_v0  ;;  %v6591_v54 = vmul.f32 0.125, %v6547_v20 }
0x1994   : > { %v6488_v28 = vsub.f32 1.5, %v6487_v13  ;;  %v6565_v29 = vrot.slane %v6564_v15, 2  ;;  %v6538_v37 = vadd.f32 %v6537_v38, %v6536_v26 }
0x1995   : > { %v7546_v50 = vpop.eup %7545  ;;  %v6531_v36 = vadd.f32 %v9856_v49, %v6520_v45  ;;  %v6593_v53 = vmul.f32 0.125, %v6561_v33 }
0x1996   : > { %v6489_v18 = vmul.f32 %v7544_v31, %v6488_v28  ;;  %v6495_v59 = vmul.f32 %v7546_v50, %v6423_v48  ;;  %vm6501_vm1 = vweird.f32 %v7546_v50  ;;  %v6539_v24 = vrot.slane %v6538_v37, 1 }
0x1997   : > { %v6569_v61 = vsel %vm727_vm0, %v6531_v36, 0.0  ;;  %vm6502_vm3 = vmor %vm6500_vm2, %vm6501_vm1 }
0x1998   : > { %v6570_v44 = vrot.slane %v6569_v61, 4  ;;  %v6493_v8 = vsel %vm6492_vm4, %v7544_v31, %v6489_v18  ;;  %v6496_v42 = vmul.f32 %v7546_v50, %v6495_v59  ;;  %v6566_v31 = vadd.f32 %v6565_v29, %v6564_v15 }
0x1999   : > { %v6510_v6 = vmul.f32 %v6493_v8, %v9800_v58  ;;  %v6540_v13 = vadd.f32 %v6539_v24, %v6538_v37 }
0x199a   : > { %v6497_v5 = vmul.f32 0.5, %v6496_v42  ;;  %v6571_v21 = vadd.f32 %v6570_v44, %v6569_v61  ;;  %v6567_v10 = vrot.slane %v6566_v31, 1 }
0x199b   : > { %v6521_v34 = vmul.f32 %v9843_v11, %v6510_v6  ;;  %v6590_v51 = vmul.f32 0.125, %v6540_v13 }
0x199c   : > { %v6498_v39 = vsub.f32 1.5, %v6497_v5  ;;  %v6572_v55 = vrot.slane %v6571_v21, 2  ;;  %v6568_v45 = vadd.f32 %v6567_v10, %v6566_v31  ;;  %v7224_v5 = vld [vmem:[%s9930_s16] ss:$0 sm:$0xff] }
0x199d   : > { %v6532_v57 = vadd.f32 %v9856_v49, %v6521_v34  ;;  %v6615_v22 = vsel %vm6614_vm5, %v6591_v54, %v6590_v51 }
0x199e   : > { %v6499_v9 = vmul.f32 %v7546_v50, %v6498_v39  ;;  %v6573_v25 = vadd.f32 %v6572_v55, %v6571_v21  ;;  %v6594_v27 = vmul.f32 0.125, %v6568_v45 }
0x199f   : > { %v6576_v58 = vsel %vm727_vm0, %v6532_v57, 0.0 }
0x19a0   : > { %v6577_v43 = vrot.slane %v6576_v58, 4  ;;  %v6503_v7 = vsel %vm6502_vm3, %v7546_v50, %v6499_v9  ;;  %v6574_v41 = vrot.slane %v6573_v25, 1  ;;  %v6592_v50 = vmul.f32 0.125, %v6554_v63 }
0x19a1   : > { %v6511_v19 = vmul.f32 %v6503_v7, %v9806_v52 }
0x19a2   : > { %v6578_v46 = vadd.f32 %v6577_v43, %v6576_v58  ;;  %v6575_v2 = vadd.f32 %v6574_v41, %v6573_v25  ;;  %v6617_v47 = vsel %vm6616_vm6, %v6592_v50, %v6615_v22 }
0x19a3   : > { %v6522_v23 = vmul.f32 %v9843_v11, %v6511_v19  ;;  %v6619_v8 = vsel %vm6618_vm7, %v6593_v53, %v6617_v47 }
0x19a4   : > { %v6579_v48 = vrot.slane %v6578_v46, 2  ;;  %v6595_v59 = vmul.f32 0.125, %v6575_v2  ;;  %v6621_v42 = vsel %vm6620_vm8, %v6594_v27, %v6619_v8 }
0x19a5   : > { %v6533_v35 = vadd.f32 %v9856_v49, %v6522_v23 }
0x19a6   : > { %v6580_v4 = vadd.f32 %v6579_v48, %v6578_v46  ;;  %v6623_v6 = vsel %vm6622_vm9, %v6595_v59, %v6621_v42 }
0x19a7   : > { %v6583_v56 = vsel %vm727_vm0, %v6533_v35, 0.0 }
0x19a8   : > { %v6584_v52 = vrot.slane %v6583_v56, 4  ;;  %v6581_v17 = vrot.slane %v6580_v4, 1 }
0x19aa   : > { %v6585_v11 = vadd.f32 %v6584_v52, %v6583_v56  ;;  %v6582_v49 = vadd.f32 %v6581_v17, %v6580_v4 }
0x19ac   : > { %v6586_v28 = vrot.slane %v6585_v11, 2  ;;  %v6596_v61 = vmul.f32 0.125, %v6582_v49 }
0x19ae   : > { %v6587_v36 = vadd.f32 %v6586_v28, %v6585_v11  ;;  %v6625_v26 = vsel %vm6624_vm10, %v6596_v61, %v6623_v6 }
0x19b0   : > { %v6588_v18 = vrot.slane %v6587_v36, 1 }
0x19b2   : > { %v6589_v44 = vadd.f32 %v6588_v18, %v6587_v36 }
0x19b4   : > { %v6597_v16 = vmul.f32 0.125, %v6589_v44 }
0x19b6   : > { %v6627_v60 = vsel %vm6626_vm11, %v6597_v16, %v6625_v26 }
0x19b7   : > { %7010 = vmatmul.msk.f32.vlgmr.msrb.gmra.mxu3 %vm727_vm0, %v6627_v60 }
0x1a3a   : > { %v6647_v15 = vpop.f32.mrf.mxu3 }
0x1a3b   : > { %v6648_v34 = vadd.f32 %v7224_v5, %v6647_v15 }
0x1a3d   : > { %6650 = vmax.xlane.f32.xlu1 %v6648_v34 }
0x1ab0   : > { %v6651_v3 = vpop.xlane.xlu1 %6650 }
0x1ab1   : > { %v6652_v21 = vsub.f32 %v6648_v34, %v6651_v3 }
0x1ab3   : > { %v6653_v39 = vmul.f32 1.442695, %v6652_v21 }
0x1ab5   : > { %7547 = vpow2.f32 %v6653_v39 }
0x1abb   : > { %v7548_v40 = vpop.eup %7547 }
0x1abc   : > { %6655 = vadd.xlane.f32.xlu2 %v7548_v40 }
0x1b2f   : > { %v6656_v57 = vpop.xlane.xlu2 %6655 }
0x1b30   : > { %7549 = vrcp.f32 %v6656_v57  ;;  %v6668_v29 = vand.u32 2147483648, %v6656_v57  ;;  %v6666_v30 = vand.u32 2147483647, %v6656_v57  ;;  %vm6662_vm12 = vweird.f32 %v6656_v57 }
0x1b32   : > { %v6669_v43 = vor.u32 1.1754944e-38, %v6668_v29  ;;  %vm6667_vm14 = vcmp.eq.f32.partialorder %v6666_v30, 8.507059e+37 }
0x1b36   : > { %v7550_v38 = vpop.eup %7549 }
0x1b37   : > { %v6658_v12 = vmul.f32 %v7550_v38, %v6656_v57  ;;  %vm6663_vm0 = vweird.f32 %v7550_v38 }
0x1b38   : > { %vm6664_vm13 = vmor %vm6662_vm12, %vm6663_vm0 }
0x1b39   : > { %v6659_v9 = vsub.f32 1.0, %v6658_v12 }
0x1b3b   : > { %v6660_v58 = vmul.f32 %v7550_v38, %v6659_v9 }
0x1b3d   : > { %v6661_v55 = vadd.f32 %v7550_v38, %v6660_v58 }
0x1b3f   : > { %v6665_v7 = vsel %vm6664_vm13, %v7550_v38, %v6661_v55 }
0x1b40   : > { %v6670_v14 = vsel %vm6667_vm14, %v6669_v43, %v6665_v7 }
0x1b41   : > { %v6671_v19 = vmul.f32 %v7548_v40, %v6670_v14 }
0x1b43   : > { %6672 = vst [vmem:[%s548_s26] sm:$0xff] %v6671_v19 }
0x1b44 PF: > { %s27_s24 = sadd.s32 1, %s7557_s24  }
0x1b45   : > { %p24_p5 = scmp.ge.s32.totalorder %s27_s24, 4  }
0x1b47   :  { %26 = sbr.rel (!%p24_p5) target bundleno = 3 (0x3), region = 130 }

</bundles_post_ra>
